<compile_context>
chip_gen: v6e
topology: v6e:2x2x1
jax: 0.10.0
libtpu: 0.0.40
codegen_flags: <defaults>
</compile_context>

<pallas_src>
import functools
import numpy as np

import jax
import jax.numpy as jnp
from jax.experimental import pallas as pl
from jax.experimental.pallas import tpu as pltpu

WINDOW_SIZE = 11
SIGMA = 1.5
C1 = 0.01 ** 2
C2 = 0.03 ** 2
EPS = 1e-8


def _gaussian_window_1d(window_size=WINDOW_SIZE, sigma=SIGMA):
    xs = np.arange(window_size)
    g = np.exp(-((xs - window_size // 2) ** 2) / (2.0 * sigma ** 2))
    return (g / g.sum()).astype(np.float64)


_WINDOW_1D = _gaussian_window_1d()
_WINDOW_2D = np.outer(_WINDOW_1D, _WINDOW_1D).astype(np.float32)


def _band_matrix(n, window_1d, pad):
    """Banded Toeplitz matrix encoding a 'same' zero-padded 1-D Gaussian blur.

    (B @ X) blurs X along its rows (vertical blur); (X @ B.T) blurs along
    columns.  Rows near the border sum to < 1, exactly matching conv2d with
    zero padding = pad.
    """
    win = len(window_1d)
    m = np.zeros((n, n), dtype=np.float32)
    for i in range(n):                # output index
        for d in range(win):
            j = i + d - pad           # input index
            if 0 <= j < n:
                m[i, j] += float(window_1d[d])
    return m


def _vmem_capacity_bytes():
    try:
        return int(pltpu.get_tpu_info().vmem_capacity_bytes)
    except Exception:
        return 64 * 1024 * 1024       # conservative (v7x per-TC VMEM)


def _plane_group(BC, H, W, budget_bytes):
    """Largest divisor P of BC whose kernel-1 VMEM footprint fits the budget.

    Footprint: double-buffered in/out blocks (2 inputs + 1 output, 2 buffers
    each) + band matrices + ~12 streamed single-plane f32 temporaries.
    Keeps G = BC // P >= 2 whenever possible so the grid shards across both
    v7x TensorCores.
    """
    plane = H * W * 4
    fixed = 2 * (H * H + W * W) * 4 + 12 * plane
    best = 1
    for cand in range(1, BC + 1):
        if BC % cand:
            continue
        if BC >= 2 and BC // cand < 2:
            continue                   # keep G >= 2 for megacore
        if fixed + 2 * 3 * cand * plane <= budget_bytes:
            best = cand
    return best


def _row_block(rows, W, budget_bytes=4 * 1024 * 1024):
    """Row-block size for kernel 2 (flat (rows, W) streaming)."""
    cands = [c for c in range(1, rows + 1)
             if rows % c == 0 and (c % 8 == 0 or c == rows)
             and c * W * 4 <= budget_bytes]
    if not cands:
        m8 = [c for c in range(1, rows + 1) if rows % c == 0 and c % 8 == 0]
        return min(m8) if m8 else rows
    multi = [c for c in cands if rows // c >= 2]   # prefer >= 2 grid steps
    return max(multi) if multi else max(cands)


# ----------------------------------------------------------------------------
# Kernel 1: per plane-group -> SSIM map + packed per-group (min, max)
# Separable Gaussian blur as two MXU band matmuls per plane; padding is
# encoded in the band matrices, so no padded scratch / zero fill is needed.
# ----------------------------------------------------------------------------
def _ssim_map_kernel(bh_ref, bw_ref, x1_ref, x2_ref, ssim_ref, stats_ref, *, P):
    bh = bh_ref[...]                  # (H, H) vertical band matrix
    bw = bw_ref[...]                  # (W, W) horizontal band matrix

    def blur(x):                      # (H, W) -> (H, W), zero-padded 'same'
        y = jnp.dot(bh, x, preferred_element_type=jnp.float32,
                    precision=jax.lax.Precision.HIGHEST)
        return jnp.dot(y, bw, preferred_element_type=jnp.float32,
                       precision=jax.lax.Precision.HIGHEST)

    gmin = None
    gmax = None
    # Stream the planes of the group one at a time: only single-plane
    # temporaries are live, keeping vreg / VMEM pressure low.
    for p in range(P):
        a = x1_ref[p]                 # (H, W)
        b = x2_ref[p]

        mu1 = blur(a)
        mu2 = blur(b)
        e11 = blur(a * a)
        e22 = blur(b * b)
        e12 = blur(a * b)

        mu1_sq = mu1 * mu1
        mu2_sq = mu2 * mu2
        mu1_mu2 = mu1 * mu2
        sigma1_sq = e11 - mu1_sq
        sigma2_sq = e22 - mu2_sq
        sigma12 = e12 - mu1_mu2

        smap = ((2.0 * mu1_mu2 + C1) * (2.0 * sigma12 + C2)) / (
            (mu1_sq + mu2_sq + C1) * (sigma1_sq + sigma2_sq + C2))

        ssim_ref[p] = smap

        pmin = jnp.min(smap)
        pmax = jnp.max(smap)
        gmin = pmin if gmin is None else jnp.minimum(gmin, pmin)
        gmax = pmax if gmax is None else jnp.maximum(gmax, pmax)

    # Pack (min, max) into a single tiny output block.
    lane = jax.lax.broadcasted_iota(jnp.int32, (1, 1, 2), 2)
    stats_ref[...] = jnp.where(lane == 0, gmin, gmax)


# ----------------------------------------------------------------------------
# Kernel 2: normalize by global (min, max), -log(. + eps), per-block partials.
# Pure HBM streaming over large flat row blocks; lane-dense partial output.
# ----------------------------------------------------------------------------
def _norm_log_sum_kernel(minmax_ref, ssim_ref, psum_ref):
    lo = minmax_ref[0]
    hi = minmax_ref[1]
    # NOTE: the EPS guard differs from the reference's unguarded (max - min)
    # only when the SSIM map is exactly constant.
    inv = 1.0 / jnp.maximum(hi - lo, EPS)    # hoisted scalar reciprocal
    x = (ssim_ref[...] - lo) * inv
    nll = -jnp.log(x + EPS)
    psum_ref[...] = jnp.sum(nll, axis=0, keepdims=True).reshape(1, 1, -1)


# ----------------------------------------------------------------------------
# Wrapper
# ----------------------------------------------------------------------------
def logssim(img1, img2, window_size=WINDOW_SIZE, size_average=True):
    if not size_average:
        # TODO(synk): size_average=False (per-sample mean) not implemented.
        raise NotImplementedError("size_average=False not implemented")

    B, C, H, W = img1.shape
    BC = B * C
    pad = window_size // 2

    w1d = _gaussian_window_1d(window_size)
    bh = jnp.asarray(_band_matrix(H, w1d, pad))       # left-multiply (vertical)
    bw = jnp.asarray(_band_matrix(W, w1d, pad).T)     # right-multiply (horizontal)

    x1 = img1.astype(jnp.float32).reshape(BC, H, W)
    x2 = img2.astype(jnp.float32).reshape(BC, H, W)

    vmem_cap = _vmem_capacity_bytes()
    budget = int(vmem_cap * 0.6)
    vmem_limit = int(vmem_cap * 0.9)

    P = _plane_group(BC, H, W, budget)
    G = BC // P

    kernel1 = functools.partial(_ssim_map_kernel, P=P)

    ssim_map, stats = pl.pallas_call(
        kernel1,
        out_shape=(
            jax.ShapeDtypeStruct((BC, H, W), jnp.float32),
            jax.ShapeDtypeStruct((G, 1, 2), jnp.float32),
        ),
        grid=(G,),
        in_specs=[
            pl.BlockSpec((H, H), lambda i: (0, 0)),
            pl.BlockSpec((W, W), lambda i: (0, 0)),
            pl.BlockSpec((P, H, W), lambda i: (i, 0, 0)),
            pl.BlockSpec((P, H, W), lambda i: (i, 0, 0)),
        ],
        out_specs=(
            pl.BlockSpec((P, H, W), lambda i: (i, 0, 0)),
            pl.BlockSpec((1, 1, 2), lambda i: (i, 0, 0)),
        ),
        compiler_params=pltpu.CompilerParams(
            dimension_semantics=("parallel",),
            vmem_limit_bytes=vmem_limit),
    )(bh, bw, x1, x2)

    # Tiny (G,)-sized glue reduction of packed per-group (min, max).
    lo = jnp.min(stats[:, 0, 0])
    hi = jnp.max(stats[:, 0, 1])
    minmax = jnp.stack([lo, hi]).astype(jnp.float32)

    # Kernel 2: stream the SSIM map in large flat blocks (independent of P).
    rows = BC * H
    R2 = _row_block(rows, W)
    G2 = rows // R2
    ssim_flat = ssim_map.reshape(rows, W)

    partials = pl.pallas_call(
        _norm_log_sum_kernel,
        out_shape=jax.ShapeDtypeStruct((G2, 1, W), jnp.float32),
        grid=(G2,),
        in_specs=[
            pl.BlockSpec(memory_space=pltpu.MemorySpace.SMEM),
            pl.BlockSpec((R2, W), lambda i: (i, 0)),
        ],
        out_specs=pl.BlockSpec((1, 1, W), lambda i: (i, 0, 0)),
        compiler_params=pltpu.CompilerParams(
            dimension_semantics=("parallel",),
            vmem_limit_bytes=32 * 1024 * 1024),
    )(minmax, ssim_flat)

    total = jnp.sum(partials)
    return total / (BC * H * W)


# ----------------------------------------------------------------------------
# Pure-JAX reference (sanity check only)
# ----------------------------------------------------------------------------
def ref_logssim(img1, img2, window_size=WINDOW_SIZE):
    B, C, H, W = img1.shape
    pad = window_size // 2
    window = jnp.broadcast_to(
        jnp.asarray(_WINDOW_2D), (C, 1, window_size, window_size)
    ).astype(jnp.float32)
    dn = jax.lax.conv_dimension_numbers(
        img1.shape, window.shape, ("NCHW", "OIHW", "NCHW"))

    def conv(x):
        return jax.lax.conv_general_dilated(
            x.astype(jnp.float32), window, (1, 1), [(pad, pad), (pad, pad)],
            dimension_numbers=dn, feature_group_count=C,
            precision=jax.lax.Precision.HIGHEST)

    mu1, mu2 = conv(img1), conv(img2)
    mu1_sq, mu2_sq, mu1_mu2 = mu1 * mu1, mu2 * mu2, mu1 * mu2
    sigma1_sq = conv(img1 * img1) - mu1_sq
    sigma2_sq = conv(img2 * img2) - mu2_sq
    sigma12 = conv(img1 * img2) - mu1_mu2
    smap = ((2 * mu1_mu2 + C1) * (2 * sigma12 + C2)) / (
        (mu1_sq + mu2_sq + C1) * (sigma1_sq + sigma2_sq + C2))
    smap = (smap - jnp.min(smap)) / (jnp.max(smap) - jnp.min(smap))
    smap = -jnp.log(smap + EPS)
    return jnp.mean(smap)


if __name__ == "__main__":
    key = jax.random.PRNGKey(0)
    k1, k2 = jax.random.split(key)
    B, C, H, W = 2, 4, 16, 16
    img1 = jax.random.uniform(k1, (B, C, H, W), dtype=jnp.float32)
    img2 = jax.random.uniform(k2, (B, C, H, W), dtype=jnp.float32)

    out = jax.jit(logssim)(img1, img2)
    out = jax.block_until_ready(out)

    ref = ref_logssim(img1, img2)
    assert jnp.allclose(out, ref, rtol=1e-2, atol=1e-2), (out, ref)
    print("KERNEL_OK")
</pallas_src>

<mosaic_0001>
module attributes {stable_mosaic.version = 11 : i64} {
  func.func @_norm_log_sum_kernel(%arg0: i32, %arg1: memref<2xf32, #tpu.memory_space<smem>>, %arg2: memref<64x16xf32, #tpu.memory_space<vmem>>, %arg3: memref<1x1x16xf32, #tpu.memory_space<vmem>>) attributes {dimension_semantics = [#tpu.dimension_semantics<parallel>], iteration_bounds = array<i64: 2>, scalar_prefetch = 0 : i64, scratch_operands = 0 : i64, tpu.core_type = #tpu.core_type<tc>, window_params = [{transform_indices = @transform_0, window_bounds = array<i64: 2>}, {transform_indices = @transform_1, window_bounds = array<i64: 64, 16>}, {transform_indices = @transform_2, window_bounds = array<i64: 1, 1, 16>}]} {
    %c0 = arith.constant 0 : index
    %0 = memref.load %arg1[%c0] : memref<2xf32, #tpu.memory_space<smem>>
    %c1 = arith.constant 1 : index
    %1 = memref.load %arg1[%c1] : memref<2xf32, #tpu.memory_space<smem>>
    %2 = arith.subf %1, %0 : f32
    %cst = arith.constant 9.99999993E-9 : f32
    %3 = arith.maximumf %2, %cst : f32
    %cst_0 = arith.constant 1.000000e+00 : f32
    %4 = arith.divf %cst_0, %3 : f32
    %c0_1 = arith.constant 0 : index
    %c0_2 = arith.constant 0 : index
    %5 = vector.load %arg2[%c0_1, %c0_2] : memref<64x16xf32, #tpu.memory_space<vmem>>, vector<64x16xf32>
    %6 = vector.broadcast %0 : f32 to vector<64x16xf32>
    %7 = arith.subf %5, %6 : vector<64x16xf32>
    %8 = vector.broadcast %4 : f32 to vector<64x16xf32>
    %9 = arith.mulf %7, %8 : vector<64x16xf32>
    %cst_3 = arith.constant 9.99999993E-9 : f32
    %10 = vector.broadcast %cst_3 : f32 to vector<64x16xf32>
    %11 = arith.addf %9, %10 : vector<64x16xf32>
    %12 = math.log %11 : vector<64x16xf32>
    %cst_4 = arith.constant 0.000000e+00 : f32
    %13 = vector.broadcast %cst_4 : f32 to vector<64x16xf32>
    %14 = arith.subf %13, %12 : vector<64x16xf32>
    %cst_5 = arith.constant dense<0.000000e+00> : vector<16xf32>
    %15 = vector.multi_reduction <add>, %14, %cst_5 [0] : vector<64x16xf32> to vector<16xf32>
    %16 = vector.shape_cast %15 : vector<16xf32> to vector<1x16xf32>
    %17 = vector.shape_cast %16 : vector<1x16xf32> to vector<1x1x16xf32>
    %c0_6 = arith.constant 0 : index
    %c0_7 = arith.constant 0 : index
    %c0_8 = arith.constant 0 : index
    %18 = vector.load %arg3[%c0_6, %c0_7, %c0_8] : memref<1x1x16xf32, #tpu.memory_space<vmem>>, vector<1x1x16xf32>
    tpu.vector_store %arg3[%c0_6, %c0_7, %c0_8], %17 {strides = array<i32>} : memref<1x1x16xf32, #tpu.memory_space<vmem>>, vector<1x1x16xf32>,
    return
  }
  func.func @transform_0(%arg0: i32) -> i32 {
    %c0_i32 = arith.constant 0 : i32
    %c0_i32_0 = arith.constant 0 : i32
    return %c0_i32 : i32
  }
  func.func @transform_1(%arg0: i32) -> (i32, i32) {
    %c0_i32 = arith.constant 0 : i32
    %c0_i32_0 = arith.constant 0 : i32
    return %arg0, %c0_i32 : i32, i32
  }
  func.func @transform_2(%arg0: i32) -> (i32, i32, i32) {
    %c0_i32 = arith.constant 0 : i32
    %c0_i32_0 = arith.constant 0 : i32
    %c0_i32_1 = arith.constant 0 : i32
    return %arg0, %c0_i32, %c0_i32_0 : i32, i32, i32
  }
}

module attributes {stable_mosaic.version = 11 : i64} {
  func.func @_ssim_map_kernel(%arg0: i32, %arg1: memref<16x16xf32, #tpu.memory_space<vmem>>, %arg2: memref<16x16xf32, #tpu.memory_space<vmem>>, %arg3: memref<4x16x16xf32, #tpu.memory_space<vmem>>, %arg4: memref<4x16x16xf32, #tpu.memory_space<vmem>>, %arg5: memref<4x16x16xf32, #tpu.memory_space<vmem>>, %arg6: memref<1x1x2xf32, #tpu.memory_space<vmem>>) attributes {dimension_semantics = [#tpu.dimension_semantics<parallel>], iteration_bounds = array<i64: 2>, scalar_prefetch = 0 : i64, scratch_operands = 0 : i64, tpu.core_type = #tpu.core_type<tc>, window_params = [{pipeline_mode = #tpu.pipeline_mode<synchronous>, transform_indices = @transform_0, window_bounds = array<i64: 16, 16>}, {pipeline_mode = #tpu.pipeline_mode<synchronous>, transform_indices = @transform_1, window_bounds = array<i64: 16, 16>}, {transform_indices = @transform_2, window_bounds = array<i64: 4, 16, 16>}, {transform_indices = @transform_3, window_bounds = array<i64: 4, 16, 16>}, {transform_indices = @transform_4, window_bounds = array<i64: 4, 16, 16>}, {transform_indices = @transform_5, window_bounds = array<i64: 1, 1, 2>}]} {
    %c0 = arith.constant 0 : index
    %c0_0 = arith.constant 0 : index
    %0 = vector.load %arg1[%c0, %c0_0] : memref<16x16xf32, #tpu.memory_space<vmem>>, vector<16x16xf32>
    %c0_1 = arith.constant 0 : index
    %c0_2 = arith.constant 0 : index
    %1 = vector.load %arg2[%c0_1, %c0_2] : memref<16x16xf32, #tpu.memory_space<vmem>>, vector<16x16xf32>
    %c0_3 = arith.constant 0 : index
    %c0_4 = arith.constant 0 : index
    %c0_5 = arith.constant 0 : index
    %2 = vector.load %arg3[%c0_3, %c0_4, %c0_5] : memref<4x16x16xf32, #tpu.memory_space<vmem>>, vector<1x16x16xf32>
    %3 = vector.shape_cast %2 : vector<1x16x16xf32> to vector<16x16xf32>
    %c0_6 = arith.constant 0 : index
    %c0_7 = arith.constant 0 : index
    %c0_8 = arith.constant 0 : index
    %4 = vector.load %arg4[%c0_6, %c0_7, %c0_8] : memref<4x16x16xf32, #tpu.memory_space<vmem>>, vector<1x16x16xf32>
    %5 = vector.shape_cast %4 : vector<1x16x16xf32> to vector<16x16xf32>
    %cst = arith.constant dense<0.000000e+00> : vector<16x16xf32>
    %6 = tpu.matmul %0, %3, %cst {dimension_numbers = #tpu.dot_dimension_numbers<[1], [0], [0], [1], [0, 0, 1, 1], [], []>, precision = #tpu.contract_precision<fp32>} : vector<16x16xf32>, vector<16x16xf32>, vector<16x16xf32> -> vector<16x16xf32>
    %cst_9 = arith.constant dense<0.000000e+00> : vector<16x16xf32>
    %7 = tpu.matmul %6, %1, %cst_9 {dimension_numbers = #tpu.dot_dimension_numbers<[1], [0], [0], [1], [0, 0, 1, 1], [], []>, precision = #tpu.contract_precision<fp32>} : vector<16x16xf32>, vector<16x16xf32>, vector<16x16xf32> -> vector<16x16xf32>
    %cst_10 = arith.constant dense<0.000000e+00> : vector<16x16xf32>
    %8 = tpu.matmul %0, %5, %cst_10 {dimension_numbers = #tpu.dot_dimension_numbers<[1], [0], [0], [1], [0, 0, 1, 1], [], []>, precision = #tpu.contract_precision<fp32>} : vector<16x16xf32>, vector<16x16xf32>, vector<16x16xf32> -> vector<16x16xf32>
    %cst_11 = arith.constant dense<0.000000e+00> : vector<16x16xf32>
    %9 = tpu.matmul %8, %1, %cst_11 {dimension_numbers = #tpu.dot_dimension_numbers<[1], [0], [0], [1], [0, 0, 1, 1], [], []>, precision = #tpu.contract_precision<fp32>} : vector<16x16xf32>, vector<16x16xf32>, vector<16x16xf32> -> vector<16x16xf32>
    %10 = arith.mulf %3, %3 : vector<16x16xf32>
    %cst_12 = arith.constant dense<0.000000e+00> : vector<16x16xf32>
    %11 = tpu.matmul %0, %10, %cst_12 {dimension_numbers = #tpu.dot_dimension_numbers<[1], [0], [0], [1], [0, 0, 1, 1], [], []>, precision = #tpu.contract_precision<fp32>} : vector<16x16xf32>, vector<16x16xf32>, vector<16x16xf32> -> vector<16x16xf32>
    %cst_13 = arith.constant dense<0.000000e+00> : vector<16x16xf32>
    %12 = tpu.matmul %11, %1, %cst_13 {dimension_numbers = #tpu.dot_dimension_numbers<[1], [0], [0], [1], [0, 0, 1, 1], [], []>, precision = #tpu.contract_precision<fp32>} : vector<16x16xf32>, vector<16x16xf32>, vector<16x16xf32> -> vector<16x16xf32>
    %13 = arith.mulf %5, %5 : vector<16x16xf32>
    %cst_14 = arith.constant dense<0.000000e+00> : vector<16x16xf32>
    %14 = tpu.matmul %0, %13, %cst_14 {dimension_numbers = #tpu.dot_dimension_numbers<[1], [0], [0], [1], [0, 0, 1, 1], [], []>, precision = #tpu.contract_precision<fp32>} : vector<16x16xf32>, vector<16x16xf32>, vector<16x16xf32> -> vector<16x16xf32>
    %cst_15 = arith.constant dense<0.000000e+00> : vector<16x16xf32>
    %15 = tpu.matmul %14, %1, %cst_15 {dimension_numbers = #tpu.dot_dimension_numbers<[1], [0], [0], [1], [0, 0, 1, 1], [], []>, precision = #tpu.contract_precision<fp32>} : vector<16x16xf32>, vector<16x16xf32>, vector<16x16xf32> -> vector<16x16xf32>
    %16 = arith.mulf %3, %5 : vector<16x16xf32>
    %cst_16 = arith.constant dense<0.000000e+00> : vector<16x16xf32>
    %17 = tpu.matmul %0, %16, %cst_16 {dimension_numbers = #tpu.dot_dimension_numbers<[1], [0], [0], [1], [0, 0, 1, 1], [], []>, precision = #tpu.contract_precision<fp32>} : vector<16x16xf32>, vector<16x16xf32>, vector<16x16xf32> -> vector<16x16xf32>
    %cst_17 = arith.constant dense<0.000000e+00> : vector<16x16xf32>
    %18 = tpu.matmul %17, %1, %cst_17 {dimension_numbers = #tpu.dot_dimension_numbers<[1], [0], [0], [1], [0, 0, 1, 1], [], []>, precision = #tpu.contract_precision<fp32>} : vector<16x16xf32>, vector<16x16xf32>, vector<16x16xf32> -> vector<16x16xf32>
    %19 = arith.mulf %7, %7 : vector<16x16xf32>
    %20 = arith.mulf %9, %9 : vector<16x16xf32>
    %21 = arith.mulf %7, %9 : vector<16x16xf32>
    %22 = arith.subf %12, %19 : vector<16x16xf32>
    %23 = arith.subf %15, %20 : vector<16x16xf32>
    %24 = arith.subf %18, %21 : vector<16x16xf32>
    %cst_18 = arith.constant 2.000000e+00 : f32
    %25 = vector.broadcast %cst_18 : f32 to vector<16x16xf32>
    %26 = arith.mulf %25, %21 : vector<16x16xf32>
    %cst_19 = arith.constant 9.99999974E-5 : f32
    %27 = vector.broadcast %cst_19 : f32 to vector<16x16xf32>
    %28 = arith.addf %26, %27 : vector<16x16xf32>
    %cst_20 = arith.constant 2.000000e+00 : f32
    %29 = vector.broadcast %cst_20 : f32 to vector<16x16xf32>
    %30 = arith.mulf %29, %24 : vector<16x16xf32>
    %cst_21 = arith.constant 8.99999984E-4 : f32
    %31 = vector.broadcast %cst_21 : f32 to vector<16x16xf32>
    %32 = arith.addf %30, %31 : vector<16x16xf32>
    %33 = arith.mulf %28, %32 : vector<16x16xf32>
    %34 = arith.addf %19, %20 : vector<16x16xf32>
    %cst_22 = arith.constant 9.99999974E-5 : f32
    %35 = vector.broadcast %cst_22 : f32 to vector<16x16xf32>
    %36 = arith.addf %34, %35 : vector<16x16xf32>
    %37 = arith.addf %22, %23 : vector<16x16xf32>
    %cst_23 = arith.constant 8.99999984E-4 : f32
    %38 = vector.broadcast %cst_23 : f32 to vector<16x16xf32>
    %39 = arith.addf %37, %38 : vector<16x16xf32>
    %40 = arith.mulf %36, %39 : vector<16x16xf32>
    %41 = arith.divf %33, %40 : vector<16x16xf32>
    %c0_24 = arith.constant 0 : index
    %c0_25 = arith.constant 0 : index
    %c0_26 = arith.constant 0 : index
    %42 = vector.load %arg5[%c0_24, %c0_25, %c0_26] : memref<4x16x16xf32, #tpu.memory_space<vmem>>, vector<1x16x16xf32>
    %43 = vector.shape_cast %42 : vector<1x16x16xf32> to vector<16x16xf32>
    %44 = vector.shape_cast %41 : vector<16x16xf32> to vector<1x16x16xf32>
    tpu.vector_store %arg5[%c0_24, %c0_25, %c0_26], %44 {strides = array<i32>} : memref<4x16x16xf32, #tpu.memory_space<vmem>>, vector<1x16x16xf32>,
    %45 = vector.shape_cast %41 : vector<16x16xf32> to vector<1x16x16xf32>
    %cst_27 = arith.constant dense<0x7F800000> : vector<1xf32>
    %46 = vector.multi_reduction <minimumf>, %45, %cst_27 [1, 2] : vector<1x16x16xf32> to vector<1xf32>
    %47 = vector.shape_cast %46 : vector<1xf32> to vector<1x1x1xf32>
    %48 = vector.extract %47[0, 0, 0] : f32 from vector<1x1x1xf32>
    %49 = vector.shape_cast %41 : vector<16x16xf32> to vector<1x16x16xf32>
    %cst_28 = arith.constant dense<0xFF800000> : vector<1xf32>
    %50 = vector.multi_reduction <maximumf>, %49, %cst_28 [1, 2] : vector<1x16x16xf32> to vector<1xf32>
    %51 = vector.shape_cast %50 : vector<1xf32> to vector<1x1x1xf32>
    %52 = vector.extract %51[0, 0, 0] : f32 from vector<1x1x1xf32>
    %c1 = arith.constant 1 : index
    %c0_29 = arith.constant 0 : index
    %c0_30 = arith.constant 0 : index
    %53 = vector.load %arg3[%c1, %c0_29, %c0_30] : memref<4x16x16xf32, #tpu.memory_space<vmem>>, vector<1x16x16xf32>
    %54 = vector.shape_cast %53 : vector<1x16x16xf32> to vector<16x16xf32>
    %c1_31 = arith.constant 1 : index
    %c0_32 = arith.constant 0 : index
    %c0_33 = arith.constant 0 : index
    %55 = vector.load %arg4[%c1_31, %c0_32, %c0_33] : memref<4x16x16xf32, #tpu.memory_space<vmem>>, vector<1x16x16xf32>
    %56 = vector.shape_cast %55 : vector<1x16x16xf32> to vector<16x16xf32>
    %cst_34 = arith.constant dense<0.000000e+00> : vector<16x16xf32>
    %57 = tpu.matmul %0, %54, %cst_34 {dimension_numbers = #tpu.dot_dimension_numbers<[1], [0], [0], [1], [0, 0, 1, 1], [], []>, precision = #tpu.contract_precision<fp32>} : vector<16x16xf32>, vector<16x16xf32>, vector<16x16xf32> -> vector<16x16xf32>
    %cst_35 = arith.constant dense<0.000000e+00> : vector<16x16xf32>
    %58 = tpu.matmul %57, %1, %cst_35 {dimension_numbers = #tpu.dot_dimension_numbers<[1], [0], [0], [1], [0, 0, 1, 1], [], []>, precision = #tpu.contract_precision<fp32>} : vector<16x16xf32>, vector<16x16xf32>, vector<16x16xf32> -> vector<16x16xf32>
    %cst_36 = arith.constant dense<0.000000e+00> : vector<16x16xf32>
    %59 = tpu.matmul %0, %56, %cst_36 {dimension_numbers = #tpu.dot_dimension_numbers<[1], [0], [0], [1], [0, 0, 1, 1], [], []>, precision = #tpu.contract_precision<fp32>} : vector<16x16xf32>, vector<16x16xf32>, vector<16x16xf32> -> vector<16x16xf32>
    %cst_37 = arith.constant dense<0.000000e+00> : vector<16x16xf32>
    %60 = tpu.matmul %59, %1, %cst_37 {dimension_numbers = #tpu.dot_dimension_numbers<[1], [0], [0], [1], [0, 0, 1, 1], [], []>, precision = #tpu.contract_precision<fp32>} : vector<16x16xf32>, vector<16x16xf32>, vector<16x16xf32> -> vector<16x16xf32>
    %61 = arith.mulf %54, %54 : vector<16x16xf32>
    %cst_38 = arith.constant dense<0.000000e+00> : vector<16x16xf32>
    %62 = tpu.matmul %0, %61, %cst_38 {dimension_numbers = #tpu.dot_dimension_numbers<[1], [0], [0], [1], [0, 0, 1, 1], [], []>, precision = #tpu.contract_precision<fp32>} : vector<16x16xf32>, vector<16x16xf32>, vector<16x16xf32> -> vector<16x16xf32>
    %cst_39 = arith.constant dense<0.000000e+00> : vector<16x16xf32>
    %63 = tpu.matmul %62, %1, %cst_39 {dimension_numbers = #tpu.dot_dimension_numbers<[1], [0], [0], [1], [0, 0, 1, 1], [], []>, precision = #tpu.contract_precision<fp32>} : vector<16x16xf32>, vector<16x16xf32>, vector<16x16xf32> -> vector<16x16xf32>
    %64 = arith.mulf %56, %56 : vector<16x16xf32>
    %cst_40 = arith.constant dense<0.000000e+00> : vector<16x16xf32>
    %65 = tpu.matmul %0, %64, %cst_40 {dimension_numbers = #tpu.dot_dimension_numbers<[1], [0], [0], [1], [0, 0, 1, 1], [], []>, precision = #tpu.contract_precision<fp32>} : vector<16x16xf32>, vector<16x16xf32>, vector<16x16xf32> -> vector<16x16xf32>
    %cst_41 = arith.constant dense<0.000000e+00> : vector<16x16xf32>
    %66 = tpu.matmul %65, %1, %cst_41 {dimension_numbers = #tpu.dot_dimension_numbers<[1], [0], [0], [1], [0, 0, 1, 1], [], []>, precision = #tpu.contract_precision<fp32>} : vector<16x16xf32>, vector<16x16xf32>, vector<16x16xf32> -> vector<16x16xf32>
    %67 = arith.mulf %54, %56 : vector<16x16xf32>
    %cst_42 = arith.constant dense<0.000000e+00> : vector<16x16xf32>
    %68 = tpu.matmul %0, %67, %cst_42 {dimension_numbers = #tpu.dot_dimension_numbers<[1], [0], [0], [1], [0, 0, 1, 1], [], []>, precision = #tpu.contract_precision<fp32>} : vector<16x16xf32>, vector<16x16xf32>, vector<16x16xf32> -> vector<16x16xf32>
    %cst_43 = arith.constant dense<0.000000e+00> : vector<16x16xf32>
    %69 = tpu.matmul %68, %1, %cst_43 {dimension_numbers = #tpu.dot_dimension_numbers<[1], [0], [0], [1], [0, 0, 1, 1], [], []>, precision = #tpu.contract_precision<fp32>} : vector<16x16xf32>, vector<16x16xf32>, vector<16x16xf32> -> vector<16x16xf32>
    %70 = arith.mulf %58, %58 : vector<16x16xf32>
    %71 = arith.mulf %60, %60 : vector<16x16xf32>
    %72 = arith.mulf %58, %60 : vector<16x16xf32>
    %73 = arith.subf %63, %70 : vector<16x16xf32>
    %74 = arith.subf %66, %71 : vector<16x16xf32>
    %75 = arith.subf %69, %72 : vector<16x16xf32>
    %cst_44 = arith.constant 2.000000e+00 : f32
    %76 = vector.broadcast %cst_44 : f32 to vector<16x16xf32>
    %77 = arith.mulf %76, %72 : vector<16x16xf32>
    %cst_45 = arith.constant 9.99999974E-5 : f32
    %78 = vector.broadcast %cst_45 : f32 to vector<16x16xf32>
    %79 = arith.addf %77, %78 : vector<16x16xf32>
    %cst_46 = arith.constant 2.000000e+00 : f32
    %80 = vector.broadcast %cst_46 : f32 to vector<16x16xf32>
    %81 = arith.mulf %80, %75 : vector<16x16xf32>
    %cst_47 = arith.constant 8.99999984E-4 : f32
    %82 = vector.broadcast %cst_47 : f32 to vector<16x16xf32>
    %83 = arith.addf %81, %82 : vector<16x16xf32>
    %84 = arith.mulf %79, %83 : vector<16x16xf32>
    %85 = arith.addf %70, %71 : vector<16x16xf32>
    %cst_48 = arith.constant 9.99999974E-5 : f32
    %86 = vector.broadcast %cst_48 : f32 to vector<16x16xf32>
    %87 = arith.addf %85, %86 : vector<16x16xf32>
    %88 = arith.addf %73, %74 : vector<16x16xf32>
    %cst_49 = arith.constant 8.99999984E-4 : f32
    %89 = vector.broadcast %cst_49 : f32 to vector<16x16xf32>
    %90 = arith.addf %88, %89 : vector<16x16xf32>
    %91 = arith.mulf %87, %90 : vector<16x16xf32>
    %92 = arith.divf %84, %91 : vector<16x16xf32>
    %c1_50 = arith.constant 1 : index
    %c0_51 = arith.constant 0 : index
    %c0_52 = arith.constant 0 : index
    %93 = vector.load %arg5[%c1_50, %c0_51, %c0_52] : memref<4x16x16xf32, #tpu.memory_space<vmem>>, vector<1x16x16xf32>
    %94 = vector.shape_cast %93 : vector<1x16x16xf32> to vector<16x16xf32>
    %95 = vector.shape_cast %92 : vector<16x16xf32> to vector<1x16x16xf32>
    tpu.vector_store %arg5[%c1_50, %c0_51, %c0_52], %95 {strides = array<i32>} : memref<4x16x16xf32, #tpu.memory_space<vmem>>, vector<1x16x16xf32>,
    %96 = vector.shape_cast %92 : vector<16x16xf32> to vector<1x16x16xf32>
    %cst_53 = arith.constant dense<0x7F800000> : vector<1xf32>
    %97 = vector.multi_reduction <minimumf>, %96, %cst_53 [1, 2] : vector<1x16x16xf32> to vector<1xf32>
    %98 = vector.shape_cast %97 : vector<1xf32> to vector<1x1x1xf32>
    %99 = vector.extract %98[0, 0, 0] : f32 from vector<1x1x1xf32>
    %100 = vector.shape_cast %92 : vector<16x16xf32> to vector<1x16x16xf32>
    %cst_54 = arith.constant dense<0xFF800000> : vector<1xf32>
    %101 = vector.multi_reduction <maximumf>, %100, %cst_54 [1, 2] : vector<1x16x16xf32> to vector<1xf32>
    %102 = vector.shape_cast %101 : vector<1xf32> to vector<1x1x1xf32>
    %103 = vector.extract %102[0, 0, 0] : f32 from vector<1x1x1xf32>
    %104 = arith.minimumf %48, %99 : f32
    %105 = arith.maximumf %52, %103 : f32
    %c2 = arith.constant 2 : index
    %c0_55 = arith.constant 0 : index
    %c0_56 = arith.constant 0 : index
    %106 = vector.load %arg3[%c2, %c0_55, %c0_56] : memref<4x16x16xf32, #tpu.memory_space<vmem>>, vector<1x16x16xf32>
    %107 = vector.shape_cast %106 : vector<1x16x16xf32> to vector<16x16xf32>
    %c2_57 = arith.constant 2 : index
    %c0_58 = arith.constant 0 : index
    %c0_59 = arith.constant 0 : index
    %108 = vector.load %arg4[%c2_57, %c0_58, %c0_59] : memref<4x16x16xf32, #tpu.memory_space<vmem>>, vector<1x16x16xf32>
    %109 = vector.shape_cast %108 : vector<1x16x16xf32> to vector<16x16xf32>
    %cst_60 = arith.constant dense<0.000000e+00> : vector<16x16xf32>
    %110 = tpu.matmul %0, %107, %cst_60 {dimension_numbers = #tpu.dot_dimension_numbers<[1], [0], [0], [1], [0, 0, 1, 1], [], []>, precision = #tpu.contract_precision<fp32>} : vector<16x16xf32>, vector<16x16xf32>, vector<16x16xf32> -> vector<16x16xf32>
    %cst_61 = arith.constant dense<0.000000e+00> : vector<16x16xf32>
    %111 = tpu.matmul %110, %1, %cst_61 {dimension_numbers = #tpu.dot_dimension_numbers<[1], [0], [0], [1], [0, 0, 1, 1], [], []>, precision = #tpu.contract_precision<fp32>} : vector<16x16xf32>, vector<16x16xf32>, vector<16x16xf32> -> vector<16x16xf32>
    %cst_62 = arith.constant dense<0.000000e+00> : vector<16x16xf32>
    %112 = tpu.matmul %0, %109, %cst_62 {dimension_numbers = #tpu.dot_dimension_numbers<[1], [0], [0], [1], [0, 0, 1, 1], [], []>, precision = #tpu.contract_precision<fp32>} : vector<16x16xf32>, vector<16x16xf32>, vector<16x16xf32> -> vector<16x16xf32>
    %cst_63 = arith.constant dense<0.000000e+00> : vector<16x16xf32>
    %113 = tpu.matmul %112, %1, %cst_63 {dimension_numbers = #tpu.dot_dimension_numbers<[1], [0], [0], [1], [0, 0, 1, 1], [], []>, precision = #tpu.contract_precision<fp32>} : vector<16x16xf32>, vector<16x16xf32>, vector<16x16xf32> -> vector<16x16xf32>
    %114 = arith.mulf %107, %107 : vector<16x16xf32>
    %cst_64 = arith.constant dense<0.000000e+00> : vector<16x16xf32>
    %115 = tpu.matmul %0, %114, %cst_64 {dimension_numbers = #tpu.dot_dimension_numbers<[1], [0], [0], [1], [0, 0, 1, 1], [], []>, precision = #tpu.contract_precision<fp32>} : vector<16x16xf32>, vector<16x16xf32>, vector<16x16xf32> -> vector<16x16xf32>
    %cst_65 = arith.constant dense<0.000000e+00> : vector<16x16xf32>
    %116 = tpu.matmul %115, %1, %cst_65 {dimension_numbers = #tpu.dot_dimension_numbers<[1], [0], [0], [1], [0, 0, 1, 1], [], []>, precision = #tpu.contract_precision<fp32>} : vector<16x16xf32>, vector<16x16xf32>, vector<16x16xf32> -> vector<16x16xf32>
    %117 = arith.mulf %109, %109 : vector<16x16xf32>
    %cst_66 = arith.constant dense<0.000000e+00> : vector<16x16xf32>
    %118 = tpu.matmul %0, %117, %cst_66 {dimension_numbers = #tpu.dot_dimension_numbers<[1], [0], [0], [1], [0, 0, 1, 1], [], []>, precision = #tpu.contract_precision<fp32>} : vector<16x16xf32>, vector<16x16xf32>, vector<16x16xf32> -> vector<16x16xf32>
    %cst_67 = arith.constant dense<0.000000e+00> : vector<16x16xf32>
    %119 = tpu.matmul %118, %1, %cst_67 {dimension_numbers = #tpu.dot_dimension_numbers<[1], [0], [0], [1], [0, 0, 1, 1], [], []>, precision = #tpu.contract_precision<fp32>} : vector<16x16xf32>, vector<16x16xf32>, vector<16x16xf32> -> vector<16x16xf32>
    %120 = arith.mulf %107, %109 : vector<16x16xf32>
    %cst_68 = arith.constant dense<0.000000e+00> : vector<16x16xf32>
    %121 = tpu.matmul %0, %120, %cst_68 {dimension_numbers = #tpu.dot_dimension_numbers<[1], [0], [0], [1], [0, 0, 1, 1], [], []>, precision = #tpu.contract_precision<fp32>} : vector<16x16xf32>, vector<16x16xf32>, vector<16x16xf32> -> vector<16x16xf32>
    %cst_69 = arith.constant dense<0.000000e+00> : vector<16x16xf32>
    %122 = tpu.matmul %121, %1, %cst_69 {dimension_numbers = #tpu.dot_dimension_numbers<[1], [0], [0], [1], [0, 0, 1, 1], [], []>, precision = #tpu.contract_precision<fp32>} : vector<16x16xf32>, vector<16x16xf32>, vector<16x16xf32> -> vector<16x16xf32>
    %123 = arith.mulf %111, %111 : vector<16x16xf32>
    %124 = arith.mulf %113, %113 : vector<16x16xf32>
    %125 = arith.mulf %111, %113 : vector<16x16xf32>
    %126 = arith.subf %116, %123 : vector<16x16xf32>
    %127 = arith.subf %119, %124 : vector<16x16xf32>
    %128 = arith.subf %122, %125 : vector<16x16xf32>
    %cst_70 = arith.constant 2.000000e+00 : f32
    %129 = vector.broadcast %cst_70 : f32 to vector<16x16xf32>
    %130 = arith.mulf %129, %125 : vector<16x16xf32>
    %cst_71 = arith.constant 9.99999974E-5 : f32
    %131 = vector.broadcast %cst_71 : f32 to vector<16x16xf32>
    %132 = arith.addf %130, %131 : vector<16x16xf32>
    %cst_72 = arith.constant 2.000000e+00 : f32
    %133 = vector.broadcast %cst_72 : f32 to vector<16x16xf32>
    %134 = arith.mulf %133, %128 : vector<16x16xf32>
    %cst_73 = arith.constant 8.99999984E-4 : f32
    %135 = vector.broadcast %cst_73 : f32 to vector<16x16xf32>
    %136 = arith.addf %134, %135 : vector<16x16xf32>
    %137 = arith.mulf %132, %136 : vector<16x16xf32>
    %138 = arith.addf %123, %124 : vector<16x16xf32>
    %cst_74 = arith.constant 9.99999974E-5 : f32
    %139 = vector.broadcast %cst_74 : f32 to vector<16x16xf32>
    %140 = arith.addf %138, %139 : vector<16x16xf32>
    %141 = arith.addf %126, %127 : vector<16x16xf32>
    %cst_75 = arith.constant 8.99999984E-4 : f32
    %142 = vector.broadcast %cst_75 : f32 to vector<16x16xf32>
    %143 = arith.addf %141, %142 : vector<16x16xf32>
    %144 = arith.mulf %140, %143 : vector<16x16xf32>
    %145 = arith.divf %137, %144 : vector<16x16xf32>
    %c2_76 = arith.constant 2 : index
    %c0_77 = arith.constant 0 : index
    %c0_78 = arith.constant 0 : index
    %146 = vector.load %arg5[%c2_76, %c0_77, %c0_78] : memref<4x16x16xf32, #tpu.memory_space<vmem>>, vector<1x16x16xf32>
    %147 = vector.shape_cast %146 : vector<1x16x16xf32> to vector<16x16xf32>
    %148 = vector.shape_cast %145 : vector<16x16xf32> to vector<1x16x16xf32>
    tpu.vector_store %arg5[%c2_76, %c0_77, %c0_78], %148 {strides = array<i32>} : memref<4x16x16xf32, #tpu.memory_space<vmem>>, vector<1x16x16xf32>,
    %149 = vector.shape_cast %145 : vector<16x16xf32> to vector<1x16x16xf32>
    %cst_79 = arith.constant dense<0x7F800000> : vector<1xf32>
    %150 = vector.multi_reduction <minimumf>, %149, %cst_79 [1, 2] : vector<1x16x16xf32> to vector<1xf32>
    %151 = vector.shape_cast %150 : vector<1xf32> to vector<1x1x1xf32>
    %152 = vector.extract %151[0, 0, 0] : f32 from vector<1x1x1xf32>
    %153 = vector.shape_cast %145 : vector<16x16xf32> to vector<1x16x16xf32>
    %cst_80 = arith.constant dense<0xFF800000> : vector<1xf32>
    %154 = vector.multi_reduction <maximumf>, %153, %cst_80 [1, 2] : vector<1x16x16xf32> to vector<1xf32>
    %155 = vector.shape_cast %154 : vector<1xf32> to vector<1x1x1xf32>
    %156 = vector.extract %155[0, 0, 0] : f32 from vector<1x1x1xf32>
    %157 = arith.minimumf %104, %152 : f32
    %158 = arith.maximumf %105, %156 : f32
    %c3 = arith.constant 3 : index
    %c0_81 = arith.constant 0 : index
    %c0_82 = arith.constant 0 : index
    %159 = vector.load %arg3[%c3, %c0_81, %c0_82] : memref<4x16x16xf32, #tpu.memory_space<vmem>>, vector<1x16x16xf32>
    %160 = vector.shape_cast %159 : vector<1x16x16xf32> to vector<16x16xf32>
    %c3_83 = arith.constant 3 : index
    %c0_84 = arith.constant 0 : index
    %c0_85 = arith.constant 0 : index
    %161 = vector.load %arg4[%c3_83, %c0_84, %c0_85] : memref<4x16x16xf32, #tpu.memory_space<vmem>>, vector<1x16x16xf32>
    %162 = vector.shape_cast %161 : vector<1x16x16xf32> to vector<16x16xf32>
    %cst_86 = arith.constant dense<0.000000e+00> : vector<16x16xf32>
    %163 = tpu.matmul %0, %160, %cst_86 {dimension_numbers = #tpu.dot_dimension_numbers<[1], [0], [0], [1], [0, 0, 1, 1], [], []>, precision = #tpu.contract_precision<fp32>} : vector<16x16xf32>, vector<16x16xf32>, vector<16x16xf32> -> vector<16x16xf32>
    %cst_87 = arith.constant dense<0.000000e+00> : vector<16x16xf32>
    %164 = tpu.matmul %163, %1, %cst_87 {dimension_numbers = #tpu.dot_dimension_numbers<[1], [0], [0], [1], [0, 0, 1, 1], [], []>, precision = #tpu.contract_precision<fp32>} : vector<16x16xf32>, vector<16x16xf32>, vector<16x16xf32> -> vector<16x16xf32>
    %cst_88 = arith.constant dense<0.000000e+00> : vector<16x16xf32>
    %165 = tpu.matmul %0, %162, %cst_88 {dimension_numbers = #tpu.dot_dimension_numbers<[1], [0], [0], [1], [0, 0, 1, 1], [], []>, precision = #tpu.contract_precision<fp32>} : vector<16x16xf32>, vector<16x16xf32>, vector<16x16xf32> -> vector<16x16xf32>
    %cst_89 = arith.constant dense<0.000000e+00> : vector<16x16xf32>
    %166 = tpu.matmul %165, %1, %cst_89 {dimension_numbers = #tpu.dot_dimension_numbers<[1], [0], [0], [1], [0, 0, 1, 1], [], []>, precision = #tpu.contract_precision<fp32>} : vector<16x16xf32>, vector<16x16xf32>, vector<16x16xf32> -> vector<16x16xf32>
    %167 = arith.mulf %160, %160 : vector<16x16xf32>
    %cst_90 = arith.constant dense<0.000000e+00> : vector<16x16xf32>
    %168 = tpu.matmul %0, %167, %cst_90 {dimension_numbers = #tpu.dot_dimension_numbers<[1], [0], [0], [1], [0, 0, 1, 1], [], []>, precision = #tpu.contract_precision<fp32>} : vector<16x16xf32>, vector<16x16xf32>, vector<16x16xf32> -> vector<16x16xf32>
    %cst_91 = arith.constant dense<0.000000e+00> : vector<16x16xf32>
    %169 = tpu.matmul %168, %1, %cst_91 {dimension_numbers = #tpu.dot_dimension_numbers<[1], [0], [0], [1], [0, 0, 1, 1], [], []>, precision = #tpu.contract_precision<fp32>} : vector<16x16xf32>, vector<16x16xf32>, vector<16x16xf32> -> vector<16x16xf32>
    %170 = arith.mulf %162, %162 : vector<16x16xf32>
    %cst_92 = arith.constant dense<0.000000e+00> : vector<16x16xf32>
    %171 = tpu.matmul %0, %170, %cst_92 {dimension_numbers = #tpu.dot_dimension_numbers<[1], [0], [0], [1], [0, 0, 1, 1], [], []>, precision = #tpu.contract_precision<fp32>} : vector<16x16xf32>, vector<16x16xf32>, vector<16x16xf32> -> vector<16x16xf32>
    %cst_93 = arith.constant dense<0.000000e+00> : vector<16x16xf32>
    %172 = tpu.matmul %171, %1, %cst_93 {dimension_numbers = #tpu.dot_dimension_numbers<[1], [0], [0], [1], [0, 0, 1, 1], [], []>, precision = #tpu.contract_precision<fp32>} : vector<16x16xf32>, vector<16x16xf32>, vector<16x16xf32> -> vector<16x16xf32>
    %173 = arith.mulf %160, %162 : vector<16x16xf32>
    %cst_94 = arith.constant dense<0.000000e+00> : vector<16x16xf32>
    %174 = tpu.matmul %0, %173, %cst_94 {dimension_numbers = #tpu.dot_dimension_numbers<[1], [0], [0], [1], [0, 0, 1, 1], [], []>, precision = #tpu.contract_precision<fp32>} : vector<16x16xf32>, vector<16x16xf32>, vector<16x16xf32> -> vector<16x16xf32>
    %cst_95 = arith.constant dense<0.000000e+00> : vector<16x16xf32>
    %175 = tpu.matmul %174, %1, %cst_95 {dimension_numbers = #tpu.dot_dimension_numbers<[1], [0], [0], [1], [0, 0, 1, 1], [], []>, precision = #tpu.contract_precision<fp32>} : vector<16x16xf32>, vector<16x16xf32>, vector<16x16xf32> -> vector<16x16xf32>
    %176 = arith.mulf %164, %164 : vector<16x16xf32>
    %177 = arith.mulf %166, %166 : vector<16x16xf32>
    %178 = arith.mulf %164, %166 : vector<16x16xf32>
    %179 = arith.subf %169, %176 : vector<16x16xf32>
    %180 = arith.subf %172, %177 : vector<16x16xf32>
    %181 = arith.subf %175, %178 : vector<16x16xf32>
    %cst_96 = arith.constant 2.000000e+00 : f32
    %182 = vector.broadcast %cst_96 : f32 to vector<16x16xf32>
    %183 = arith.mulf %182, %178 : vector<16x16xf32>
    %cst_97 = arith.constant 9.99999974E-5 : f32
    %184 = vector.broadcast %cst_97 : f32 to vector<16x16xf32>
    %185 = arith.addf %183, %184 : vector<16x16xf32>
    %cst_98 = arith.constant 2.000000e+00 : f32
    %186 = vector.broadcast %cst_98 : f32 to vector<16x16xf32>
    %187 = arith.mulf %186, %181 : vector<16x16xf32>
    %cst_99 = arith.constant 8.99999984E-4 : f32
    %188 = vector.broadcast %cst_99 : f32 to vector<16x16xf32>
    %189 = arith.addf %187, %188 : vector<16x16xf32>
    %190 = arith.mulf %185, %189 : vector<16x16xf32>
    %191 = arith.addf %176, %177 : vector<16x16xf32>
    %cst_100 = arith.constant 9.99999974E-5 : f32
    %192 = vector.broadcast %cst_100 : f32 to vector<16x16xf32>
    %193 = arith.addf %191, %192 : vector<16x16xf32>
    %194 = arith.addf %179, %180 : vector<16x16xf32>
    %cst_101 = arith.constant 8.99999984E-4 : f32
    %195 = vector.broadcast %cst_101 : f32 to vector<16x16xf32>
    %196 = arith.addf %194, %195 : vector<16x16xf32>
    %197 = arith.mulf %193, %196 : vector<16x16xf32>
    %198 = arith.divf %190, %197 : vector<16x16xf32>
    %c3_102 = arith.constant 3 : index
    %c0_103 = arith.constant 0 : index
    %c0_104 = arith.constant 0 : index
    %199 = vector.load %arg5[%c3_102, %c0_103, %c0_104] : memref<4x16x16xf32, #tpu.memory_space<vmem>>, vector<1x16x16xf32>
    %200 = vector.shape_cast %199 : vector<1x16x16xf32> to vector<16x16xf32>
    %201 = vector.shape_cast %198 : vector<16x16xf32> to vector<1x16x16xf32>
    tpu.vector_store %arg5[%c3_102, %c0_103, %c0_104], %201 {strides = array<i32>} : memref<4x16x16xf32, #tpu.memory_space<vmem>>, vector<1x16x16xf32>,
    %202 = vector.shape_cast %198 : vector<16x16xf32> to vector<1x16x16xf32>
    %cst_105 = arith.constant dense<0x7F800000> : vector<1xf32>
    %203 = vector.multi_reduction <minimumf>, %202, %cst_105 [1, 2] : vector<1x16x16xf32> to vector<1xf32>
    %204 = vector.shape_cast %203 : vector<1xf32> to vector<1x1x1xf32>
    %205 = vector.extract %204[0, 0, 0] : f32 from vector<1x1x1xf32>
    %206 = vector.shape_cast %198 : vector<16x16xf32> to vector<1x16x16xf32>
    %cst_106 = arith.constant dense<0xFF800000> : vector<1xf32>
    %207 = vector.multi_reduction <maximumf>, %206, %cst_106 [1, 2] : vector<1x16x16xf32> to vector<1xf32>
    %208 = vector.shape_cast %207 : vector<1xf32> to vector<1x1x1xf32>
    %209 = vector.extract %208[0, 0, 0] : f32 from vector<1x1x1xf32>
    %210 = arith.minimumf %157, %205 : f32
    %211 = arith.maximumf %158, %209 : f32
    %212 = tpu.iota {dimensions = array<i32: 2>} : vector<1x1x2xi32>
    %c0_i32 = arith.constant 0 : i32
    %213 = vector.broadcast %c0_i32 : i32 to vector<1x1x2xi32>
    %214 = arith.cmpi eq, %212, %213 : vector<1x1x2xi32>
    %215 = vector.broadcast %210 : f32 to vector<1x1x2xf32>
    %216 = vector.broadcast %211 : f32 to vector<1x1x2xf32>
    %217 = arith.select %214, %215, %216 : vector<1x1x2xi1>, vector<1x1x2xf32>
    %c0_107 = arith.constant 0 : index
    %c0_108 = arith.constant 0 : index
    %c0_109 = arith.constant 0 : index
    %218 = vector.load %arg6[%c0_107, %c0_108, %c0_109] : memref<1x1x2xf32, #tpu.memory_space<vmem>>, vector<1x1x2xf32>
    tpu.vector_store %arg6[%c0_107, %c0_108, %c0_109], %217 {strides = array<i32>} : memref<1x1x2xf32, #tpu.memory_space<vmem>>, vector<1x1x2xf32>,
    return
  }
  func.func @transform_0(%arg0: i32) -> (i32, i32) {
    %c0_i32 = arith.constant 0 : i32
    %c0_i32_0 = arith.constant 0 : i32
    %c0_i32_1 = arith.constant 0 : i32
    return %c0_i32, %c0_i32_0 : i32, i32
  }
  func.func @transform_1(%arg0: i32) -> (i32, i32) {
    %c0_i32 = arith.constant 0 : i32
    %c0_i32_0 = arith.constant 0 : i32
    %c0_i32_1 = arith.constant 0 : i32
    return %c0_i32, %c0_i32_0 : i32, i32
  }
  func.func @transform_2(%arg0: i32) -> (i32, i32, i32) {
    %c0_i32 = arith.constant 0 : i32
    %c0_i32_0 = arith.constant 0 : i32
    %c0_i32_1 = arith.constant 0 : i32
    return %arg0, %c0_i32, %c0_i32_0 : i32, i32, i32
  }
  func.func @transform_3(%arg0: i32) -> (i32, i32, i32) {
    %c0_i32 = arith.constant 0 : i32
    %c0_i32_0 = arith.constant 0 : i32
    %c0_i32_1 = arith.constant 0 : i32
    return %arg0, %c0_i32, %c0_i32_0 : i32, i32, i32
  }
  func.func @transform_4(%arg0: i32) -> (i32, i32, i32) {
    %c0_i32 = arith.constant 0 : i32
    %c0_i32_0 = arith.constant 0 : i32
    %c0_i32_1 = arith.constant 0 : i32
    return %arg0, %c0_i32, %c0_i32_0 : i32, i32, i32
  }
  func.func @transform_5(%arg0: i32) -> (i32, i32, i32) {
    %c0_i32 = arith.constant 0 : i32
    %c0_i32_0 = arith.constant 0 : i32
    %c0_i32_1 = arith.constant 0 : i32
    return %arg0, %c0_i32, %c0_i32_0 : i32, i32, i32
  }
}

</mosaic_0001>

<bundles_post_ra>
// kernel: logssim.3
= control target key start
LH: loop header
LB: loop body
LE: loop exit
PB: predicated region body
PF: predicated region fallthrough
CT: control target
= control target key end

     0   :  { %7 = vsyncpa [#allocation3], 0  ;;  %s400_s9 = smov 0   ;;  %s448_s0 = inlined_call_operand.vmem [shape: f32[2], index: 0, kind: input, shape index: {}]   ;;  %s449_s1 = inlined_call_operand.vmem [shape: f32[128,16], index: 1, kind: input, shape index: {}]   ;;  %s450_s2 = inlined_call_operand.vmem [shape: f32[2,1,16], index: 2, kind: output, shape index: {}]  }
   0x1 LB: > { %s406_s10 = sadd.s32 4294967295, %s381_s9   ;;  %p306_p0 = scmp.ge.s32.totalorder %s381_s9, 1  ;;  %s381_s9 = sphi %s400_s9, %s13_s9  }
   0x2   : > { %p91_p1 = scmp.lt.s32.totalorder %s381_s9, 3  ;;  %s104_s13 = sshll.u32 %s448_s0, 4  ;;  %s105_s13 = int_to_ptr.vmem [resolvable:$true] %s104_s13 }
   0x3   : > { %p326_p3 = scmp.eq.s32.totalorder %s406_s10, 0  ;;  %s356_s15 = scalar_lea.vmem %s105_s13, 16 }
   0x4   : > { %p413_p2 = pnand %p306_p0, %p91_p1  ;;  %p357_p6 = scmp.ne.s32.totalorder %s105_s13, %s356_s15 }
   0x5   : > { %p364_p10 = scmp.lt.s32.totalorder %s105_s13, %s105_s13  ;;  %p365_p11 = scmp.lt.s32.totalorder %s356_s15, %s356_s15 }
   0x6   : > { %p322_p4 = pneg %p413_p2 }
   0x7   : > { %p366_p12 = por %p365_p11, %p364_p10 }
   0x8   : > { %p323_p5 = pnand %p326_p3, %p322_p4 }
   0xa   : > { %p358_p7 = pneg %p323_p5 }
   0xc   : > { %p359_p8 = pnand %p358_p7, %p357_p6 }
   0xe   : > { %p360_p9 = pneg %p359_p8 }
  0x10   : > { %p367_p13 = pnand %p366_p12, %p360_p9 }
  0x12   : > { %370 = shalt.err (!%p367_p13)
}
  0x13   : > { %s383_s16 = smov [#allocation2]   ;;  %126 = sbr.rel (%p413_p2) target bundleno = 154 (0x9a), region = 28 }
  0x14   : > { %325 = dma.vmem_to_smem (!%p323_p5), %s105_s13, 16, %s383_s16, [#allocation3]  }
  0x18   : > { %376 = dma.done.wait (%p326_p3), [#allocation3], 16  }
  0x19   : > { %378 = vsyncadd (%p326_p3), [#allocation3], 4294967280 }
  0x1a   : > { %132 = sfence }
  0x1b   : > { %s156_s17 = sld [smem:[#allocation2]]  ;;  %s384_s20 = smov 1e-08   ;;  %vm221_vm0 = vcmask 130048   ;;  %vm243_vm1 = vcmask 122880  }
  0x1c   : > { %s313_s18 = sld [smem:[#allocation2 + $0x1]]  ;;  %s311_s22 = sshll.u32 %s406_s10, 3 }
  0x1d   : > { %p148_p0 = scmp.lt.s32.totalorder %s311_s22, 15  ;;  %p153_p1 = scmp.lt.s32.totalorder %s406_s10, 1 }
  0x1f   : > { %s453_s22 = smov (!%p148_p0, %s311_s22), 15  ;;  %s455_s10 = smov (!%p153_p1, %s406_s10), 1 }
  0x20   : > { %s312_s23 = sshll.u32 %s453_s22, 3  ;;  %s155_s30 = scalar_lea.vmem %s450_s2, %s455_s10 }
  0x21   : > { %s151_s26 = scalar_lea.vmem %s449_s1, %s312_s23  ;;  %v171_v3 = vstv %s156_s17 }
  0x22   : > { %s158_s19 = ssub.f32 %s313_s18, %s156_s17  ;;  %v163_v2 = vld [vmem:[%s151_s26] sm:$0xff]  ;;  %v164_v4 = vld [vmem:[%s151_s26 + $0x8] sm:$0xff]  ;;  %v165_v5 = vld [vmem:[%s151_s26 + $0x10] sm:$0xff] }
  0x23   : > { %v166_v6 = vld [vmem:[%s151_s26 + $0x18] sm:$0xff]  ;;  %v167_v7 = vld [vmem:[%s151_s26 + $0x20] sm:$0xff]  ;;  %v168_v8 = vld [vmem:[%s151_s26 + $0x28] sm:$0xff]  ;;  %v172_v11 = vsub.f32 %v163_v2, %v171_v3  ;;  %v173_v12 = vsub.f32 %v164_v4, %v171_v3  ;;  %v174_v13 = vsub.f32 %v165_v5, %v171_v3 }
  0x24   : > { %s159_s21 = smax.f32 %s384_s20, %s158_s19  ;;  %v169_v9 = vld [vmem:[%s151_s26 + $0x30] sm:$0xff]  ;;  %v170_v10 = vld [vmem:[%s151_s26 + $0x38] sm:$0xff]  ;;  %v175_v14 = vsub.f32 %v166_v6, %v171_v3  ;;  %v176_v15 = vsub.f32 %v167_v7, %v171_v3  ;;  %v177_v16 = vsub.f32 %v168_v8, %v171_v3 }
  0x25   : > { %v160_v0 = vstv %s159_s21  ;;  %v178_v17 = vsub.f32 %v169_v9, %v171_v3  ;;  %v179_v18 = vsub.f32 %v170_v10, %v171_v3 }
  0x26   : > { %338 = vrcp.f32 %v160_v0 }
  0x33   : > { %v339_v1 = vpop.eup %338 }
  0x34   : > { %316 = vpush %v339_v1 }
  0x65   : > { %s317_s27 = spop %316 }
  0x66   : > { %v180_v19 = vstv %s317_s27 }
  0x67   : > { %v181_v20 = vmul.f32 %v180_v19, %v172_v11  ;;  %v182_v21 = vmul.f32 %v180_v19, %v173_v12  ;;  %v183_v22 = vmul.f32 %v180_v19, %v174_v13  ;;  %v184_v23 = vmul.f32 %v180_v19, %v175_v14 }
  0x68   : > { %v185_v24 = vmul.f32 %v180_v19, %v176_v15  ;;  %v186_v25 = vmul.f32 %v180_v19, %v177_v16  ;;  %v187_v26 = vmul.f32 %v180_v19, %v178_v17  ;;  %v188_v30 = vmul.f32 %v180_v19, %v179_v18 }
  0x69   : > { %v189_v27 = vadd.f32 1e-08, %v181_v20  ;;  %v190_v28 = vadd.f32 1e-08, %v182_v21  ;;  %v191_v29 = vadd.f32 1e-08, %v183_v22 }
  0x6a   : > { %v192_v31 = vadd.f32 1e-08, %v184_v23  ;;  %v193_v32 = vadd.f32 1e-08, %v185_v24  ;;  %v194_v33 = vadd.f32 1e-08, %v186_v25 }
  0x6b   : > { %340 = vlog2.f32 %v189_v27  ;;  %v195_v34 = vadd.f32 1e-08, %v187_v26  ;;  %v196_v35 = vadd.f32 1e-08, %v188_v30 }
  0x6c   : > { %342 = vlog2.f32 %v190_v28 }
  0x6d   : > { %344 = vlog2.f32 %v191_v29 }
  0x6e   : > { %346 = vlog2.f32 %v192_v31 }
  0x6f   : > { %348 = vlog2.f32 %v193_v32 }
  0x70   : > { %350 = vlog2.f32 %v194_v33 }
  0x71   : > { %352 = vlog2.f32 %v195_v34 }
  0x72   : > { %354 = vlog2.f32 %v196_v35 }
  0x78   : > { %v341_v36 = vpop.eup %340 }
  0x79   : > { %v343_v37 = vpop.eup %342  ;;  %v198_v38 = vmul.f32 0.6931472, %v341_v36 }
  0x7a   : > { %v345_v39 = vpop.eup %344  ;;  %v200_v40 = vmul.f32 0.6931472, %v343_v37 }
  0x7b   : > { %v347_v41 = vpop.eup %346  ;;  %v202_v42 = vmul.f32 0.6931472, %v345_v39  ;;  %v213_v43 = vsub.f32 0.0, %v198_v38 }
  0x7c   : > { %v349_v44 = vpop.eup %348  ;;  %v204_v45 = vmul.f32 0.6931472, %v347_v41  ;;  %v214_v46 = vsub.f32 0.0, %v200_v40 }
  0x7d   : > { %v351_v47 = vpop.eup %350  ;;  %v206_v48 = vmul.f32 0.6931472, %v349_v44  ;;  %v215_v49 = vsub.f32 0.0, %v202_v42  ;;  %v222_v50 = vsel %vm221_vm0, %v213_v43, 0.0 }
  0x7e   : > { %v353_v51 = vpop.eup %352  ;;  %v208_v52 = vmul.f32 0.6931472, %v351_v47  ;;  %v216_v53 = vsub.f32 0.0, %v204_v45  ;;  %v223_v54 = vsel %vm221_vm0, %v214_v46, 0.0 }
  0x7f   : > { %v355_v55 = vpop.eup %354  ;;  %v224_v56 = vadd.f32 %v223_v54, %v222_v50  ;;  %v210_v57 = vmul.f32 0.6931472, %v353_v51  ;;  %v217_v58 = vsub.f32 0.0, %v206_v48  ;;  %v225_v59 = vsel %vm221_vm0, %v215_v49, 0.0 }
  0x80   : > { %v212_v61 = vmul.f32 0.6931472, %v355_v55  ;;  %v218_v62 = vsub.f32 0.0, %v208_v52  ;;  %v227_v63 = vsel %vm221_vm0, %v216_v53, 0.0 }
  0x81   : > { %v226_v60 = vadd.f32 %v225_v59, %v224_v56  ;;  %v219_v1 = vsub.f32 0.0, %v210_v57  ;;  %v229_v2 = vsel %vm221_vm0, %v217_v58, 0.0 }
  0x82   : > { %v220_v4 = vsub.f32 0.0, %v212_v61  ;;  %v231_v5 = vsel %vm221_vm0, %v218_v62, 0.0 }
  0x83   : > { %v228_v0 = vadd.f32 %v227_v63, %v226_v60  ;;  %v233_v7 = vsel %vm221_vm0, %v219_v1, 0.0 }
  0x84   : > { %v235_v9 = vsel %vm221_vm0, %v220_v4, 0.0 }
  0x85   : > { %v230_v3 = vadd.f32 %v229_v2, %v228_v0 }
  0x87   : > { %v232_v6 = vadd.f32 %v231_v5, %v230_v3 }
  0x89   : > { %v234_v8 = vadd.f32 %v233_v7, %v232_v6 }
  0x8b   : > { %v236_v10 = vadd.f32 %v235_v9, %v234_v8 }
  0x8d   : > { %v237_v11 = vrot.slane %v236_v10, 4 }
  0x8f   : > { %v238_v12 = vadd.f32 %v237_v11, %v236_v10 }
  0x91   : > { %v239_v13 = vrot.slane %v238_v12, 2 }
  0x93   : > { %v240_v14 = vadd.f32 %v239_v13, %v238_v12 }
  0x95   : > { %v241_v15 = vrot.slane %v240_v14, 1 }
  0x97   : > { %v242_v16 = vadd.f32 %v241_v15, %v240_v14 }
  0x99   : > { %244 = vst.msk [vmem:[%s155_s30] sm:$0x1] %vm243_vm1, %v242_v16 }
  0x9a PF: > { %s13_s9 = sadd.s32 1, %s381_s9  }
  0x9b   : > { %p10_p2 = scmp.ge.s32.totalorder %s13_s9, 4  }
  0x9d   :  { %12 = sbr.rel (!%p10_p2) target bundleno = 1 (0x1), region = 63 }
  0xa2   :  { %262 = vsyncpa [#allocation3], 1 }
  0xa3   :  { %264 = vsyncpa [#allocation3 + $0x1], 1 }

// kernel: logssim.2
= control target key start
LH: loop header
LB: loop body
LE: loop exit
PB: predicated region body
PF: predicated region fallthrough
CT: control target
= control target key end

     0   :  { %11 = vsyncpa [#allocation3], 0  ;;  %s25913_s0 = inlined_call_operand.hbm [shape: f32[16,16], index: 0, kind: input, shape index: {}, may-alias: {0,1}]   ;;  %s25914_s1 = inlined_call_operand.hbm [shape: f32[16,16], index: 1, kind: input, shape index: {}, may-alias: {0,1}]   ;;  %s25915_s2 = inlined_call_operand.hbm [shape: f32[8,16,16], index: 2, kind: input, shape index: {}]   ;;  %s25916_s3 = inlined_call_operand.hbm [shape: f32[8,16,16], index: 3, kind: input, shape index: {}]   ;;  %s25917_s4 = inlined_call_operand.vmem [shape: f32[8,16,16], index: 4, kind: output, shape index: {0}]   ;;  %s25918_s5 = inlined_call_operand.vmem [shape: f32[2,1,2], index: 5, kind: output, shape index: {1}]  }
   0x1   :  { %12 = vsyncpa [#allocation5], 0  ;;  %s23960_s18 = smov 0   ;;  %s23962_s19 = smov 0  }
   0x2   :  { %s23964_s20 = smov 0   ;;  %s23966_s21 = smov 0  }
   0x3 LB: > { %s23979_s22 = sadd.s32 4294967295, %s23922_s21   ;;  %s23982_s23 = sadd.s32 1, %s23922_s21   ;;  %s23922_s21 = sphi %s23966_s21, %s25946_s21   ;;  %s23918_s20 = sphi %s23964_s20, %s25945_s20   ;;  %s23914_s19 = sphi %s23962_s19, %s25944_s19   ;;  %s23910_s18 = sphi %s23960_s18, %s25943_s18  }
   0x4   : > { %s64_s24 = ssub.s32 %s23922_s21, %s23982_s23  ;;  %s67_s25 = sadd.s32 1, %s23918_s20 }
   0x5   : > { %p65_p0 = scmp.eq.s32.totalorder %s64_s24, 0  ;;  %p74_p1 = scmp.ne.s32.totalorder %s23918_s20, %s23914_s19 }
   0x6   : > { %p75_p2 = scmp.eq.s32.totalorder %s23922_s21, 0  ;;  %p80_p3 = scmp.ne.s32.totalorder %s23914_s19, %s23910_s18 }
   0x7   : > { %s23992_s26 = scalar_select %p65_p0, %s23918_s20, %s67_s25  }
   0x8   : > { %p23994_p4 = por %p75_p2, %p74_p1  ;;  %p25919_p5 = scmp.eq.s32.totalorder %s23979_s22, 0 }
   0x9   : > { %p20982_p6 = scmp.ge.s32.totalorder %s23922_s21, 1  ;;  %p169_p7 = scmp.lt.s32.totalorder %s23922_s21, 3 }
   0xa   : > { %p24003_p8 = por %p25919_p5, %p80_p3  ;;  %s23924_s30 = smov [#allocation2]  }
   0xb   : > { %p24007_p9 = pnand %p20982_p6, %p169_p7  ;;  %s181_s6 = sshll.u32 %s23924_s30, 4  ;;  %s182_s6 = int_to_ptr.vmem [resolvable:$true] %s181_s6 }
   0xc   : > { %s25927_s28 = scalar_select %p24003_p8, 1, 0 }
   0xd   : > { %s25928_s29 = scalar_select %p24007_p9, 1, 0 }
   0xe   : > { %p23695_p10 = pneg %p24007_p9  ;;  %p23711_p12 = scmp.lt.s32.totalorder %s23922_s21, 2 }
   0xf   : > { %s208_s8 = sand.u32 1, %s23922_s21   ;;  %s210_s9 = sand.u32 1, %s23918_s20  }
  0x10   : > { %p24015_p11 = pnand %p23695_p10, %p25919_p5  ;;  %p24024_p13 = pnand %p23711_p12, %p23994_p4 }
  0x11   : > { %s23783_s11 = scalar_lea.vmem %s182_s6, 256  ;;  %p23791_p6 = scmp.lt.s32.totalorder %s182_s6, %s182_s6 }
  0x12   : > { %p25921_p0 = pneg %p24015_p11  ;;  %p23784_p1 = scmp.ne.s32.totalorder %s182_s6, %s23783_s11 }
  0x13   : > { %p23792_p7 = scmp.lt.s32.totalorder %s23783_s11, %s23783_s11 }
  0x14   : > { %p23786_p2 = pnand %p23784_p1, %p25921_p0 }
  0x15   : > { %p23793_p10 = por %p23792_p7, %p23791_p6 }
  0x16   : > { %p23787_p3 = pneg %p23786_p2 }
  0x18   : > { %p23794_p5 = pnand %p23793_p10, %p23787_p3 }
  0x1a   : > { %23797 = shalt.err (!%p23794_p5)
}
  0x1b   : > { %s23925_s12 = smov 128   ;;  %s23926_s13 = smov 8  }
  0x1c   : > { %23698 = dma.hbm_to_vmem [thread:$0]  (!%p24015_p11), %s25913_s0, 256, %s182_s6, [#allocation3], %s23925_s12, %s23925_s12, %s23926_s13  }
  0x1d   : > { %s24041_s16 = sshll.u32 %s210_s9, 6  ;;  %s25920_s17 = sshll.u32 %s23922_s21, 10 }
  0x1e   : > { %s24049_s25 = scalar_lea.hbm %s25915_s2, %s25920_s17  ;;  %s212_s27 = scalar_lea.vmem [#allocation6], %s24041_s16 }
  0x1f   : > { %s220_s30 = sshll.u32 %s212_s27, 4  ;;  %s23927_s11 = smov [#allocation4]   ;;  %s24052_s30 = int_to_ptr.vmem [resolvable:$true] %s220_s30 }
  0x20   : > { %s24054_s14 = sshll.u32 %s23927_s11, 4  ;;  %s24056_s6 = scalar_lea.sflag [#allocation3], %s208_s8  ;;  %s195_s14 = int_to_ptr.vmem [resolvable:$true] %s24054_s14 }
  0x21   : > { %s23798_s9 = scalar_lea.hbm %s24049_s25, 1024  ;;  %p23800_p5 = pneg %p24024_p13 }
  0x22   : > { %p23799_p4 = scmp.ne.s32.totalorder %s24049_s25, %s23798_s9  ;;  %s23803_s24 = scalar_lea.hbm %s25915_s2, 2048 }
  0x23   : > { %p23804_p2 = scmp.lt.s32.totalorder %s24049_s25, %s25915_s2  ;;  %p23805_p3 = scmp.lt.s32.totalorder %s23803_s24, %s23798_s9 }
  0x24   : > { %p23801_p12 = pnand %p23800_p5, %p23799_p4 }
  0x25   : > { %p23806_p6 = por %p23805_p3, %p23804_p2 }
  0x26   : > { %p23802_p1 = pneg %p23801_p12 }
  0x28   : > { %p23807_p7 = pnand %p23806_p6, %p23802_p1 }
  0x2a   : > { %23810 = shalt.err (!%p23807_p7)
}
  0x2b   : > { %s23811_s8 = scalar_lea.vmem %s24052_s30, 1024  ;;  %s23928_s11 = smov [#allocation6]  }
  0x2c   : > { %p23812_p10 = scmp.ne.s32.totalorder %s24052_s30, %s23811_s8  ;;  %s23816_s15 = sshll.u32 %s23928_s11, 4  ;;  %s23817_s15 = int_to_ptr.vmem [resolvable:$false] %s23816_s15 }
  0x2d   : > { %s23818_s18 = scalar_lea.vmem %s23817_s15, 2048  ;;  %p23819_p0 = scmp.lt.s32.totalorder %s24052_s30, %s23817_s15 }
  0x2e   : > { %p23814_p4 = pnand %p23812_p10, %p23800_p5  ;;  %p23820_p8 = scmp.lt.s32.totalorder %s23818_s18, %s23811_s8 }
  0x30   : > { %p23815_p12 = pneg %p23814_p4  ;;  %p23821_p9 = por %p23820_p8, %p23819_p0 }
  0x32   : > { %p23822_p2 = pnand %p23821_p9, %p23815_p12 }
  0x34   : > { %23825 = shalt.err (!%p23822_p2)
}
  0x35   : > { %23705 = dma.hbm_to_vmem [thread:$0]  (!%p24024_p13), %s24049_s25, 1024, %s24052_s30, %s24056_s6, %s23925_s12, %s23925_s12, %s23926_s13  }
  0x36   : > { %s23837_s17 = scalar_lea.vmem %s195_s14, 256  ;;  %p25931_p3 = pneg %p24015_p11 }
  0x37   : > { %p23838_p1 = scmp.ne.s32.totalorder %s195_s14, %s23837_s17  ;;  %p23845_p9 = scmp.lt.s32.totalorder %s195_s14, %s195_s14 }
  0x38   : > { %p23846_p0 = scmp.lt.s32.totalorder %s23837_s17, %s23837_s17 }
  0x39   : > { %p23840_p6 = pnand %p23838_p1, %p25931_p3 }
  0x3a   : > { %p23847_p7 = por %p23846_p0, %p23845_p9 }
  0x3b   : > { %p23841_p8 = pneg %p23840_p6 }
  0x3d   : > { %p23848_p10 = pnand %p23847_p7, %p23841_p8 }
  0x3f   : > { %23851 = shalt.err (!%p23848_p10)
}
  0x40   : > { %23701 = dma.hbm_to_vmem [thread:$0]  (!%p24015_p11), %s25914_s1, 256, %s195_s14, [#allocation5], %s23925_s12, %s23925_s12, %s23926_s13  }
  0x41   : > { %s25932_s25 = sshll.u32 %s23922_s21, 10  ;;  %s234_s7 = scalar_lea.vmem [#allocation7], %s24041_s16 }
  0x42   : > { %s24103_s8 = scalar_lea.hbm %s25916_s3, %s25932_s25  ;;  %s242_s11 = sshll.u32 %s234_s7, 4  ;;  %s243_s11 = int_to_ptr.vmem [resolvable:$true] %s242_s11 }
  0x43   : > { %s23852_s15 = scalar_lea.hbm %s24103_s8, 1024  ;;  %s23857_s21 = scalar_lea.hbm %s25916_s3, 2048 }
  0x44   : > { %p23853_p4 = scmp.ne.s32.totalorder %s24103_s8, %s23852_s15  ;;  %p23858_p11 = scmp.lt.s32.totalorder %s24103_s8, %s25916_s3 }
  0x45   : > { %p23859_p1 = scmp.lt.s32.totalorder %s23857_s21, %s23852_s15 }
  0x46   : > { %p23855_p12 = pnand %p23853_p4, %p23800_p5 }
  0x47   : > { %p23860_p3 = por %p23859_p1, %p23858_p11 }
  0x48   : > { %p23856_p2 = pneg %p23855_p12 }
  0x4a   : > { %p23861_p6 = pnand %p23860_p3, %p23856_p2 }
  0x4c   : > { %23864 = shalt.err (!%p23861_p6)
}
  0x4d   : > { %s23865_s16 = scalar_lea.vmem %s243_s11, 1024  ;;  %s23929_s24 = smov [#allocation7]  }
  0x4e   : > { %p23866_p8 = scmp.ne.s32.totalorder %s243_s11, %s23865_s16  ;;  %s23870_s25 = sshll.u32 %s23929_s24, 4  ;;  %s23871_s25 = int_to_ptr.vmem [resolvable:$false] %s23870_s25 }
  0x4f   : > { %s23872_s30 = scalar_lea.vmem %s23871_s25, 2048  ;;  %p23873_p7 = scmp.lt.s32.totalorder %s243_s11, %s23871_s25 }
  0x50   : > { %p23868_p9 = pnand %p23866_p8, %p23800_p5  ;;  %p23874_p10 = scmp.lt.s32.totalorder %s23872_s30, %s23865_s16 }
  0x52   : > { %p23869_p0 = pneg %p23868_p9  ;;  %p23875_p4 = por %p23874_p10, %p23873_p7 }
  0x54   : > { %p23876_p12 = pnand %p23875_p4, %p23869_p0 }
  0x56   : > { %23879 = shalt.err (!%p23876_p12)
}
  0x57   : > { %23708 = dma.hbm_to_vmem [thread:$0]  (!%p24024_p13), %s24103_s8, 1024, %s243_s11, %s24056_s6, %s23925_s12, %s23925_s12, %s23926_s13  }
  0x58   : > { %p25933_p5 = scmp.ne.s32.totalorder %s25928_s29, 0 }
  0x5a   : > { %254 = sbr.rel (%p25933_p5) target bundleno = 5194 (0x144a), region = 36 }
  0x5f   : > { %p25934_p2 = scmp.eq.s32.totalorder %s23979_s22, 0 }
  0x61   : > { %23897 = dma.done.wait (%p25934_p2), [#allocation3], 256   ;;  %p25935_p11 = pmov %p25934_p2 }
  0x62   : > { %p25936_p1 = pmov %p25934_p2 }
  0x63   : > { %23899 = vsyncadd (%p25935_p11), [#allocation3], 4294967040 }
  0x64   : > { %23901 = dma.done.wait (%p25936_p1), [#allocation5], 256   ;;  %p25937_p3 = pmov %p25936_p1 }
  0x65   : > { %s264_s10 = sand.u32 1, %s23979_s22   ;;  %s266_s12 = sand.u32 1, %s23914_s19  }
  0x66   : > { %23903 = vsyncadd (%p25937_p3), [#allocation5], 4294967040  ;;  %s24140_s13 = sshll.u32 %s266_s12, 6  ;;  %s265_s29 = scalar_lea.sflag [#allocation3], %s264_s10 }
  0x67   : > { %s24143_s6 = scalar_lea.vmem [#allocation6], %s24140_s13  ;;  %p25938_p13 = scmp.ne.s32.totalorder %s25927_s28, 0 }
  0x69   : > { %23905 = dma.done.wait (%p25938_p13), %s265_s29, 2048  }
  0x6a   : > { %23907 = vsyncadd (%p25938_p13), %s265_s29, 4294965248  ;;  %vm333_vm0 = vcmask 130048   ;;  %v24150_v0 = vld [vmem:[%s24143_s6 + $0x8] sm:$0xff]  ;;  %v24154_v2 = vld [vmem:[%s24143_s6] sm:$0xff]  ;;  %s24232_s28 = scalar_lea.vmem [#allocation7], %s24140_s13  ;;  %s20999_s27 = sshll.u32 %s23979_s22, 2 }
  0x6b   : > { %v369_v1 = vand.u32 4294901760, %v24150_v0  ;;  %v325_v3 = vld [vmem:[#allocation2] sm:$0xff]  ;;  %v326_v4 = vld [vmem:[#allocation2 + $0x8] sm:$0xff]  ;;  %v372_v5 = vand.u32 4294901760, %v24154_v2  ;;  %v328_v26 = vld [vmem:[#allocation4 + $0x8] sm:$0xff]  ;;  %p316_p6 = scmp.lt.s32.totalorder %s20999_s27, 7 }
  0x6c   : > { %v335_v6 = vsel %vm333_vm0, %v325_v3, 0  ;;  %v338_v7 = vsel %vm333_vm0, %v326_v4, 0  ;;  %v327_v27 = vld [vmem:[#allocation4] sm:$0xff]  ;;  %v24194_v28 = vand.u32 4294901760, %v328_v26  ;;  %v24235_v51 = vld [vmem:[%s24232_s28 + $0x8] sm:$0xff]  ;;  %v24241_v59 = vld [vmem:[%s24232_s28] sm:$0xff] }
  0x6d   : > { %21987 = vmatprep.subr.mxu0 %v369_v1  ;;  %v457_v8 = vsub.f32 %v24150_v0, %v369_v1  ;;  %v24160_v9 = vand.u32 4294901760, %v335_v6  ;;  %v24162_v10 = vand.u32 4294901760, %v338_v7  ;;  %v464_v11 = vsub.f32 %v24154_v2, %v372_v5  ;;  %s25948_s27 = smov (!%p316_p6, %s20999_s27), 7  ;;  %p322_p8 = scmp.lt.s32.totalorder %s23979_s22, 1 }
  0x6e   : > { %21988 = vmatpush3.msra.mxu0 %v369_v1  ;;  %v24198_v29 = vand.u32 4294901760, %v327_v27  ;;  %v24204_v30 = vsub.f32 %v328_v26, %v24194_v28  ;;  %v24238_v56 = vand.u32 4294901760, %v24235_v51  ;;  %v24247_v3 = vand.u32 4294901760, %v24241_v59  ;;  %s21026_s8 = sshll.u32 %s25948_s27, 4 }
  0x6f   : > { %21989 = vmatprep.subr.mxu0 %v372_v5  ;;  %v458_v12 = vand.u32 4294901760, %v457_v8  ;;  %v24166_v13 = vsub.f32 %v335_v6, %v24160_v9  ;;  %21998 = vmatprep.mubr.f32.mxu1 %v24160_v9  ;;  %v24170_v14 = vsub.f32 %v338_v7, %v24162_v10  ;;  %v465_v15 = vand.u32 4294901760, %v464_v11  ;;  %s24679_s15 = scalar_lea.vmem %s25917_s4, %s21026_s8  ;;  %s25950_s22 = smov (!%p322_p8, %s23979_s22), 1 }
  0x70   : > { %21990 = vmatpush3.msra.mxu0 %v372_v5  ;;  %v24210_v31 = vsub.f32 %v327_v27, %v24198_v29  ;;  %v24213_v32 = vand.u32 4294901760, %v24204_v30  ;;  %s324_s27 = scalar_lea.vmem %s25918_s5, %s25950_s22  ;;  %vm20845_vm2 = vcmask 8192  }
  0x71   : > { %v459_v16 = vsub.f32 %v457_v8, %v458_v12  ;;  %v24173_v17 = vand.u32 4294901760, %v24166_v13  ;;  %22001 = vmatprep.subr.mxu0 %v457_v8  ;;  %v24176_v18 = vand.u32 4294901760, %v24170_v14  ;;  %v466_v19 = vsub.f32 %v464_v11, %v465_v15 }
  0x72   : > { %v967_v33 = vsub.f32 %v24204_v30, %v24213_v32  ;;  %v24218_v34 = vand.u32 4294901760, %v24210_v31 }
  0x73   : > { %v460_v20 = vand.u32 4294901760, %v459_v16  ;;  %v410_v21 = vsub.f32 %v24166_v13, %v24173_v17  ;;  %v420_v22 = vsub.f32 %v24170_v14, %v24176_v18  ;;  %v467_v23 = vand.u32 4294901760, %v466_v19 }
  0x74   : > { %v24220_v35 = vand.u32 4294901760, %v967_v33  ;;  %v974_v36 = vsub.f32 %v24210_v31, %v24218_v34 }
  0x75   : > { %21994 = vmatprep.subr.mxu1 %v460_v20  ;;  %v24182_v24 = vand.u32 4294901760, %v410_v21  ;;  %v24184_v25 = vand.u32 4294901760, %v420_v22 }
  0x76   : > { %21995 = vmatpush3.msra.mxu1 %v460_v20  ;;  %v24225_v37 = vand.u32 4294901760, %v974_v36 }
  0x77   : > { %21991 = vmatprep.mubr.f32.mxu0 %v24182_v24  ;;  %21996 = vmatprep.subr.mxu1 %v467_v23 }
  0x78   : > { %21992 = vmatmul.mubr.f32.vlgmr.msra.gmra.mxu0 %v24184_v25  ;;  %21997 = vmatpush3.msra.mxu1 %v467_v23 }
  0x79   : > { %22002 = vmatpush3.msra.mxu0 %v457_v8  ;;  %21999 = vmatmul.mubr.f32.vlgmr.msra.gmra.mxu1 %v24162_v10 }
  0x7a   : > { %22003 = vmatprep.subr.mxu0 %v464_v11  ;;  %22008 = vmatprep.subr.mxu1 %v369_v1 }
  0x7b   : > { %22004 = vmatpush3.msra.mxu0 %v464_v11  ;;  %22005 = vmatprep.mubr.f32.mxu0 %v24166_v13  ;;  %v1474_v11 = vsub.f32 %v24241_v59, %v24247_v3 }
  0x7c   : > { %22009 = vmatpush3.msra.mxu1 %v369_v1  ;;  %22006 = vmatmul.mubr.f32.vlgmr.msra.gmra.mxu0 %v24170_v14 }
  0x7d   : > { %22010 = vmatprep.subr.mxu1 %v372_v5  ;;  %22015 = vmatprep.subr.mxu0 %v458_v12  ;;  %v1475_v21 = vand.u32 4294901760, %v1474_v11 }
  0x7e   : > { %22011 = vmatpush3.msra.mxu1 %v372_v5  ;;  %22012 = vmatprep.mubr.f32.mxu1 %v24173_v17 }
  0x7f   : > { %22016 = vmatpush3.msra.mxu0 %v458_v12  ;;  %22013 = vmatmul.mubr.f32.vlgmr.msra.gmra.mxu1 %v24176_v18  ;;  %v1476_v33 = vsub.f32 %v1474_v11, %v1475_v21 }
  0x80   : > { %22017 = vmatprep.subr.mxu0 %v465_v15  ;;  %22022 = vmatprep.subr.mxu1 %v369_v1 }
  0x81   : > { %22018 = vmatpush3.msra.mxu0 %v465_v15  ;;  %22019 = vmatprep.mubr.f32.mxu0 %v24160_v9  ;;  %v1477_v36 = vand.u32 4294901760, %v1476_v33 }
  0x82   : > { %22023 = vmatpush3.msra.mxu1 %v369_v1  ;;  %22020 = vmatmul.mubr.f32.vlgmr.msra.gmra.mxu0 %v24162_v10  ;;  %v1467_v1 = vsub.f32 %v24235_v51, %v24238_v56 }
  0x83   : > { %22024 = vmatprep.subr.mxu1 %v372_v5  ;;  %22026 = vmatprep.mubr.f32.mxu1 %v24160_v9 }
  0x84   : > { %22025 = vmatpush3.msra.mxu1 %v372_v5  ;;  %22029 = vmatprep.subr.mxu0 %v24194_v28  ;;  %v24250_v8 = vand.u32 4294901760, %v1467_v1 }
  0x85   : > { %22027 = vmatmul.mubr.f32.vlgmr.msra.gmra.mxu1 %v24162_v10  ;;  %22030 = vmatpush3.msra.mxu0 %v24194_v28 }
  0x86   : > { %22031 = vmatprep.subr.mxu0 %v24198_v29  ;;  %22036 = vmatprep.subr.mxu1 %v24220_v35  ;;  %v1469_v20 = vsub.f32 %v1467_v1, %v24250_v8 }
  0x87   : > { %22032 = vmatpush3.msra.mxu0 %v24198_v29  ;;  %22037 = vmatpush3.msra.mxu1 %v24220_v35 }
  0x88   : > { %22043 = vmatprep.subr.mxu0 %v24204_v30  ;;  %22038 = vmatprep.subr.mxu1 %v24225_v37  ;;  %v1470_v27 = vand.u32 4294901760, %v1469_v20 }
  0x89   : > { %22039 = vmatpush3.msra.mxu1 %v24225_v37 }
  0x8a   : > { %22050 = vmatprep.subr.mxu1 %v24194_v28 }
 0x138   : > { %v21993_v38 = vpop.f32.mrf.mxu0 }
 0x139   : > { %v22000_v39 = vpop.f32.mrf.mxu1 }
 0x13a   : > { %v413_v40 = vpop.f32.mrf.mxu0  ;;  %v511_v41 = vadd.f32 %v22000_v39, %v21993_v38 }
 0x13b   : > { %v504_v42 = vpop.f32.mrf.mxu1 }
 0x13c   : > { %v505_v43 = vadd.f32 %v504_v42, %v413_v40  ;;  %v22007_v44 = vpop.f32.mrf.mxu0 }
 0x13d   : > { %v594_v45 = vadd.f32 %v22007_v44, %v511_v41 }
 0x13e   : > { %v586_v46 = vpop.f32.mrf.mxu0 }
 0x13f   : > { %v587_v47 = vadd.f32 %v586_v46, %v505_v43  ;;  %v22014_v48 = vpop.f32.mrf.mxu1 }
 0x140   : > { %v677_v49 = vadd.f32 %v22014_v48, %v594_v45 }
 0x141   : > { %v668_v50 = vpop.f32.mrf.mxu1 }
 0x142   : > { %v669_v52 = vadd.f32 %v668_v50, %v587_v47  ;;  %v22021_v53 = vpop.f32.mrf.mxu0 }
 0x143   : > { %v760_v54 = vadd.f32 %v22021_v53, %v677_v49 }
 0x144   : > { %v753_v55 = vpop.f32.mrf.mxu0 }
 0x145   : > { %v754_v57 = vadd.f32 %v753_v55, %v669_v52  ;;  %v22028_v58 = vpop.f32.mrf.mxu1 }
 0x146   : > { %v839_v60 = vadd.f32 %v22028_v58, %v760_v54 }
 0x147   : > { %v832_v61 = vpop.f32.mrf.mxu1 }
 0x148   : > { %v846_v62 = vsel %vm333_vm0, %v839_v60, 0  ;;  %v833_v63 = vadd.f32 %v832_v61, %v754_v57 }
 0x149   : > { %v925_v4 = vand.u32 4294901760, %v846_v62 }
 0x14a   : > { %v843_v5 = vsel %vm333_vm0, %v833_v63, 0 }
 0x14b   : > { %v926_v6 = vsub.f32 %v846_v62, %v925_v4  ;;  %v915_v7 = vand.u32 4294901760, %v843_v5 }
 0x14d   : > { %v916_v12 = vsub.f32 %v843_v5, %v915_v7  ;;  %22040 = vmatprep.mubr.f32.mxu1 %v915_v7  ;;  %v927_v15 = vand.u32 4294901760, %v926_v6 }
 0x14e   : > { %22041 = vmatmul.mubr.f32.vlgmr.msra.gmra.mxu1 %v925_v4 }
 0x14f   : > { %22051 = vmatpush3.msra.mxu1 %v24194_v28  ;;  %v917_v16 = vand.u32 4294901760, %v916_v12  ;;  %v928_v19 = vsub.f32 %v926_v6, %v927_v15 }
 0x150   : > { %22052 = vmatprep.subr.mxu1 %v24198_v29 }
 0x151   : > { %22053 = vmatpush3.msra.mxu1 %v24198_v29  ;;  %22054 = vmatprep.mubr.f32.mxu1 %v917_v16  ;;  %v918_v22 = vsub.f32 %v916_v12, %v917_v16  ;;  %v929_v26 = vand.u32 4294901760, %v928_v19  ;;  %v2360_v19 = vmul.f32 %v24154_v2, %v24154_v2 }
 0x152   : > { %22055 = vmatmul.mubr.f32.vlgmr.msra.gmra.mxu1 %v927_v15  ;;  %22064 = vmatprep.subr.mxu1 %v24194_v28 }
 0x153   : > { %22065 = vmatpush3.msra.mxu1 %v24194_v28  ;;  %22068 = vmatprep.mubr.f32.mxu1 %v915_v7  ;;  %v919_v23 = vand.u32 4294901760, %v918_v22 }
 0x154   : > { %22066 = vmatprep.subr.mxu1 %v24198_v29 }
 0x155   : > { %22033 = vmatprep.mubr.f32.mxu0 %v919_v23  ;;  %22067 = vmatpush3.msra.mxu1 %v24198_v29 }
 0x156   : > { %22034 = vmatmul.mubr.f32.vlgmr.msra.gmra.mxu0 %v929_v26  ;;  %22069 = vmatmul.mubr.f32.vlgmr.msra.gmra.mxu1 %v925_v4 }
 0x157   : > { %22044 = vmatpush3.msra.mxu0 %v24204_v30  ;;  %22047 = vmatprep.mubr.f32.mxu0 %v916_v12 }
 0x158   : > { %22045 = vmatprep.subr.mxu0 %v24210_v31  ;;  %22078 = vmatprep.subr.mxu1 %v1470_v27 }
 0x159   : > { %22046 = vmatpush3.msra.mxu0 %v24210_v31  ;;  %22079 = vmatpush3.msra.mxu1 %v1470_v27 }
 0x15a   : > { %22048 = vmatmul.mubr.f32.vlgmr.msra.gmra.mxu0 %v926_v6  ;;  %22057 = vmatprep.subr.mxu0 %v24213_v32 }
 0x15b   : > { %22058 = vmatpush3.msra.mxu0 %v24213_v32  ;;  %22061 = vmatprep.mubr.f32.mxu0 %v915_v7  ;;  %v2361_v7 = vmul.f32 %v24150_v0, %v24150_v0 }
 0x15c   : > { %22059 = vmatprep.subr.mxu0 %v24218_v34  ;;  %22080 = vmatprep.subr.mxu1 %v1477_v36 }
 0x15d   : > { %22060 = vmatpush3.msra.mxu0 %v24218_v34  ;;  %22081 = vmatpush3.msra.mxu1 %v1477_v36  ;;  %v24321_v16 = vand.u32 4294901760, %v2361_v7 }
 0x15e   : > { %22062 = vmatmul.mubr.f32.vlgmr.msra.gmra.mxu0 %v925_v4  ;;  %22071 = vmatprep.subr.mxu0 %v24238_v56 }
 0x15f   : > { %22072 = vmatpush3.msra.mxu0 %v24238_v56  ;;  %22075 = vmatprep.mubr.f32.mxu0 %v24182_v24  ;;  %v2479_v36 = vsub.f32 %v2361_v7, %v24321_v16 }
 0x160   : > { %22073 = vmatprep.subr.mxu0 %v24247_v3  ;;  %22082 = vmatprep.mubr.f32.mxu1 %v24160_v9 }
 0x161   : > { %22074 = vmatpush3.msra.mxu0 %v24247_v3  ;;  %22083 = vmatmul.mubr.f32.vlgmr.msra.gmra.mxu1 %v24162_v10 }
 0x162   : > { %22076 = vmatmul.mubr.f32.vlgmr.msra.gmra.mxu0 %v24184_v25  ;;  %22085 = vmatprep.subr.mxu0 %v1467_v1 }
 0x163   : > { %22086 = vmatpush3.msra.mxu0 %v1467_v1  ;;  %22092 = vmatprep.subr.mxu1 %v24238_v56 }
 0x164   : > { %22087 = vmatprep.subr.mxu0 %v1474_v11  ;;  %22093 = vmatpush3.msra.mxu1 %v24238_v56 }
 0x165   : > { %22088 = vmatpush3.msra.mxu0 %v1474_v11  ;;  %22089 = vmatprep.mubr.f32.mxu0 %v24166_v13 }
 0x166   : > { %22094 = vmatprep.subr.mxu1 %v24247_v3  ;;  %22090 = vmatmul.mubr.f32.vlgmr.msra.gmra.mxu0 %v24170_v14 }
 0x167   : > { %22095 = vmatpush3.msra.mxu1 %v24247_v3  ;;  %22096 = vmatprep.mubr.f32.mxu1 %v24173_v17 }
 0x168   : > { %22099 = vmatprep.subr.mxu0 %v24250_v8  ;;  %22097 = vmatmul.mubr.f32.vlgmr.msra.gmra.mxu1 %v24176_v18 }
 0x169   : > { %22100 = vmatpush3.msra.mxu0 %v24250_v8  ;;  %22106 = vmatprep.subr.mxu1 %v24238_v56 }
 0x16a   : > { %22101 = vmatprep.subr.mxu0 %v1475_v21  ;;  %22107 = vmatpush3.msra.mxu1 %v24238_v56 }
 0x16b   : > { %22102 = vmatpush3.msra.mxu0 %v1475_v21  ;;  %22103 = vmatprep.mubr.f32.mxu0 %v24160_v9 }
 0x16c   : > { %22108 = vmatprep.subr.mxu1 %v24247_v3  ;;  %22104 = vmatmul.mubr.f32.vlgmr.msra.gmra.mxu0 %v24162_v10 }
 0x16d   : > { %22109 = vmatpush3.msra.mxu1 %v24247_v3  ;;  %22110 = vmatprep.mubr.f32.mxu1 %v24160_v9 }
 0x16e   : > { %22111 = vmatmul.mubr.f32.vlgmr.msra.gmra.mxu1 %v24162_v10  ;;  %22120 = vmatprep.subr.mxu1 %v24220_v35 }
 0x16f   : > { %22121 = vmatpush3.msra.mxu1 %v24220_v35  ;;  %22113 = vmatprep.subr.mxu0 %v24194_v28 }
 0x170   : > { %22122 = vmatprep.subr.mxu1 %v24225_v37  ;;  %22114 = vmatpush3.msra.mxu0 %v24194_v28 }
 0x171   : > { %22123 = vmatpush3.msra.mxu1 %v24225_v37  ;;  %22115 = vmatprep.subr.mxu0 %v24198_v29 }
 0x172   : > { %22134 = vmatprep.subr.mxu1 %v24194_v28  ;;  %22116 = vmatpush3.msra.mxu0 %v24198_v29 }
 0x173   : > { %22127 = vmatprep.subr.mxu0 %v24204_v30 }
 0x20e   : > { %v22042_v38 = vpop.f32.mrf.mxu1 }
 0x210   : > { %v24305_v39 = vpop.f32.mrf.mxu1 }
 0x212   : > { %v22056_v40 = vpop.f32.mrf.mxu1 }
 0x214   : > { %v24307_v42 = vpop.f32.mrf.mxu1 }
 0x216   : > { %v22035_v41 = vpop.f32.mrf.mxu0  ;;  %v22070_v46 = vpop.f32.mrf.mxu1 }
 0x217   : > { %v1019_v43 = vadd.f32 %v22042_v38, %v22035_v41  ;;  %v24327_v38 = vand.u32 4294901760, %v2360_v19 }
 0x218   : > { %v24309_v44 = vpop.f32.mrf.mxu0  ;;  %v24313_v52 = vpop.f32.mrf.mxu1 }
 0x21a   : > { %v22049_v45 = vpop.f32.mrf.mxu0 }
 0x21b   : > { %v1102_v47 = vadd.f32 %v22049_v45, %v1019_v43 }
 0x21c   : > { %v24311_v48 = vpop.f32.mrf.mxu0 }
 0x21d   : > { %v1185_v49 = vadd.f32 %v22056_v40, %v1102_v47  ;;  %v2486_v47 = vsub.f32 %v2360_v19, %v24327_v38 }
 0x21e   : > { %v22063_v50 = vpop.f32.mrf.mxu0 }
 0x21f   : > { %v1268_v53 = vadd.f32 %v22063_v50, %v1185_v49 }
 0x220   : > { %v24315_v54 = vpop.f32.mrf.mxu0 }
 0x221   : > { %v24317_v55 = vadd.f32 %v22070_v46, %v1268_v53  ;;  %v22084_v56 = vpop.f32.mrf.mxu1  ;;  %v24330_v46 = vand.u32 4294901760, %v2479_v36 }
 0x222   : > { %v22077_v57 = vpop.f32.mrf.mxu0 }
 0x223   : > { %v1514_v60 = vpop.f32.mrf.mxu1  ;;  %v1521_v61 = vadd.f32 %v22084_v56, %v22077_v57  ;;  %v2481_v57 = vsub.f32 %v2479_v36, %v24330_v46 }
 0x224   : > { %v1423_v58 = vpop.f32.mrf.mxu0 }
 0x225   : > { %v1515_v63 = vadd.f32 %v1514_v60, %v1423_v58  ;;  %v2487_v58 = vand.u32 4294901760, %v2486_v47 }
 0x226   : > { %v22091_v62 = vpop.f32.mrf.mxu0 }
 0x227   : > { %v1604_v1 = vadd.f32 %v22091_v62, %v1521_v61 }
 0x228   : > { %v22098_v3 = vpop.f32.mrf.mxu1  ;;  %v1596_v4 = vpop.f32.mrf.mxu0 }
 0x229   : > { %v1687_v5 = vadd.f32 %v22098_v3, %v1604_v1  ;;  %v1597_v6 = vadd.f32 %v1596_v4, %v1515_v63  ;;  %v2482_v63 = vand.u32 4294901760, %v2481_v57  ;;  %v2488_v1 = vsub.f32 %v2486_v47, %v2487_v58 }
 0x22a   : > { %v1678_v8 = vpop.f32.mrf.mxu1 }
 0x22b   : > { %v1679_v11 = vadd.f32 %v1678_v8, %v1597_v6  ;;  %v2489_v3 = vand.u32 4294901760, %v2488_v1 }
 0x22c   : > { %v22105_v12 = vpop.f32.mrf.mxu0 }
 0x22d   : > { %v1770_v15 = vadd.f32 %v22105_v12, %v1687_v5 }
 0x22e   : > { %v22112_v20 = vpop.f32.mrf.mxu1  ;;  %v1763_v21 = vpop.f32.mrf.mxu0 }
 0x22f   : > { %v1849_v22 = vadd.f32 %v22112_v20, %v1770_v15  ;;  %v1764_v23 = vadd.f32 %v1763_v21, %v1679_v11 }
 0x230   : > { %v1842_v26 = vpop.f32.mrf.mxu1 }
 0x231   : > { %v1856_v27 = vsel %vm333_vm0, %v1849_v22, 0  ;;  %v1843_v33 = vadd.f32 %v1842_v26, %v1764_v23 }
 0x232   : > { %v1935_v40 = vand.u32 4294901760, %v1856_v27 }
 0x233   : > { %v1853_v41 = vsel %vm333_vm0, %v1843_v33, 0 }
 0x234   : > { %v1936_v43 = vsub.f32 %v1856_v27, %v1935_v40  ;;  %v1925_v45 = vand.u32 4294901760, %v1853_v41 }
 0x236   : > { %v1926_v49 = vsub.f32 %v1853_v41, %v1925_v45  ;;  %22124 = vmatprep.mubr.f32.mxu1 %v1925_v45  ;;  %v1937_v50 = vand.u32 4294901760, %v1936_v43 }
 0x237   : > { %22125 = vmatmul.mubr.f32.vlgmr.msra.gmra.mxu1 %v1935_v40 }
 0x238   : > { %22135 = vmatpush3.msra.mxu1 %v24194_v28  ;;  %v1927_v53 = vand.u32 4294901760, %v1926_v49  ;;  %v1938_v56 = vsub.f32 %v1936_v43, %v1937_v50 }
 0x239   : > { %22136 = vmatprep.subr.mxu1 %v24198_v29 }
 0x23a   : > { %22137 = vmatpush3.msra.mxu1 %v24198_v29  ;;  %22138 = vmatprep.mubr.f32.mxu1 %v1927_v53  ;;  %v1928_v60 = vsub.f32 %v1926_v49, %v1927_v53  ;;  %v1939_v62 = vand.u32 4294901760, %v1938_v56 }
 0x23b   : > { %22139 = vmatmul.mubr.f32.vlgmr.msra.gmra.mxu1 %v1937_v50  ;;  %22148 = vmatprep.subr.mxu1 %v24194_v28 }
 0x23c   : > { %22149 = vmatpush3.msra.mxu1 %v24194_v28  ;;  %22152 = vmatprep.mubr.f32.mxu1 %v1925_v45  ;;  %v1929_v61 = vand.u32 4294901760, %v1928_v60 }
 0x23d   : > { %22150 = vmatprep.subr.mxu1 %v24198_v29 }
 0x23e   : > { %22117 = vmatprep.mubr.f32.mxu0 %v1929_v61  ;;  %22151 = vmatpush3.msra.mxu1 %v24198_v29  ;;  %v3373_v61 = vmul.f32 %v24235_v51, %v24235_v51 }
 0x23f   : > { %22118 = vmatmul.mubr.f32.vlgmr.msra.gmra.mxu0 %v1939_v62  ;;  %22153 = vmatmul.mubr.f32.vlgmr.msra.gmra.mxu1 %v1935_v40 }
 0x240   : > { %22128 = vmatpush3.msra.mxu0 %v24204_v30  ;;  %22131 = vmatprep.mubr.f32.mxu0 %v1926_v49 }
 0x241   : > { %22129 = vmatprep.subr.mxu0 %v24210_v31  ;;  %22162 = vmatprep.subr.mxu1 %v2482_v63 }
 0x242   : > { %22130 = vmatpush3.msra.mxu0 %v24210_v31  ;;  %22163 = vmatpush3.msra.mxu1 %v2482_v63 }
 0x243   : > { %22132 = vmatmul.mubr.f32.vlgmr.msra.gmra.mxu0 %v1936_v43  ;;  %22141 = vmatprep.subr.mxu0 %v24213_v32 }
 0x244   : > { %22142 = vmatpush3.msra.mxu0 %v24213_v32  ;;  %22145 = vmatprep.mubr.f32.mxu0 %v1925_v45 }
 0x245   : > { %22143 = vmatprep.subr.mxu0 %v24218_v34  ;;  %22164 = vmatprep.subr.mxu1 %v2489_v3 }
 0x246   : > { %22144 = vmatpush3.msra.mxu0 %v24218_v34  ;;  %22165 = vmatpush3.msra.mxu1 %v2489_v3 }
 0x247   : > { %22146 = vmatmul.mubr.f32.vlgmr.msra.gmra.mxu0 %v1935_v40  ;;  %22155 = vmatprep.subr.mxu0 %v24321_v16  ;;  %v24398_v40 = vmul.f32 %v24317_v55, %v24317_v55 }
 0x248   : > { %22156 = vmatpush3.msra.mxu0 %v24321_v16  ;;  %22159 = vmatprep.mubr.f32.mxu0 %v24182_v24 }
 0x249   : > { %22157 = vmatprep.subr.mxu0 %v24327_v38  ;;  %22166 = vmatprep.mubr.f32.mxu1 %v24160_v9 }
 0x24a   : > { %22158 = vmatpush3.msra.mxu0 %v24327_v38  ;;  %22167 = vmatmul.mubr.f32.vlgmr.msra.gmra.mxu1 %v24162_v10 }
 0x24b   : > { %22160 = vmatmul.mubr.f32.vlgmr.msra.gmra.mxu0 %v24184_v25  ;;  %22169 = vmatprep.subr.mxu0 %v2479_v36 }
 0x24c   : > { %22170 = vmatpush3.msra.mxu0 %v2479_v36  ;;  %22176 = vmatprep.subr.mxu1 %v24321_v16 }
 0x24d   : > { %22171 = vmatprep.subr.mxu0 %v2486_v47  ;;  %22177 = vmatpush3.msra.mxu1 %v24321_v16 }
 0x24e   : > { %22172 = vmatpush3.msra.mxu0 %v2486_v47  ;;  %22173 = vmatprep.mubr.f32.mxu0 %v24166_v13 }
 0x24f   : > { %22178 = vmatprep.subr.mxu1 %v24327_v38  ;;  %22174 = vmatmul.mubr.f32.vlgmr.msra.gmra.mxu0 %v24170_v14 }
 0x250   : > { %22179 = vmatpush3.msra.mxu1 %v24327_v38  ;;  %22180 = vmatprep.mubr.f32.mxu1 %v24173_v17 }
 0x251   : > { %22183 = vmatprep.subr.mxu0 %v24330_v46  ;;  %22181 = vmatmul.mubr.f32.vlgmr.msra.gmra.mxu1 %v24176_v18 }
 0x252   : > { %22184 = vmatpush3.msra.mxu0 %v24330_v46  ;;  %22190 = vmatprep.subr.mxu1 %v24321_v16 }
 0x253   : > { %22185 = vmatprep.subr.mxu0 %v2487_v58  ;;  %22191 = vmatpush3.msra.mxu1 %v24321_v16 }
 0x254   : > { %22186 = vmatpush3.msra.mxu0 %v2487_v58  ;;  %22187 = vmatprep.mubr.f32.mxu0 %v24160_v9 }
 0x255   : > { %22192 = vmatprep.subr.mxu1 %v24327_v38  ;;  %22188 = vmatmul.mubr.f32.vlgmr.msra.gmra.mxu0 %v24162_v10 }
 0x256   : > { %22193 = vmatpush3.msra.mxu1 %v24327_v38  ;;  %22194 = vmatprep.mubr.f32.mxu1 %v24160_v9 }
 0x257   : > { %22195 = vmatmul.mubr.f32.vlgmr.msra.gmra.mxu1 %v24162_v10  ;;  %22204 = vmatprep.subr.mxu1 %v24220_v35 }
 0x258   : > { %22205 = vmatpush3.msra.mxu1 %v24220_v35  ;;  %22197 = vmatprep.subr.mxu0 %v24194_v28 }
 0x259   : > { %22206 = vmatprep.subr.mxu1 %v24225_v37  ;;  %22198 = vmatpush3.msra.mxu0 %v24194_v28 }
 0x25a   : > { %22207 = vmatpush3.msra.mxu1 %v24225_v37  ;;  %22199 = vmatprep.subr.mxu0 %v24198_v29 }
 0x25b   : > { %22218 = vmatprep.subr.mxu1 %v24194_v28  ;;  %22200 = vmatpush3.msra.mxu0 %v24198_v29 }
 0x25c   : > { %22211 = vmatprep.subr.mxu0 %v24204_v30 }
 0x2f7   : > { %v22126_v4 = vpop.f32.mrf.mxu1 }
 0x2f9   : > { %v24384_v5 = vpop.f32.mrf.mxu1 }
 0x2fb   : > { %v22140_v6 = vpop.f32.mrf.mxu1 }
 0x2fd   : > { %v24386_v8 = vpop.f32.mrf.mxu1 }
 0x2ff   : > { %v22119_v7 = vpop.f32.mrf.mxu0  ;;  %v22154_v16 = vpop.f32.mrf.mxu1 }
 0x300   : > { %v2029_v11 = vadd.f32 %v22126_v4, %v22119_v7  ;;  %v24411_v4 = vand.u32 4294901760, %v3373_v61 }
 0x301   : > { %v24388_v12 = vpop.f32.mrf.mxu0  ;;  %v24392_v23 = vpop.f32.mrf.mxu1 }
 0x303   : > { %v22133_v15 = vpop.f32.mrf.mxu0 }
 0x304   : > { %v2112_v19 = vadd.f32 %v22133_v15, %v2029_v11 }
 0x305   : > { %v24390_v20 = vpop.f32.mrf.mxu0 }
 0x306   : > { %v2195_v21 = vadd.f32 %v22140_v6, %v2112_v19  ;;  %v3372_v6 = vmul.f32 %v24241_v59, %v24241_v59 }
 0x307   : > { %v22147_v22 = vpop.f32.mrf.mxu0 }
 0x308   : > { %v2278_v26 = vadd.f32 %v22147_v22, %v2195_v21 }
 0x309   : > { %v24394_v27 = vpop.f32.mrf.mxu0 }
 0x30a   : > { %v2357_v33 = vadd.f32 %v22154_v16, %v2278_v26  ;;  %v22168_v36 = vpop.f32.mrf.mxu1  ;;  %v3491_v26 = vsub.f32 %v3373_v61, %v24411_v4 }
 0x30b   : > { %v22161_v38 = vpop.f32.mrf.mxu0 }
 0x30c   : > { %v24400_v41 = vmul.f32 %v2357_v33, %v2357_v33  ;;  %v24403_v43 = vmul.f32 %v2357_v33, %v24317_v55  ;;  %v2526_v46 = vpop.f32.mrf.mxu1  ;;  %v2533_v49 = vadd.f32 %v22168_v36, %v22161_v38  ;;  %v24417_v33 = vand.u32 4294901760, %v3372_v6 }
 0x30d   : > { %v2435_v45 = vpop.f32.mrf.mxu0 }
 0x30e   : > { %25939 = vst [vmem:[#allocation11_spill] sm:$0xff] %v24403_v43  ;;  %v24407_v47 = vadd.f32 %v24400_v41, %v24398_v40  ;;  %v2527_v53 = vadd.f32 %v2526_v46, %v2435_v45 }
 0x30f   : > { %v22175_v50 = vpop.f32.mrf.mxu0 }
 0x310   : > { %v2616_v56 = vadd.f32 %v22175_v50, %v2533_v49  ;;  %v24420_v49 = vand.u32 4294901760, %v3491_v26  ;;  %v3498_v50 = vsub.f32 %v3372_v6, %v24417_v33 }
 0x311   : > { %v22182_v57 = vpop.f32.mrf.mxu1  ;;  %v2608_v58 = vpop.f32.mrf.mxu0 }
 0x312   : > { %v2609_v60 = vadd.f32 %v2608_v58, %v2527_v53  ;;  %v2699_v62 = vadd.f32 %v22182_v57, %v2616_v56  ;;  %v3499_v61 = vand.u32 4294901760, %v3498_v50 }
 0x313   : > { %v2690_v63 = vpop.f32.mrf.mxu1 }
 0x314   : > { %v2691_v55 = vadd.f32 %v2690_v63, %v2609_v60  ;;  %v3493_v60 = vsub.f32 %v3491_v26, %v24420_v49 }
 0x315   : > { %v22189_v1 = vpop.f32.mrf.mxu0 }
 0x316   : > { %v2782_v3 = vadd.f32 %v22189_v1, %v2699_v62  ;;  %v3494_v1 = vand.u32 4294901760, %v3493_v60 }
 0x317   : > { %v22196_v7 = vpop.f32.mrf.mxu1  ;;  %v2775_v11 = vpop.f32.mrf.mxu0 }
 0x318   : > { %v2861_v15 = vadd.f32 %v22196_v7, %v2782_v3  ;;  %v2776_v16 = vadd.f32 %v2775_v11, %v2691_v55  ;;  %v3500_v3 = vsub.f32 %v3498_v50, %v3499_v61 }
 0x319   : > { %v2854_v19 = vpop.f32.mrf.mxu1 }
 0x31a   : > { %v2868_v21 = vsel %vm333_vm0, %v2861_v15, 0  ;;  %v2855_v22 = vadd.f32 %v2854_v19, %v2776_v16  ;;  %v3501_v6 = vand.u32 4294901760, %v3500_v3 }
 0x31b   : > { %v2947_v36 = vand.u32 4294901760, %v2868_v21 }
 0x31c   : > { %v2865_v38 = vsel %vm333_vm0, %v2855_v22, 0 }
 0x31d   : > { %v2948_v45 = vsub.f32 %v2868_v21, %v2947_v36  ;;  %v2937_v46 = vand.u32 4294901760, %v2865_v38 }
 0x31f   : > { %v2938_v53 = vsub.f32 %v2865_v38, %v2937_v46  ;;  %22208 = vmatprep.mubr.f32.mxu1 %v2937_v46  ;;  %v2949_v56 = vand.u32 4294901760, %v2948_v45 }
 0x320   : > { %22209 = vmatmul.mubr.f32.vlgmr.msra.gmra.mxu1 %v2947_v36 }
 0x321   : > { %22219 = vmatpush3.msra.mxu1 %v24194_v28  ;;  %v2939_v57 = vand.u32 4294901760, %v2938_v53  ;;  %v2950_v58 = vsub.f32 %v2948_v45, %v2949_v56 }
 0x322   : > { %22220 = vmatprep.subr.mxu1 %v24198_v29 }
 0x323   : > { %22221 = vmatpush3.msra.mxu1 %v24198_v29  ;;  %22222 = vmatprep.mubr.f32.mxu1 %v2939_v57  ;;  %v2940_v62 = vsub.f32 %v2938_v53, %v2939_v57  ;;  %v2951_v55 = vand.u32 4294901760, %v2950_v58 }
 0x324   : > { %22223 = vmatmul.mubr.f32.vlgmr.msra.gmra.mxu1 %v2949_v56  ;;  %22232 = vmatprep.subr.mxu1 %v24194_v28 }
 0x325   : > { %22233 = vmatpush3.msra.mxu1 %v24194_v28  ;;  %22236 = vmatprep.mubr.f32.mxu1 %v2937_v46  ;;  %v2941_v63 = vand.u32 4294901760, %v2940_v62 }
 0x326   : > { %22234 = vmatprep.subr.mxu1 %v24198_v29 }
 0x327   : > { %22201 = vmatprep.mubr.f32.mxu0 %v2941_v63  ;;  %22235 = vmatpush3.msra.mxu1 %v24198_v29 }
 0x328   : > { %22202 = vmatmul.mubr.f32.vlgmr.msra.gmra.mxu0 %v2951_v55  ;;  %22237 = vmatmul.mubr.f32.vlgmr.msra.gmra.mxu1 %v2947_v36 }
 0x329   : > { %22212 = vmatpush3.msra.mxu0 %v24204_v30  ;;  %22215 = vmatprep.mubr.f32.mxu0 %v2938_v53 }
 0x32a   : > { %22213 = vmatprep.subr.mxu0 %v24210_v31  ;;  %22246 = vmatprep.subr.mxu1 %v3494_v1 }
 0x32b   : > { %22214 = vmatpush3.msra.mxu0 %v24210_v31  ;;  %22247 = vmatpush3.msra.mxu1 %v3494_v1 }
 0x32c   : > { %22216 = vmatmul.mubr.f32.vlgmr.msra.gmra.mxu0 %v2948_v45  ;;  %22225 = vmatprep.subr.mxu0 %v24213_v32 }
 0x32d   : > { %22226 = vmatpush3.msra.mxu0 %v24213_v32  ;;  %22229 = vmatprep.mubr.f32.mxu0 %v2937_v46 }
 0x32e   : > { %22227 = vmatprep.subr.mxu0 %v24218_v34  ;;  %22248 = vmatprep.subr.mxu1 %v3501_v6 }
 0x32f   : > { %22228 = vmatpush3.msra.mxu0 %v24218_v34  ;;  %22249 = vmatpush3.msra.mxu1 %v3501_v6 }
 0x330   : > { %22230 = vmatmul.mubr.f32.vlgmr.msra.gmra.mxu0 %v2947_v36  ;;  %22239 = vmatprep.subr.mxu0 %v24411_v4 }
 0x331   : > { %22240 = vmatpush3.msra.mxu0 %v24411_v4  ;;  %22243 = vmatprep.mubr.f32.mxu0 %v24182_v24 }
 0x332   : > { %22241 = vmatprep.subr.mxu0 %v24417_v33  ;;  %22250 = vmatprep.mubr.f32.mxu1 %v24160_v9 }
 0x333   : > { %22242 = vmatpush3.msra.mxu0 %v24417_v33  ;;  %22251 = vmatmul.mubr.f32.vlgmr.msra.gmra.mxu1 %v24162_v10 }
 0x334   : > { %22244 = vmatmul.mubr.f32.vlgmr.msra.gmra.mxu0 %v24184_v25  ;;  %22253 = vmatprep.subr.mxu0 %v3491_v26 }
 0x335   : > { %22254 = vmatpush3.msra.mxu0 %v3491_v26  ;;  %22260 = vmatprep.subr.mxu1 %v24411_v4 }
 0x336   : > { %22255 = vmatprep.subr.mxu0 %v3498_v50  ;;  %22261 = vmatpush3.msra.mxu1 %v24411_v4 }
 0x337   : > { %22256 = vmatpush3.msra.mxu0 %v3498_v50  ;;  %22257 = vmatprep.mubr.f32.mxu0 %v24166_v13 }
 0x338   : > { %22262 = vmatprep.subr.mxu1 %v24417_v33  ;;  %22258 = vmatmul.mubr.f32.vlgmr.msra.gmra.mxu0 %v24170_v14 }
 0x339   : > { %22263 = vmatpush3.msra.mxu1 %v24417_v33  ;;  %22264 = vmatprep.mubr.f32.mxu1 %v24173_v17 }
 0x33a   : > { %22267 = vmatprep.subr.mxu0 %v24420_v49  ;;  %22265 = vmatmul.mubr.f32.vlgmr.msra.gmra.mxu1 %v24176_v18 }
 0x33b   : > { %22268 = vmatpush3.msra.mxu0 %v24420_v49  ;;  %22274 = vmatprep.subr.mxu1 %v24411_v4 }
 0x33c   : > { %22269 = vmatprep.subr.mxu0 %v3499_v61  ;;  %22275 = vmatpush3.msra.mxu1 %v24411_v4 }
 0x33d   : > { %22270 = vmatpush3.msra.mxu0 %v3499_v61  ;;  %22271 = vmatprep.mubr.f32.mxu0 %v24160_v9 }
 0x33e   : > { %22276 = vmatprep.subr.mxu1 %v24417_v33  ;;  %22272 = vmatmul.mubr.f32.vlgmr.msra.gmra.mxu0 %v24162_v10 }
 0x33f   : > { %22277 = vmatpush3.msra.mxu1 %v24417_v33  ;;  %22278 = vmatprep.mubr.f32.mxu1 %v24160_v9 }
 0x340   : > { %22279 = vmatmul.mubr.f32.vlgmr.msra.gmra.mxu1 %v24162_v10  ;;  %22288 = vmatprep.subr.mxu1 %v24220_v35 }
 0x341   : > { %22289 = vmatpush3.msra.mxu1 %v24220_v35  ;;  %22281 = vmatprep.subr.mxu0 %v24194_v28 }
 0x342   : > { %22290 = vmatprep.subr.mxu1 %v24225_v37  ;;  %22282 = vmatpush3.msra.mxu0 %v24194_v28 }
 0x343   : > { %22291 = vmatpush3.msra.mxu1 %v24225_v37  ;;  %22283 = vmatprep.subr.mxu0 %v24198_v29 }
 0x344   : > { %22302 = vmatprep.subr.mxu1 %v24194_v28  ;;  %22284 = vmatpush3.msra.mxu0 %v24198_v29 }
 0x345   : > { %22295 = vmatprep.subr.mxu0 %v24204_v30 }
 0x3e0   : > { %v22210_v4 = vpop.f32.mrf.mxu1 }
 0x3e2   : > { %v24474_v7 = vpop.f32.mrf.mxu1 }
 0x3e4   : > { %v22224_v11 = vpop.f32.mrf.mxu1 }
 0x3e6   : > { %v24476_v16 = vpop.f32.mrf.mxu1 }
 0x3e8   : > { %v22203_v15 = vpop.f32.mrf.mxu0  ;;  %v22238_v26 = vpop.f32.mrf.mxu1 }
 0x3e9   : > { %v3041_v19 = vadd.f32 %v22210_v4, %v22203_v15  ;;  %v4385_v15 = vmul.f32 %v24235_v51, %v24150_v0 }
 0x3ea   : > { %v24478_v21 = vpop.f32.mrf.mxu0  ;;  %v24482_v46 = vpop.f32.mrf.mxu1 }
 0x3ec   : > { %v22217_v22 = vpop.f32.mrf.mxu0 }
 0x3ed   : > { %v3124_v33 = vadd.f32 %v22217_v22, %v3041_v19 }
 0x3ee   : > { %v24480_v36 = vpop.f32.mrf.mxu0 }
 0x3ef   : > { %v3207_v38 = vadd.f32 %v22224_v11, %v3124_v33 }
 0x3f0   : > { %v22231_v45 = vpop.f32.mrf.mxu0 }
 0x3f1   : > { %v3290_v49 = vadd.f32 %v22231_v45, %v3207_v38  ;;  %v24492_v38 = vand.u32 4294901760, %v4385_v15  ;;  %v4384_v45 = vmul.f32 %v24241_v59, %v24154_v2 }
 0x3f2   : > { %v24484_v50 = vpop.f32.mrf.mxu0 }
 0x3f3   : > { %v24486_v53 = vadd.f32 %v22238_v26, %v3290_v49  ;;  %v22252_v56 = vpop.f32.mrf.mxu1  ;;  %v24498_v0 = vand.u32 4294901760, %v4384_v45 }
 0x3f4   : > { %v22245_v57 = vpop.f32.mrf.mxu0 }
 0x3f5   : > { %v5403_v58 = vsub.f32 %v24486_v53, %v24398_v40  ;;  %v3538_v61 = vpop.f32.mrf.mxu1  ;;  %v3545_v62 = vadd.f32 %v22252_v56, %v22245_v57  ;;  %v4510_v2 = vsub.f32 %v4384_v45, %v24498_v0 }
 0x3f6   : > { %v3447_v60 = vpop.f32.mrf.mxu0 }
 0x3f7   : > { %v3539_v55 = vadd.f32 %v3538_v61, %v3447_v60 }
 0x3f8   : > { %v22259_v63 = vpop.f32.mrf.mxu0 }
 0x3f9   : > { %v3628_v1 = vadd.f32 %v22259_v63, %v3545_v62 }
 0x3fa   : > { %v22266_v3 = vpop.f32.mrf.mxu1  ;;  %v3620_v6 = vpop.f32.mrf.mxu0 }
 0x3fb   : > { %v3711_v4 = vadd.f32 %v22266_v3, %v3628_v1  ;;  %v3621_v11 = vadd.f32 %v3620_v6, %v3539_v55  ;;  %v4503_v55 = vsub.f32 %v4385_v15, %v24492_v38 }
 0x3fc   : > { %v3702_v19 = vpop.f32.mrf.mxu1 }
 0x3fd   : > { %v3703_v22 = vadd.f32 %v3702_v19, %v3621_v11 }
 0x3fe   : > { %v22273_v26 = vpop.f32.mrf.mxu0 }
 0x3ff   : > { %v3794_v33 = vadd.f32 %v22273_v26, %v3711_v4  ;;  %v24501_v4 = vand.u32 4294901760, %v4503_v55  ;;  %v4511_v26 = vand.u32 4294901760, %v4510_v2 }
 0x400   : > { %v22280_v49 = vpop.f32.mrf.mxu1  ;;  %v3787_v56 = vpop.f32.mrf.mxu0 }
 0x401   : > { %v3873_v57 = vadd.f32 %v22280_v49, %v3794_v33  ;;  %v3788_v60 = vadd.f32 %v3787_v56, %v3703_v22  ;;  %v4505_v22 = vsub.f32 %v4503_v55, %v24501_v4 }
 0x402   : > { %v3866_v61 = vpop.f32.mrf.mxu1 }
 0x403   : > { %v3880_v62 = vsel %vm333_vm0, %v3873_v57, 0  ;;  %v3867_v63 = vadd.f32 %v3866_v61, %v3788_v60  ;;  %v4506_v56 = vand.u32 4294901760, %v4505_v22  ;;  %v4512_v57 = vsub.f32 %v4510_v2, %v4511_v26 }
 0x404   : > { %v3959_v51 = vand.u32 4294901760, %v3880_v62 }
 0x405   : > { %v3877_v1 = vsel %vm333_vm0, %v3867_v63, 0  ;;  %v4513_v60 = vand.u32 4294901760, %v4512_v57 }
 0x406   : > { %v3960_v3 = vsub.f32 %v3880_v62, %v3959_v51  ;;  %v3949_v6 = vand.u32 4294901760, %v3877_v1 }
 0x408   : > { %v3950_v59 = vsub.f32 %v3877_v1, %v3949_v6  ;;  %22292 = vmatprep.mubr.f32.mxu1 %v3949_v6  ;;  %v3961_v11 = vand.u32 4294901760, %v3960_v3 }
 0x409   : > { %22293 = vmatmul.mubr.f32.vlgmr.msra.gmra.mxu1 %v3959_v51 }
 0x40a   : > { %22303 = vmatpush3.msra.mxu1 %v24194_v28  ;;  %v3951_v19 = vand.u32 4294901760, %v3950_v59  ;;  %v3962_v15 = vsub.f32 %v3960_v3, %v3961_v11 }
 0x40b   : > { %22304 = vmatprep.subr.mxu1 %v24198_v29 }
 0x40c   : > { %22305 = vmatpush3.msra.mxu1 %v24198_v29  ;;  %22306 = vmatprep.mubr.f32.mxu1 %v3951_v19  ;;  %v3952_v33 = vsub.f32 %v3950_v59, %v3951_v19  ;;  %v3963_v49 = vand.u32 4294901760, %v3962_v15 }
 0x40d   : > { %22307 = vmatmul.mubr.f32.vlgmr.msra.gmra.mxu1 %v3961_v11  ;;  %22316 = vmatprep.subr.mxu1 %v24194_v28 }
 0x40e   : > { %22317 = vmatpush3.msra.mxu1 %v24194_v28  ;;  %22320 = vmatprep.mubr.f32.mxu1 %v3949_v6  ;;  %v3953_v45 = vand.u32 4294901760, %v3952_v33 }
 0x40f   : > { %22318 = vmatprep.subr.mxu1 %v24198_v29 }
 0x410   : > { %22285 = vmatprep.mubr.f32.mxu0 %v3953_v45  ;;  %22319 = vmatpush3.msra.mxu1 %v24198_v29 }
 0x411   : > { %22286 = vmatmul.mubr.f32.vlgmr.msra.gmra.mxu0 %v3963_v49  ;;  %22321 = vmatmul.mubr.f32.vlgmr.msra.gmra.mxu1 %v3959_v51 }
 0x412   : > { %22296 = vmatpush3.msra.mxu0 %v24204_v30  ;;  %22299 = vmatprep.mubr.f32.mxu0 %v3950_v59 }
 0x413   : > { %22297 = vmatprep.subr.mxu0 %v24210_v31  ;;  %22330 = vmatprep.subr.mxu1 %v4506_v56 }
 0x414   : > { %22298 = vmatpush3.msra.mxu0 %v24210_v31  ;;  %22331 = vmatpush3.msra.mxu1 %v4506_v56 }
 0x415   : > { %22300 = vmatmul.mubr.f32.vlgmr.msra.gmra.mxu0 %v3960_v3  ;;  %22309 = vmatprep.subr.mxu0 %v24213_v32 }
 0x416   : > { %22310 = vmatpush3.msra.mxu0 %v24213_v32  ;;  %22313 = vmatprep.mubr.f32.mxu0 %v3949_v6 }
 0x417   : > { %22311 = vmatprep.subr.mxu0 %v24218_v34  ;;  %22332 = vmatprep.subr.mxu1 %v4513_v60 }
 0x418   : > { %22312 = vmatpush3.msra.mxu0 %v24218_v34  ;;  %22333 = vmatpush3.msra.mxu1 %v4513_v60 }
 0x419   : > { %22314 = vmatmul.mubr.f32.vlgmr.msra.gmra.mxu0 %v3959_v51  ;;  %22323 = vmatprep.subr.mxu0 %v24492_v38 }
 0x41a   : > { %22324 = vmatpush3.msra.mxu0 %v24492_v38  ;;  %22327 = vmatprep.mubr.f32.mxu0 %v24182_v24 }
 0x41b   : > { %22325 = vmatprep.subr.mxu0 %v24498_v0  ;;  %22334 = vmatprep.mubr.f32.mxu1 %v24160_v9 }
 0x41c   : > { %22326 = vmatpush3.msra.mxu0 %v24498_v0  ;;  %22335 = vmatmul.mubr.f32.vlgmr.msra.gmra.mxu1 %v24162_v10 }
 0x41d   : > { %22328 = vmatmul.mubr.f32.vlgmr.msra.gmra.mxu0 %v24184_v25  ;;  %22337 = vmatprep.subr.mxu0 %v4503_v55 }
 0x41e   : > { %22338 = vmatpush3.msra.mxu0 %v4503_v55  ;;  %22344 = vmatprep.subr.mxu1 %v24492_v38 }
 0x41f   : > { %22339 = vmatprep.subr.mxu0 %v4510_v2  ;;  %22345 = vmatpush3.msra.mxu1 %v24492_v38 }
 0x420   : > { %22340 = vmatpush3.msra.mxu0 %v4510_v2  ;;  %22341 = vmatprep.mubr.f32.mxu0 %v24166_v13 }
 0x421   : > { %22346 = vmatprep.subr.mxu1 %v24498_v0  ;;  %22342 = vmatmul.mubr.f32.vlgmr.msra.gmra.mxu0 %v24170_v14 }
 0x422   : > { %22347 = vmatpush3.msra.mxu1 %v24498_v0  ;;  %22348 = vmatprep.mubr.f32.mxu1 %v24173_v17 }
 0x423   : > { %22351 = vmatprep.subr.mxu0 %v24501_v4  ;;  %22349 = vmatmul.mubr.f32.vlgmr.msra.gmra.mxu1 %v24176_v18 }
 0x424   : > { %22352 = vmatpush3.msra.mxu0 %v24501_v4  ;;  %22358 = vmatprep.subr.mxu1 %v24492_v38 }
 0x425   : > { %22353 = vmatprep.subr.mxu0 %v4511_v26  ;;  %22359 = vmatpush3.msra.mxu1 %v24492_v38 }
 0x426   : > { %22354 = vmatpush3.msra.mxu0 %v4511_v26  ;;  %22355 = vmatprep.mubr.f32.mxu0 %v24160_v9 }
 0x427   : > { %22360 = vmatprep.subr.mxu1 %v24498_v0  ;;  %22356 = vmatmul.mubr.f32.vlgmr.msra.gmra.mxu0 %v24162_v10 }
 0x428   : > { %22361 = vmatpush3.msra.mxu1 %v24498_v0  ;;  %22362 = vmatprep.mubr.f32.mxu1 %v24160_v9 }
 0x429   : > { %22363 = vmatmul.mubr.f32.vlgmr.msra.gmra.mxu1 %v24162_v10  ;;  %22372 = vmatprep.subr.mxu1 %v24220_v35 }
 0x42a   : > { %22373 = vmatpush3.msra.mxu1 %v24220_v35  ;;  %22365 = vmatprep.subr.mxu0 %v24194_v28 }
 0x42b   : > { %22374 = vmatprep.subr.mxu1 %v24225_v37  ;;  %22366 = vmatpush3.msra.mxu0 %v24194_v28 }
 0x42c   : > { %22375 = vmatpush3.msra.mxu1 %v24225_v37  ;;  %22367 = vmatprep.subr.mxu0 %v24198_v29 }
 0x42d   : > { %22386 = vmatprep.subr.mxu1 %v24194_v28  ;;  %22368 = vmatpush3.msra.mxu0 %v24198_v29 }
 0x42e   : > { %22379 = vmatprep.subr.mxu0 %v24204_v30 }
 0x4c9   : > { %v22294_v38 = vpop.f32.mrf.mxu1 }
 0x4cb   : > { %v24555_v61 = vpop.f32.mrf.mxu1 }
 0x4cd   : > { %v22308_v62 = vpop.f32.mrf.mxu1 }
 0x4cf   : > { %v24557_v55 = vpop.f32.mrf.mxu1 }
 0x4d1   : > { %v22287_v63 = vpop.f32.mrf.mxu0  ;;  %v22322_v3 = vpop.f32.mrf.mxu1 }
 0x4d2   : > { %v4053_v0 = vadd.f32 %v22294_v38, %v22287_v63 }
 0x4d3   : > { %v24559_v51 = vpop.f32.mrf.mxu0  ;;  %v24563_v11 = vpop.f32.mrf.mxu1 }
 0x4d5   : > { %v22301_v1 = vpop.f32.mrf.mxu0 }
 0x4d6   : > { %v4136_v6 = vadd.f32 %v22301_v1, %v4053_v0 }
 0x4d7   : > { %v24561_v4 = vpop.f32.mrf.mxu0 }
 0x4d8   : > { %v4219_v2 = vadd.f32 %v22308_v62, %v4136_v6  ;;  %v5421_v62 = vadd.f32 0.0001, %v24407_v47 }
 0x4d9   : > { %v22315_v59 = vpop.f32.mrf.mxu0 }
 0x4da   : > { %v4302_v19 = vadd.f32 %v22315_v59, %v4219_v2 }
 0x4db   : > { %v24565_v15 = vpop.f32.mrf.mxu0 }
 0x4dc   : > { %v4381_v22 = vadd.f32 %v22322_v3, %v4302_v19  ;;  %v22336_v26 = vpop.f32.mrf.mxu1 }
 0x4dd   : > { %v22329_v33 = vpop.f32.mrf.mxu0 }
 0x4de   : > { %v5405_v45 = vsub.f32 %v4381_v22, %v24400_v41  ;;  %v4550_v56 = vpop.f32.mrf.mxu1  ;;  %v4557_v60 = vadd.f32 %v22336_v26, %v22329_v33  ;;  %v24575_v22 = vld [vmem:[%s24143_s6 + $0x18] sm:$0xff]  ;;  %v24581_v33 = vld [vmem:[%s24143_s6 + $0x10] sm:$0xff] }
 0x4df   : > { %v4459_v49 = vpop.f32.mrf.mxu0 }
 0x4e0   : > { %v5423_v57 = vadd.f32 %v5405_v45, %v5403_v58  ;;  %v4551_v0 = vadd.f32 %v4550_v56, %v4459_v49  ;;  %v24578_v58 = vand.u32 4294901760, %v24575_v22 }
 0x4e1   : > { %v22343_v38 = vpop.f32.mrf.mxu0 }
 0x4e2   : > { %v5425_v63 = vadd.f32 0.0009, %v5423_v57  ;;  %v4640_v1 = vadd.f32 %v22343_v38, %v4557_v60  ;;  %v5581_v38 = vsub.f32 %v24575_v22, %v24578_v58 }
 0x4e3   : > { %v22350_v3 = vpop.f32.mrf.mxu1  ;;  %v4632_v6 = vpop.f32.mrf.mxu0 }
 0x4e4   : > { %v24572_v2 = vmul.f32 %v5425_v63, %v5421_v62  ;;  %v4723_v41 = vadd.f32 %v22350_v3, %v4640_v1  ;;  %v4633_v59 = vadd.f32 %v4632_v6, %v4551_v0  ;;  %v24587_v62 = vand.u32 4294901760, %v24581_v33 }
 0x4e5   : > { %v4714_v19 = vpop.f32.mrf.mxu1  ;;  %v24590_v6 = vand.u32 4294901760, %v5581_v38 }
 0x4e6   : > { %v4715_v43 = vadd.f32 %v4714_v19, %v4633_v59  ;;  %23750 = vrcp.f32 %v24572_v2 }
 0x4e7   : > { %v22357_v40 = vpop.f32.mrf.mxu0 }
 0x4e8   : > { %v4806_v53 = vadd.f32 %v22357_v40, %v4723_v41 }
 0x4e9   : > { %v22364_v47 = vpop.f32.mrf.mxu1  ;;  %v4799_v26 = vpop.f32.mrf.mxu0 }
 0x4ea   : > { %v4885_v45 = vadd.f32 %v22364_v47, %v4806_v53  ;;  %v4800_v49 = vadd.f32 %v4799_v26, %v4715_v43  ;;  %v5588_v43 = vsub.f32 %v24581_v33, %v24587_v62  ;;  %v5583_v53 = vsub.f32 %v5581_v38, %v24590_v6 }
 0x4eb   : > { %v4878_v56 = vpop.f32.mrf.mxu1 }
 0x4ec   : > { %v4892_v57 = vsel %vm333_vm0, %v4885_v45, 0  ;;  %v4879_v60 = vadd.f32 %v4878_v56, %v4800_v49  ;;  %v5589_v47 = vand.u32 4294901760, %v5588_v43  ;;  %v5584_v56 = vand.u32 4294901760, %v5583_v53 }
 0x4ed   : > { %v4971_v63 = vand.u32 4294901760, %v4892_v57 }
 0x4ee   : > { %v4889_v0 = vsel %vm333_vm0, %v4879_v60, 0 }
 0x4ef   : > { %v4972_v1 = vsub.f32 %v4892_v57, %v4971_v63  ;;  %v4961_v3 = vand.u32 4294901760, %v4889_v0  ;;  %v5590_v57 = vsub.f32 %v5588_v43, %v5589_v47 }
 0x4f1   : > { %v4962_v41 = vsub.f32 %v4889_v0, %v4961_v3  ;;  %22376 = vmatprep.mubr.f32.mxu1 %v4961_v3  ;;  %v4973_v59 = vand.u32 4294901760, %v4972_v1  ;;  %v5591_v60 = vand.u32 4294901760, %v5590_v57 }
 0x4f2   : > { %22377 = vmatmul.mubr.f32.vlgmr.msra.gmra.mxu1 %v4971_v63 }
 0x4f3   : > { %22387 = vmatpush3.msra.mxu1 %v24194_v28  ;;  %v4963_v19 = vand.u32 4294901760, %v4962_v41  ;;  %v4974_v40 = vsub.f32 %v4972_v1, %v4973_v59 }
 0x4f4   : > { %22388 = vmatprep.subr.mxu1 %v24198_v29 }
 0x4f5   : > { %22389 = vmatpush3.msra.mxu1 %v24198_v29  ;;  %22390 = vmatprep.mubr.f32.mxu1 %v4963_v19  ;;  %v4964_v26 = vsub.f32 %v4962_v41, %v4963_v19  ;;  %v4975_v49 = vand.u32 4294901760, %v4974_v40 }
 0x4f6   : > { %22391 = vmatmul.mubr.f32.vlgmr.msra.gmra.mxu1 %v4973_v59  ;;  %22400 = vmatprep.subr.mxu1 %v24194_v28 }
 0x4f7   : > { %22401 = vmatpush3.msra.mxu1 %v24194_v28  ;;  %22404 = vmatprep.mubr.f32.mxu1 %v4961_v3  ;;  %v4965_v45 = vand.u32 4294901760, %v4964_v26 }
 0x4f8   : > { %22402 = vmatprep.subr.mxu1 %v24198_v29 }
 0x4f9   : > { %22369 = vmatprep.mubr.f32.mxu0 %v4965_v45  ;;  %22403 = vmatpush3.msra.mxu1 %v24198_v29 }
 0x4fa   : > { %22370 = vmatmul.mubr.f32.vlgmr.msra.gmra.mxu0 %v4975_v49  ;;  %22405 = vmatmul.mubr.f32.vlgmr.msra.gmra.mxu1 %v4971_v63 }
 0x4fb   : > { %22380 = vmatpush3.msra.mxu0 %v24204_v30  ;;  %22383 = vmatprep.mubr.f32.mxu0 %v4962_v41 }
 0x4fc   : > { %22381 = vmatprep.subr.mxu0 %v24210_v31  ;;  %22414 = vmatprep.subr.mxu1 %v5584_v56 }
 0x4fd   : > { %22382 = vmatpush3.msra.mxu0 %v24210_v31  ;;  %22415 = vmatpush3.msra.mxu1 %v5584_v56 }
 0x4fe   : > { %22384 = vmatmul.mubr.f32.vlgmr.msra.gmra.mxu0 %v4972_v1  ;;  %22393 = vmatprep.subr.mxu0 %v24213_v32  ;;  %v3035_v1 = vadd.f32 %v24474_v7, %v24478_v21 }
 0x4ff   : > { %22394 = vmatpush3.msra.mxu0 %v24213_v32  ;;  %22397 = vmatprep.mubr.f32.mxu0 %v4961_v3 }
 0x500   : > { %22395 = vmatprep.subr.mxu0 %v24218_v34  ;;  %22416 = vmatprep.subr.mxu1 %v5591_v60 }
 0x501   : > { %22396 = vmatpush3.msra.mxu0 %v24218_v34  ;;  %22417 = vmatpush3.msra.mxu1 %v5591_v60 }
 0x502   : > { %22398 = vmatmul.mubr.f32.vlgmr.msra.gmra.mxu0 %v4971_v63  ;;  %22407 = vmatprep.subr.mxu0 %v24578_v58  ;;  %v4047_v63 = vadd.f32 %v24555_v61, %v24559_v51 }
 0x503   : > { %22408 = vmatpush3.msra.mxu0 %v24578_v58  ;;  %22411 = vmatprep.mubr.f32.mxu0 %v24182_v24 }
 0x504   : > { %22409 = vmatprep.subr.mxu0 %v24587_v62  ;;  %22418 = vmatprep.mubr.f32.mxu1 %v24160_v9  ;;  %v4129_v3 = vadd.f32 %v24561_v4, %v4047_v63 }
 0x505   : > { %22410 = vmatpush3.msra.mxu0 %v24587_v62  ;;  %22419 = vmatmul.mubr.f32.vlgmr.msra.gmra.mxu1 %v24162_v10 }
 0x506   : > { %22412 = vmatmul.mubr.f32.vlgmr.msra.gmra.mxu0 %v24184_v25  ;;  %22421 = vmatprep.subr.mxu0 %v5581_v38 }
 0x507   : > { %22422 = vmatpush3.msra.mxu0 %v5581_v38  ;;  %22428 = vmatprep.subr.mxu1 %v24578_v58  ;;  %v1013_v38 = vadd.f32 %v24305_v39, %v24309_v44  ;;  %v4211_v39 = vadd.f32 %v24557_v55, %v4129_v3 }
 0x508   : > { %22423 = vmatprep.subr.mxu0 %v5588_v43  ;;  %22429 = vmatpush3.msra.mxu1 %v24578_v58 }
 0x509   : > { %22424 = vmatpush3.msra.mxu0 %v5588_v43  ;;  %22425 = vmatprep.mubr.f32.mxu0 %v24166_v13  ;;  %v1095_v0 = vadd.f32 %v24311_v48, %v1013_v38  ;;  %v3117_v43 = vadd.f32 %v24480_v36, %v3035_v1  ;;  %v4296_v48 = vadd.f32 %v24565_v15, %v4211_v39 }
 0x50a   : > { %22430 = vmatprep.subr.mxu1 %v24587_v62  ;;  %22426 = vmatmul.mubr.f32.vlgmr.msra.gmra.mxu0 %v24170_v14 }
 0x50b   : > { %22431 = vmatpush3.msra.mxu1 %v24587_v62  ;;  %22432 = vmatprep.mubr.f32.mxu1 %v24173_v17  ;;  %v4375_v36 = vadd.f32 %v24563_v11, %v4296_v48 }
 0x50c   : > { %22435 = vmatprep.subr.mxu0 %v24590_v6  ;;  %22433 = vmatmul.mubr.f32.vlgmr.msra.gmra.mxu1 %v24176_v18 }
 0x50d   : > { %22436 = vmatpush3.msra.mxu0 %v24590_v6  ;;  %22442 = vmatprep.subr.mxu1 %v24578_v58 }
 0x50e   : > { %22437 = vmatprep.subr.mxu0 %v5589_v47  ;;  %22443 = vmatpush3.msra.mxu1 %v24578_v58  ;;  %v2023_v58 = vadd.f32 %v24384_v5, %v24388_v12  ;;  %v1177_v5 = vadd.f32 %v24307_v42, %v1095_v0  ;;  %v3199_v12 = vadd.f32 %v24476_v16, %v3117_v43 }
 0x50f   : > { %22438 = vmatpush3.msra.mxu0 %v5589_v47  ;;  %22439 = vmatprep.mubr.f32.mxu0 %v24160_v9 }
 0x510   : > { %22444 = vmatprep.subr.mxu1 %v24587_v62  ;;  %22440 = vmatmul.mubr.f32.vlgmr.msra.gmra.mxu0 %v24162_v10  ;;  %v3284_v21 = vadd.f32 %v24484_v50, %v3199_v12 }
 0x511   : > { %22445 = vmatpush3.msra.mxu1 %v24587_v62  ;;  %22446 = vmatprep.mubr.f32.mxu1 %v24160_v9  ;;  %v2105_v62 = vadd.f32 %v24390_v20, %v2023_v58  ;;  %v1262_v20 = vadd.f32 %v24315_v54, %v1177_v5 }
 0x512   : > { %22447 = vmatmul.mubr.f32.vlgmr.msra.gmra.mxu1 %v24162_v10  ;;  %22456 = vmatprep.subr.mxu1 %v24220_v35  ;;  %v3363_v42 = vadd.f32 %v24482_v46, %v3284_v21 }
 0x513   : > { %22457 = vmatpush3.msra.mxu1 %v24220_v35  ;;  %22449 = vmatprep.subr.mxu0 %v24194_v28  ;;  %v2187_v6 = vadd.f32 %v24386_v8, %v2105_v62  ;;  %v1341_v8 = vadd.f32 %v24313_v52, %v1262_v20 }
 0x514   : > { %22458 = vmatprep.subr.mxu1 %v24225_v37  ;;  %22450 = vmatpush3.msra.mxu0 %v24194_v28 }
 0x515   : > { %22459 = vmatpush3.msra.mxu1 %v24225_v37  ;;  %22451 = vmatprep.subr.mxu0 %v24198_v29  ;;  %v2272_v44 = vadd.f32 %v24394_v27, %v2187_v6  ;;  %v5396_v51 = vmul.f32 %v1341_v8, %v1341_v8  ;;  %v25940_v6 = vld [vmem:[#allocation11_spill] sm:$0xff] }
 0x516   : > { %22470 = vmatprep.subr.mxu1 %v24194_v28  ;;  %22452 = vmatpush3.msra.mxu0 %v24198_v29  ;;  %v5409_v43 = vmul.f32 2.0, %v25940_v6 }
 0x517   : > { %22463 = vmatprep.subr.mxu0 %v24204_v30  ;;  %v2351_v7 = vadd.f32 %v24392_v23, %v2272_v44  ;;  %v5402_v16 = vsub.f32 %v3363_v42, %v5396_v51 }
 0x519   : > { %v5398_v61 = vmul.f32 %v2351_v7, %v2351_v7  ;;  %v5400_v62 = vmul.f32 %v2351_v7, %v1341_v8 }
 0x51b   : > { %v5404_v27 = vsub.f32 %v4375_v36, %v5398_v61  ;;  %v5418_v15 = vadd.f32 %v5398_v61, %v5396_v51  ;;  %v5408_v2 = vmul.f32 2.0, %v5400_v62  ;;  %v5411_v61 = vadd.f32 0.0001, %v5409_v43 }
 0x51d   : > { %v5422_v54 = vadd.f32 %v5404_v27, %v5402_v16  ;;  %v5420_v40 = vadd.f32 0.0001, %v5418_v15  ;;  %v5410_v27 = vadd.f32 0.0001, %v5408_v2 }
 0x51f   : > { %v5424_v23 = vadd.f32 0.0009, %v5422_v54 }
 0x521   : > { %v5426_v11 = vmul.f32 %v5424_v23, %v5420_v40  ;;  %v24674_v23 = vld [vmem:[%s24232_s28 + $0x18] sm:$0xff] }
 0x523   : > { %23752 = vrcp.f32 %v5426_v11 }
 0x5b2   : > { %v22378_v55 = vpop.f32.mrf.mxu1 }
 0x5b4   : > { %v5058_v4 = vpop.f32.mrf.mxu1 }
 0x5b6   : > { %v22392_v41 = vpop.f32.mrf.mxu1 }
 0x5b8   : > { %v5222_v19 = vpop.f32.mrf.mxu1 }
 0x5ba   : > { %v22371_v59 = vpop.f32.mrf.mxu0  ;;  %v22406_v47 = vpop.f32.mrf.mxu1 }
 0x5bb   : > { %v5065_v52 = vadd.f32 %v22378_v55, %v22371_v59 }
 0x5bc   : > { %v4967_v50 = vpop.f32.mrf.mxu0  ;;  %v5386_v60 = vpop.f32.mrf.mxu1 }
 0x5bd   : > { %v5059_v26 = vadd.f32 %v5058_v4, %v4967_v50 }
 0x5be   : > { %v22385_v53 = vpop.f32.mrf.mxu0 }
 0x5bf   : > { %v5148_v46 = vadd.f32 %v22385_v53, %v5065_v52 }
 0x5c0   : > { %v5140_v45 = vpop.f32.mrf.mxu0 }
 0x5c1   : > { %v5141_v49 = vadd.f32 %v5140_v45, %v5059_v26  ;;  %v5231_v56 = vadd.f32 %v22392_v41, %v5148_v46  ;;  %v24682_v26 = vand.u32 4294901760, %v24674_v23 }
 0x5c2   : > { %v22399_v57 = vpop.f32.mrf.mxu0 }
 0x5c3   : > { %v5314_v58 = vadd.f32 %v22399_v57, %v5231_v56  ;;  %v5223_v38 = vadd.f32 %v5222_v19, %v5141_v49  ;;  %v23751_v19 = vpop.eup %23750  ;;  %v24687_v57 = vld [vmem:[%s24232_s28 + $0x10] sm:$0xff] }
 0x5c4   : > { %v5307_v63 = vpop.f32.mrf.mxu0  ;;  %v23753_v11 = vpop.eup %23752 }
 0x5c5   : > { %v5393_v0 = vadd.f32 %v22406_v47, %v5314_v58  ;;  %v5308_v1 = vadd.f32 %v5307_v63, %v5223_v38  ;;  %v22420_v3 = vpop.f32.mrf.mxu1 }
 0x5c6   : > { %v22413_v5 = vpop.f32.mrf.mxu0 }
 0x5c7   : > { %v5407_v39 = vsub.f32 %v5393_v0, %v25940_v6  ;;  %v5387_v44 = vadd.f32 %v5386_v60, %v5308_v1  ;;  %v5628_v20 = vpop.f32.mrf.mxu1  ;;  %v5635_v36 = vadd.f32 %v22420_v3, %v22413_v5  ;;  %v24695_v1 = vsub.f32 %v24674_v23, %v24682_v26 }
 0x5c8   : > { %v5537_v12 = vpop.f32.mrf.mxu0  ;;  %v24700_v5 = vand.u32 4294901760, %v24687_v57 }
 0x5c9   : > { %v5413_v48 = vmul.f32 2.0, %v5407_v39  ;;  %v5406_v21 = vsub.f32 %v5387_v44, %v5400_v62  ;;  %v5629_v55 = vadd.f32 %v5628_v20, %v5537_v12 }
 0x5ca   : > { %v22427_v7 = vpop.f32.mrf.mxu0 }
 0x5cb   : > { %v5415_v8 = vadd.f32 0.0009, %v5413_v48  ;;  %v5412_v42 = vmul.f32 2.0, %v5406_v21  ;;  %v5718_v51 = vadd.f32 %v22427_v7, %v5635_v36  ;;  %v24705_v21 = vand.u32 4294901760, %v24695_v1 }
 0x5cc   : > { %v22434_v4 = vpop.f32.mrf.mxu1  ;;  %v5710_v16 = vpop.f32.mrf.mxu0  ;;  %v6598_v36 = vsub.f32 %v24687_v57, %v24700_v5 }
 0x5cd   : > { %v5414_v54 = vadd.f32 0.0009, %v5412_v42  ;;  %v5801_v41 = vadd.f32 %v22434_v4, %v5718_v51  ;;  %v5711_v15 = vadd.f32 %v5710_v16, %v5629_v55  ;;  %v5417_v59 = vmul.f32 %v5415_v8, %v5411_v61 }
 0x5ce   : > { %v5792_v50 = vpop.f32.mrf.mxu1  ;;  %v6593_v55 = vsub.f32 %v24695_v1, %v24705_v21  ;;  %v6599_v51 = vand.u32 4294901760, %v6598_v36 }
 0x5cf   : > { %v5793_v40 = vadd.f32 %v5792_v50, %v5711_v15  ;;  %v5416_v52 = vmul.f32 %v5414_v54, %v5410_v27  ;;  %v5431_v53 = vmul.f32 %v23751_v19, %v5417_v59 }
 0x5d0   : > { %v22441_v47 = vpop.f32.mrf.mxu0  ;;  %v6594_v54 = vand.u32 4294901760, %v6593_v55 }
 0x5d1   : > { %v5884_v46 = vadd.f32 %v22441_v47, %v5801_v41  ;;  %v5429_v45 = vmul.f32 %v23753_v11, %v5416_v52  ;;  %5433 = vst.msk [vmem:[%s24679_s15 + $0x8] sm:$0xff] %vm333_vm0, %v5431_v53  ;;  %v5435_v62 = vsel %vm333_vm0, %v5431_v53, inf  ;;  %v5447_v2 = vsel %vm333_vm0, %v5431_v53, -inf }
 0x5d2   : > { %v22448_v49 = vpop.f32.mrf.mxu1  ;;  %v5877_v56 = vpop.f32.mrf.mxu0  ;;  %v6600_v41 = vsub.f32 %v6598_v36, %v6599_v51 }
 0x5d3   : > { %v5963_v60 = vadd.f32 %v22448_v49, %v5884_v46  ;;  %v5878_v58 = vadd.f32 %v5877_v56, %v5793_v40  ;;  %v5434_v38 = vsel %vm333_vm0, %v5429_v45, inf  ;;  %5432 = vst.msk [vmem:[%s24679_s15] sm:$0xff] %vm333_vm0, %v5429_v45  ;;  %v5446_v43 = vsel %vm333_vm0, %v5429_v45, -inf }
 0x5d4   : > { %v5956_v63 = vpop.f32.mrf.mxu1  ;;  %v5436_v0 = vmin.f32 %v5434_v38, %v5435_v62  ;;  %v5448_v48 = vmax.f32 %v5446_v43, %v5447_v2  ;;  %v6601_v15 = vand.u32 4294901760, %v6600_v41 }
 0x5d5   : > { %v5970_v3 = vsel %vm333_vm0, %v5963_v60, 0  ;;  %v5957_v6 = vadd.f32 %v5956_v63, %v5878_v58 }
 0x5d6   : > { %v6049_v39 = vand.u32 4294901760, %v5970_v3  ;;  %5437 = vmin.xlane.f32.xlu0 %v5436_v0 }
 0x5d7   : > { %v5967_v44 = vsel %vm333_vm0, %v5957_v6, 0 }
 0x5d8   : > { %v6050_v12 = vsub.f32 %v5970_v3, %v6049_v39  ;;  %v6039_v20 = vand.u32 4294901760, %v5967_v44 }
 0x5da   : > { %v6040_v61 = vsub.f32 %v5967_v44, %v6039_v20  ;;  %22460 = vmatprep.mubr.f32.mxu1 %v6039_v20  ;;  %5449 = vmax.xlane.f32.xlu0 %v5448_v48  ;;  %v6051_v7 = vand.u32 4294901760, %v6050_v12 }
 0x5db   : > { %22461 = vmatmul.mubr.f32.vlgmr.msra.gmra.mxu1 %v6049_v39 }
 0x5dc   : > { %22471 = vmatpush3.msra.mxu1 %v24194_v28  ;;  %v6041_v8 = vand.u32 4294901760, %v6040_v61  ;;  %v6052_v42 = vsub.f32 %v6050_v12, %v6051_v7 }
 0x5dd   : > { %22472 = vmatprep.subr.mxu1 %v24198_v29 }
 0x5de   : > { %22473 = vmatpush3.msra.mxu1 %v24198_v29  ;;  %22474 = vmatprep.mubr.f32.mxu1 %v6041_v8  ;;  %v6042_v27 = vsub.f32 %v6040_v61, %v6041_v8  ;;  %v6053_v16 = vand.u32 4294901760, %v6052_v42 }
 0x5df   : > { %22475 = vmatmul.mubr.f32.vlgmr.msra.gmra.mxu1 %v6051_v7  ;;  %22484 = vmatprep.subr.mxu1 %v24194_v28 }
 0x5e0   : > { %22485 = vmatpush3.msra.mxu1 %v24194_v28  ;;  %22488 = vmatprep.mubr.f32.mxu1 %v6039_v20  ;;  %v6043_v4 = vand.u32 4294901760, %v6042_v27 }
 0x5e1   : > { %22486 = vmatprep.subr.mxu1 %v24198_v29 }
 0x5e2   : > { %22453 = vmatprep.mubr.f32.mxu0 %v6043_v4  ;;  %22487 = vmatpush3.msra.mxu1 %v24198_v29 }
 0x5e3   : > { %22454 = vmatmul.mubr.f32.vlgmr.msra.gmra.mxu0 %v6053_v16  ;;  %22489 = vmatmul.mubr.f32.vlgmr.msra.gmra.mxu1 %v6049_v39 }
 0x5e4   : > { %22464 = vmatpush3.msra.mxu0 %v24204_v30  ;;  %22467 = vmatprep.mubr.f32.mxu0 %v6040_v61 }
 0x5e5   : > { %22465 = vmatprep.subr.mxu0 %v24210_v31  ;;  %22498 = vmatprep.subr.mxu1 %v6594_v54 }
 0x5e6   : > { %22466 = vmatpush3.msra.mxu0 %v24210_v31  ;;  %22499 = vmatpush3.msra.mxu1 %v6594_v54 }
 0x5e7   : > { %22468 = vmatmul.mubr.f32.vlgmr.msra.gmra.mxu0 %v6050_v12  ;;  %22477 = vmatprep.subr.mxu0 %v24213_v32 }
 0x5e8   : > { %22478 = vmatpush3.msra.mxu0 %v24213_v32  ;;  %22481 = vmatprep.mubr.f32.mxu0 %v6039_v20 }
 0x5e9   : > { %22479 = vmatprep.subr.mxu0 %v24218_v34  ;;  %22500 = vmatprep.subr.mxu1 %v6601_v15 }
 0x5ea   : > { %22480 = vmatpush3.msra.mxu0 %v24218_v34  ;;  %22501 = vmatpush3.msra.mxu1 %v6601_v15  ;;  %v7485_v15 = vmul.f32 %v24575_v22, %v24575_v22 }
 0x5eb   : > { %22482 = vmatmul.mubr.f32.vlgmr.msra.gmra.mxu0 %v6049_v39  ;;  %22491 = vmatprep.subr.mxu0 %v24682_v26 }
 0x5ec   : > { %22492 = vmatpush3.msra.mxu0 %v24682_v26  ;;  %22495 = vmatprep.mubr.f32.mxu0 %v24182_v24 }
 0x5ed   : > { %22493 = vmatprep.subr.mxu0 %v24700_v5  ;;  %22502 = vmatprep.mubr.f32.mxu1 %v24160_v9 }
 0x5ee   : > { %22494 = vmatpush3.msra.mxu0 %v24700_v5  ;;  %22503 = vmatmul.mubr.f32.vlgmr.msra.gmra.mxu1 %v24162_v10 }
 0x5ef   : > { %22496 = vmatmul.mubr.f32.vlgmr.msra.gmra.mxu0 %v24184_v25  ;;  %22505 = vmatprep.subr.mxu0 %v24695_v1 }
 0x5f0   : > { %22506 = vmatpush3.msra.mxu0 %v24695_v1  ;;  %22512 = vmatprep.subr.mxu1 %v24682_v26 }
 0x5f1   : > { %22507 = vmatprep.subr.mxu0 %v6598_v36  ;;  %22513 = vmatpush3.msra.mxu1 %v24682_v26 }
 0x5f2   : > { %22508 = vmatpush3.msra.mxu0 %v6598_v36  ;;  %22509 = vmatprep.mubr.f32.mxu0 %v24166_v13 }
 0x5f3   : > { %22514 = vmatprep.subr.mxu1 %v24700_v5  ;;  %22510 = vmatmul.mubr.f32.vlgmr.msra.gmra.mxu0 %v24170_v14 }
 0x5f4   : > { %22515 = vmatpush3.msra.mxu1 %v24700_v5  ;;  %22516 = vmatprep.mubr.f32.mxu1 %v24173_v17 }
 0x5f5   : > { %22519 = vmatprep.subr.mxu0 %v24705_v21  ;;  %22517 = vmatmul.mubr.f32.vlgmr.msra.gmra.mxu1 %v24176_v18 }
 0x5f6   : > { %22520 = vmatpush3.msra.mxu0 %v24705_v21  ;;  %22526 = vmatprep.subr.mxu1 %v24682_v26 }
 0x5f7   : > { %22521 = vmatprep.subr.mxu0 %v6599_v51  ;;  %22527 = vmatpush3.msra.mxu1 %v24682_v26 }
 0x5f8   : > { %22522 = vmatpush3.msra.mxu0 %v6599_v51  ;;  %22523 = vmatprep.mubr.f32.mxu0 %v24160_v9 }
 0x5f9   : > { %22528 = vmatprep.subr.mxu1 %v24700_v5  ;;  %22524 = vmatmul.mubr.f32.vlgmr.msra.gmra.mxu0 %v24162_v10 }
 0x5fa   : > { %22529 = vmatpush3.msra.mxu1 %v24700_v5  ;;  %22530 = vmatprep.mubr.f32.mxu1 %v24160_v9 }
 0x5fb   : > { %22531 = vmatmul.mubr.f32.vlgmr.msra.gmra.mxu1 %v24162_v10  ;;  %22540 = vmatprep.subr.mxu1 %v24220_v35 }
 0x5fc   : > { %22541 = vmatpush3.msra.mxu1 %v24220_v35  ;;  %22533 = vmatprep.subr.mxu0 %v24194_v28 }
 0x5fd   : > { %22542 = vmatprep.subr.mxu1 %v24225_v37  ;;  %22534 = vmatpush3.msra.mxu0 %v24194_v28 }
 0x5fe   : > { %22543 = vmatpush3.msra.mxu1 %v24225_v37  ;;  %22535 = vmatprep.subr.mxu0 %v24198_v29 }
 0x5ff   : > { %22554 = vmatprep.subr.mxu1 %v24194_v28  ;;  %22536 = vmatpush3.msra.mxu0 %v24198_v29 }
 0x600   : > { %22547 = vmatprep.subr.mxu0 %v24204_v30 }
 0x65f   : > { %v5438_v59 = vpop.xlane.xlu0 %5437 }
 0x660   : > { %v5439_v19 = vrot.slane %v5438_v59, 4 }
 0x662   : > { %v5440_v50 = vmin.f32 %v5438_v59, %v5439_v19 }
 0x663   : > { %v5450_v40 = vpop.xlane.xlu0 %5449 }
 0x664   : > { %v5441_v52 = vrot.slane %v5440_v50, 2  ;;  %v5451_v53 = vrot.slane %v5450_v40, 4 }
 0x666   : > { %v5452_v11 = vmax.f32 %v5450_v40, %v5451_v53  ;;  %v5442_v47 = vmin.f32 %v5440_v50, %v5441_v52  ;;  %v24779_v52 = vand.u32 4294901760, %v7485_v15  ;;  %v7484_v53 = vmul.f32 %v24581_v33, %v24581_v33 }
 0x668   : > { %v5453_v26 = vrot.slane %v5452_v11, 2  ;;  %v5443_v46 = vrot.slane %v5442_v47, 1  ;;  %v24785_v22 = vand.u32 4294901760, %v7484_v53 }
 0x66a   : > { %v5444_v45 = vmin.f32 %v5442_v47, %v5443_v46  ;;  %v5454_v49 = vmax.f32 %v5452_v11, %v5453_v26  ;;  %v7610_v33 = vsub.f32 %v7484_v53, %v24785_v22 }
 0x66c   : > { %23667 = vpush %v5444_v45  ;;  %v5455_v56 = vrot.slane %v5454_v49, 1 }
 0x66e   : > { %v5456_v60 = vmax.f32 %v5454_v49, %v5455_v56 }
 0x670   : > { %23669 = vpush %v5456_v60  ;;  %v7603_v60 = vsub.f32 %v7485_v15, %v24779_v52 }
 0x69b   : > { %v22462_v58 = vpop.f32.mrf.mxu1 }
 0x69d   : > { %v24763_v38 = vpop.f32.mrf.mxu1  ;;  %s23668_s18 = spop %23667 }
 0x69f   : > { %v22476_v62 = vpop.f32.mrf.mxu1 }
 0x6a1   : > { %v24765_v0 = vpop.f32.mrf.mxu1  ;;  %s23670_s14 = spop %23669 }
 0x6a3   : > { %v22455_v63 = vpop.f32.mrf.mxu0  ;;  %v22490_v43 = vpop.f32.mrf.mxu1 }
 0x6a4   : > { %v6143_v1 = vadd.f32 %v22462_v58, %v22455_v63 }
 0x6a5   : > { %v24767_v3 = vpop.f32.mrf.mxu0  ;;  %v24771_v12 = vpop.f32.mrf.mxu1 }
 0x6a7   : > { %v22469_v6 = vpop.f32.mrf.mxu0 }
 0x6a8   : > { %v6226_v5 = vadd.f32 %v22469_v6, %v6143_v1  ;;  %v24788_v6 = vand.u32 4294901760, %v7603_v60 }
 0x6a9   : > { %v24769_v39 = vpop.f32.mrf.mxu0 }
 0x6aa   : > { %v6309_v44 = vadd.f32 %v22476_v62, %v6226_v5 }
 0x6ab   : > { %v22483_v2 = vpop.f32.mrf.mxu0 }
 0x6ac   : > { %v6392_v20 = vadd.f32 %v22483_v2, %v6309_v44 }
 0x6ad   : > { %v24773_v48 = vpop.f32.mrf.mxu0 }
 0x6ae   : > { %v24775_v21 = vadd.f32 %v22490_v43, %v6392_v20  ;;  %v22504_v36 = vpop.f32.mrf.mxu1  ;;  %v7605_v20 = vsub.f32 %v7603_v60, %v24788_v6 }
 0x6af   : > { %v22497_v61 = vpop.f32.mrf.mxu0 }
 0x6b0   : > { %v6638_v8 = vpop.f32.mrf.mxu1  ;;  %v6645_v42 = vadd.f32 %v22504_v36, %v22497_v61  ;;  %v7611_v36 = vand.u32 4294901760, %v7610_v33 }
 0x6b1   : > { %v6547_v7 = vpop.f32.mrf.mxu0 }
 0x6b2   : > { %v6639_v51 = vadd.f32 %v6638_v8, %v6547_v7 }
 0x6b3   : > { %v22511_v55 = vpop.f32.mrf.mxu0 }
 0x6b4   : > { %v6728_v27 = vadd.f32 %v22511_v55, %v6645_v42  ;;  %v7606_v42 = vand.u32 4294901760, %v7605_v20  ;;  %v7612_v55 = vsub.f32 %v7610_v33, %v7611_v36 }
 0x6b5   : > { %v22518_v4 = vpop.f32.mrf.mxu1  ;;  %v6720_v16 = vpop.f32.mrf.mxu0 }
 0x6b6   : > { %v6811_v54 = vadd.f32 %v22518_v4, %v6728_v27  ;;  %v6721_v41 = vadd.f32 %v6720_v16, %v6639_v51  ;;  %v7613_v51 = vand.u32 4294901760, %v7612_v55 }
 0x6b7   : > { %v6802_v59 = vpop.f32.mrf.mxu1 }
 0x6b8   : > { %v6803_v19 = vadd.f32 %v6802_v59, %v6721_v41 }
 0x6b9   : > { %v22525_v50 = vpop.f32.mrf.mxu0 }
 0x6ba   : > { %v6894_v40 = vadd.f32 %v22525_v50, %v6811_v54 }
 0x6bb   : > { %v22532_v11 = vpop.f32.mrf.mxu1  ;;  %v6887_v47 = vpop.f32.mrf.mxu0 }
 0x6bc   : > { %v6973_v26 = vadd.f32 %v22532_v11, %v6894_v40  ;;  %v6888_v46 = vadd.f32 %v6887_v47, %v6803_v19 }
 0x6bd   : > { %v6966_v45 = vpop.f32.mrf.mxu1 }
 0x6be   : > { %v6980_v49 = vsel %vm333_vm0, %v6973_v26, 0  ;;  %v6967_v56 = vadd.f32 %v6966_v45, %v6888_v46 }
 0x6bf   : > { %v7059_v58 = vand.u32 4294901760, %v6980_v49 }
 0x6c0   : > { %v6977_v62 = vsel %vm333_vm0, %v6967_v56, 0 }
 0x6c1   : > { %v7060_v63 = vsub.f32 %v6980_v49, %v7059_v58  ;;  %v7049_v1 = vand.u32 4294901760, %v6977_v62 }
 0x6c3   : > { %v7050_v43 = vsub.f32 %v6977_v62, %v7049_v1  ;;  %22544 = vmatprep.mubr.f32.mxu1 %v7049_v1  ;;  %v7061_v5 = vand.u32 4294901760, %v7060_v63 }
 0x6c4   : > { %22545 = vmatmul.mubr.f32.vlgmr.msra.gmra.mxu1 %v7059_v58 }
 0x6c5   : > { %22555 = vmatpush3.msra.mxu1 %v24194_v28  ;;  %v7051_v44 = vand.u32 4294901760, %v7050_v43  ;;  %v7062_v2 = vsub.f32 %v7060_v63, %v7061_v5 }
 0x6c6   : > { %22556 = vmatprep.subr.mxu1 %v24198_v29 }
 0x6c7   : > { %22557 = vmatpush3.msra.mxu1 %v24198_v29  ;;  %22558 = vmatprep.mubr.f32.mxu1 %v7051_v44  ;;  %v7052_v61 = vsub.f32 %v7050_v43, %v7051_v44  ;;  %v7063_v8 = vand.u32 4294901760, %v7062_v2 }
 0x6c8   : > { %22559 = vmatmul.mubr.f32.vlgmr.msra.gmra.mxu1 %v7061_v5  ;;  %22568 = vmatprep.subr.mxu1 %v24194_v28 }
 0x6c9   : > { %22569 = vmatpush3.msra.mxu1 %v24194_v28  ;;  %22572 = vmatprep.mubr.f32.mxu1 %v7049_v1  ;;  %v7053_v7 = vand.u32 4294901760, %v7052_v61 }
 0x6ca   : > { %22570 = vmatprep.subr.mxu1 %v24198_v29 }
 0x6cb   : > { %22537 = vmatprep.mubr.f32.mxu0 %v7053_v7  ;;  %22571 = vmatpush3.msra.mxu1 %v24198_v29 }
 0x6cc   : > { %22538 = vmatmul.mubr.f32.vlgmr.msra.gmra.mxu0 %v7063_v8  ;;  %22573 = vmatmul.mubr.f32.vlgmr.msra.gmra.mxu1 %v7059_v58 }
 0x6cd   : > { %22548 = vmatpush3.msra.mxu0 %v24204_v30  ;;  %22551 = vmatprep.mubr.f32.mxu0 %v7050_v43 }
 0x6ce   : > { %22549 = vmatprep.subr.mxu0 %v24210_v31  ;;  %22582 = vmatprep.subr.mxu1 %v7606_v42 }
 0x6cf   : > { %22550 = vmatpush3.msra.mxu0 %v24210_v31  ;;  %22583 = vmatpush3.msra.mxu1 %v7606_v42 }
 0x6d0   : > { %22552 = vmatmul.mubr.f32.vlgmr.msra.gmra.mxu0 %v7060_v63  ;;  %22561 = vmatprep.subr.mxu0 %v24213_v32 }
 0x6d1   : > { %22562 = vmatpush3.msra.mxu0 %v24213_v32  ;;  %22565 = vmatprep.mubr.f32.mxu0 %v7049_v1 }
 0x6d2   : > { %22563 = vmatprep.subr.mxu0 %v24218_v34  ;;  %22584 = vmatprep.subr.mxu1 %v7613_v51 }
 0x6d3   : > { %22564 = vmatpush3.msra.mxu0 %v24218_v34  ;;  %22585 = vmatpush3.msra.mxu1 %v7613_v51  ;;  %v8496_v51 = vmul.f32 %v24687_v57, %v24687_v57 }
 0x6d4   : > { %22566 = vmatmul.mubr.f32.vlgmr.msra.gmra.mxu0 %v7059_v58  ;;  %22575 = vmatprep.subr.mxu0 %v24779_v52 }
 0x6d5   : > { %22576 = vmatpush3.msra.mxu0 %v24779_v52  ;;  %22579 = vmatprep.mubr.f32.mxu0 %v24182_v24 }
 0x6d6   : > { %22577 = vmatprep.subr.mxu0 %v24785_v22  ;;  %22586 = vmatprep.mubr.f32.mxu1 %v24160_v9 }
 0x6d7   : > { %22578 = vmatpush3.msra.mxu0 %v24785_v22  ;;  %22587 = vmatmul.mubr.f32.vlgmr.msra.gmra.mxu1 %v24162_v10 }
 0x6d8   : > { %22580 = vmatmul.mubr.f32.vlgmr.msra.gmra.mxu0 %v24184_v25  ;;  %22589 = vmatprep.subr.mxu0 %v7603_v60 }
 0x6d9   : > { %22590 = vmatpush3.msra.mxu0 %v7603_v60  ;;  %22596 = vmatprep.subr.mxu1 %v24779_v52  ;;  %v24856_v60 = vmul.f32 %v24775_v21, %v24775_v21 }
 0x6da   : > { %22591 = vmatprep.subr.mxu0 %v7610_v33  ;;  %22597 = vmatpush3.msra.mxu1 %v24779_v52 }
 0x6db   : > { %22592 = vmatpush3.msra.mxu0 %v7610_v33  ;;  %22593 = vmatprep.mubr.f32.mxu0 %v24166_v13 }
 0x6dc   : > { %22598 = vmatprep.subr.mxu1 %v24785_v22  ;;  %22594 = vmatmul.mubr.f32.vlgmr.msra.gmra.mxu0 %v24170_v14 }
 0x6dd   : > { %22599 = vmatpush3.msra.mxu1 %v24785_v22  ;;  %22600 = vmatprep.mubr.f32.mxu1 %v24173_v17 }
 0x6de   : > { %22603 = vmatprep.subr.mxu0 %v24788_v6  ;;  %22601 = vmatmul.mubr.f32.vlgmr.msra.gmra.mxu1 %v24176_v18 }
 0x6df   : > { %22604 = vmatpush3.msra.mxu0 %v24788_v6  ;;  %22610 = vmatprep.subr.mxu1 %v24779_v52 }
 0x6e0   : > { %22605 = vmatprep.subr.mxu0 %v7611_v36  ;;  %22611 = vmatpush3.msra.mxu1 %v24779_v52 }
 0x6e1   : > { %22606 = vmatpush3.msra.mxu0 %v7611_v36  ;;  %22607 = vmatprep.mubr.f32.mxu0 %v24160_v9  ;;  %v8497_v36 = vmul.f32 %v24674_v23, %v24674_v23 }
 0x6e2   : > { %22612 = vmatprep.subr.mxu1 %v24785_v22  ;;  %22608 = vmatmul.mubr.f32.vlgmr.msra.gmra.mxu0 %v24162_v10 }
 0x6e3   : > { %22613 = vmatpush3.msra.mxu1 %v24785_v22  ;;  %22614 = vmatprep.mubr.f32.mxu1 %v24160_v9  ;;  %v24869_v55 = vand.u32 4294901760, %v8497_v36 }
 0x6e4   : > { %22615 = vmatmul.mubr.f32.vlgmr.msra.gmra.mxu1 %v24162_v10  ;;  %22624 = vmatprep.subr.mxu1 %v24220_v35 }
 0x6e5   : > { %22625 = vmatpush3.msra.mxu1 %v24220_v35  ;;  %22617 = vmatprep.subr.mxu0 %v24194_v28 }
 0x6e6   : > { %22626 = vmatprep.subr.mxu1 %v24225_v37  ;;  %22618 = vmatpush3.msra.mxu0 %v24194_v28 }
 0x6e7   : > { %22627 = vmatpush3.msra.mxu1 %v24225_v37  ;;  %22619 = vmatprep.subr.mxu0 %v24198_v29 }
 0x6e8   : > { %22638 = vmatprep.subr.mxu1 %v24194_v28  ;;  %22620 = vmatpush3.msra.mxu0 %v24198_v29 }
 0x6e9   : > { %22631 = vmatprep.subr.mxu0 %v24204_v30 }
 0x784   : > { %v22546_v27 = vpop.f32.mrf.mxu1 }
 0x786   : > { %v24842_v4 = vpop.f32.mrf.mxu1 }
 0x788   : > { %v22560_v16 = vpop.f32.mrf.mxu1 }
 0x78a   : > { %v24844_v41 = vpop.f32.mrf.mxu1 }
 0x78c   : > { %v22539_v54 = vpop.f32.mrf.mxu0  ;;  %v22574_v50 = vpop.f32.mrf.mxu1 }
 0x78d   : > { %v7153_v15 = vadd.f32 %v22546_v27, %v22539_v54 }
 0x78e   : > { %v24846_v59 = vpop.f32.mrf.mxu0  ;;  %v24850_v47 = vpop.f32.mrf.mxu1 }
 0x790   : > { %v22553_v19 = vpop.f32.mrf.mxu0 }
 0x791   : > { %v7236_v40 = vadd.f32 %v22553_v19, %v7153_v15 }
 0x792   : > { %v24848_v52 = vpop.f32.mrf.mxu0 }
 0x793   : > { %v7319_v53 = vadd.f32 %v22560_v16, %v7236_v40 }
 0x794   : > { %v22567_v11 = vpop.f32.mrf.mxu0 }
 0x795   : > { %v7402_v26 = vadd.f32 %v22567_v11, %v7319_v53  ;;  %v8615_v53 = vsub.f32 %v8497_v36, %v24869_v55  ;;  %v24875_v11 = vand.u32 4294901760, %v8496_v51 }
 0x796   : > { %v24852_v46 = vpop.f32.mrf.mxu0 }
 0x797   : > { %v7481_v45 = vadd.f32 %v22574_v50, %v7402_v26  ;;  %v22588_v49 = vpop.f32.mrf.mxu1 }
 0x798   : > { %v22581_v56 = vpop.f32.mrf.mxu0 }
 0x799   : > { %v24858_v22 = vmul.f32 %v7481_v45, %v7481_v45  ;;  %v24861_v58 = vmul.f32 %v7481_v45, %v24775_v21  ;;  %v7650_v63 = vpop.f32.mrf.mxu1  ;;  %v7657_v6 = vadd.f32 %v22588_v49, %v22581_v56 }
 0x79a   : > { %v7559_v62 = vpop.f32.mrf.mxu0 }
 0x79b   : > { %25941 = vst [vmem:[#allocation11_spill] sm:$0xff] %v24861_v58  ;;  %v24865_v1 = vadd.f32 %v24858_v22, %v24856_v60  ;;  %v7651_v43 = vadd.f32 %v7650_v63, %v7559_v62  ;;  %v24878_v62 = vand.u32 4294901760, %v8615_v53  ;;  %v8622_v63 = vsub.f32 %v8496_v51, %v24875_v11 }
 0x79c   : > { %v22595_v33 = vpop.f32.mrf.mxu0 }
 0x79d   : > { %v7740_v5 = vadd.f32 %v22595_v33, %v7657_v6 }
 0x79e   : > { %v22602_v44 = vpop.f32.mrf.mxu1  ;;  %v7732_v2 = vpop.f32.mrf.mxu0 }
 0x79f   : > { %v7733_v20 = vadd.f32 %v7732_v2, %v7651_v43  ;;  %v7823_v61 = vadd.f32 %v22602_v44, %v7740_v5  ;;  %v8617_v44 = vsub.f32 %v8615_v53, %v24878_v62  ;;  %v8623_v2 = vand.u32 4294901760, %v8622_v63 }
 0x7a0   : > { %v7814_v7 = vpop.f32.mrf.mxu1 }
 0x7a1   : > { %v7815_v21 = vadd.f32 %v7814_v7, %v7733_v20  ;;  %v8618_v7 = vand.u32 4294901760, %v8617_v44 }
 0x7a2   : > { %v22609_v8 = vpop.f32.mrf.mxu0 }
 0x7a3   : > { %v7906_v42 = vadd.f32 %v22609_v8, %v7823_v61 }
 0x7a4   : > { %v22616_v27 = vpop.f32.mrf.mxu1  ;;  %v7899_v16 = vpop.f32.mrf.mxu0 }
 0x7a5   : > { %v7985_v54 = vadd.f32 %v22616_v27, %v7906_v42  ;;  %v7900_v15 = vadd.f32 %v7899_v16, %v7815_v21  ;;  %v8624_v21 = vsub.f32 %v8622_v63, %v8623_v2 }
 0x7a6   : > { %v7978_v19 = vpop.f32.mrf.mxu1 }
 0x7a7   : > { %v7992_v50 = vsel %vm333_vm0, %v7985_v54, 0  ;;  %v7979_v40 = vadd.f32 %v7978_v19, %v7900_v15  ;;  %v8625_v8 = vand.u32 4294901760, %v8624_v21 }
 0x7a8   : > { %v8071_v26 = vand.u32 4294901760, %v7992_v50 }
 0x7a9   : > { %v7989_v45 = vsel %vm333_vm0, %v7979_v40, 0 }
 0x7aa   : > { %v8072_v49 = vsub.f32 %v7992_v50, %v8071_v26  ;;  %v8061_v56 = vand.u32 4294901760, %v7989_v45 }
 0x7ac   : > { %v8062_v6 = vsub.f32 %v7989_v45, %v8061_v56  ;;  %22628 = vmatprep.mubr.f32.mxu1 %v8061_v56  ;;  %v8073_v33 = vand.u32 4294901760, %v8072_v49 }
 0x7ad   : > { %22629 = vmatmul.mubr.f32.vlgmr.msra.gmra.mxu1 %v8071_v26 }
 0x7ae   : > { %22639 = vmatpush3.msra.mxu1 %v24194_v28  ;;  %v8063_v43 = vand.u32 4294901760, %v8062_v6  ;;  %v8074_v5 = vsub.f32 %v8072_v49, %v8073_v33 }
 0x7af   : > { %22640 = vmatprep.subr.mxu1 %v24198_v29 }
 0x7b0   : > { %22641 = vmatpush3.msra.mxu1 %v24198_v29  ;;  %22642 = vmatprep.mubr.f32.mxu1 %v8063_v43  ;;  %v8064_v20 = vsub.f32 %v8062_v6, %v8063_v43  ;;  %v8075_v61 = vand.u32 4294901760, %v8074_v5 }
 0x7b1   : > { %22643 = vmatmul.mubr.f32.vlgmr.msra.gmra.mxu1 %v8073_v33  ;;  %22652 = vmatprep.subr.mxu1 %v24194_v28 }
 0x7b2   : > { %22653 = vmatpush3.msra.mxu1 %v24194_v28  ;;  %22656 = vmatprep.mubr.f32.mxu1 %v8061_v56  ;;  %v8065_v36 = vand.u32 4294901760, %v8064_v20 }
 0x7b3   : > { %22654 = vmatprep.subr.mxu1 %v24198_v29 }
 0x7b4   : > { %22621 = vmatprep.mubr.f32.mxu0 %v8065_v36  ;;  %22655 = vmatpush3.msra.mxu1 %v24198_v29 }
 0x7b5   : > { %22622 = vmatmul.mubr.f32.vlgmr.msra.gmra.mxu0 %v8075_v61  ;;  %22657 = vmatmul.mubr.f32.vlgmr.msra.gmra.mxu1 %v8071_v26 }
 0x7b6   : > { %22632 = vmatpush3.msra.mxu0 %v24204_v30  ;;  %22635 = vmatprep.mubr.f32.mxu0 %v8062_v6 }
 0x7b7   : > { %22633 = vmatprep.subr.mxu0 %v24210_v31  ;;  %22666 = vmatprep.subr.mxu1 %v8618_v7 }
 0x7b8   : > { %22634 = vmatpush3.msra.mxu0 %v24210_v31  ;;  %22667 = vmatpush3.msra.mxu1 %v8618_v7 }
 0x7b9   : > { %22636 = vmatmul.mubr.f32.vlgmr.msra.gmra.mxu0 %v8072_v49  ;;  %22645 = vmatprep.subr.mxu0 %v24213_v32 }
 0x7ba   : > { %22646 = vmatpush3.msra.mxu0 %v24213_v32  ;;  %22649 = vmatprep.mubr.f32.mxu0 %v8061_v56 }
 0x7bb   : > { %22647 = vmatprep.subr.mxu0 %v24218_v34  ;;  %22668 = vmatprep.subr.mxu1 %v8625_v8 }
 0x7bc   : > { %22648 = vmatpush3.msra.mxu0 %v24218_v34  ;;  %22669 = vmatpush3.msra.mxu1 %v8625_v8 }
 0x7bd   : > { %22650 = vmatmul.mubr.f32.vlgmr.msra.gmra.mxu0 %v8071_v26  ;;  %22659 = vmatprep.subr.mxu0 %v24869_v55 }
 0x7be   : > { %22660 = vmatpush3.msra.mxu0 %v24869_v55  ;;  %22663 = vmatprep.mubr.f32.mxu0 %v24182_v24 }
 0x7bf   : > { %22661 = vmatprep.subr.mxu0 %v24875_v11  ;;  %22670 = vmatprep.mubr.f32.mxu1 %v24160_v9 }
 0x7c0   : > { %22662 = vmatpush3.msra.mxu0 %v24875_v11  ;;  %22671 = vmatmul.mubr.f32.vlgmr.msra.gmra.mxu1 %v24162_v10 }
 0x7c1   : > { %22664 = vmatmul.mubr.f32.vlgmr.msra.gmra.mxu0 %v24184_v25  ;;  %22673 = vmatprep.subr.mxu0 %v8615_v53 }
 0x7c2   : > { %22674 = vmatpush3.msra.mxu0 %v8615_v53  ;;  %22680 = vmatprep.subr.mxu1 %v24869_v55 }
 0x7c3   : > { %22675 = vmatprep.subr.mxu0 %v8622_v63  ;;  %22681 = vmatpush3.msra.mxu1 %v24869_v55 }
 0x7c4   : > { %22676 = vmatpush3.msra.mxu0 %v8622_v63  ;;  %22677 = vmatprep.mubr.f32.mxu0 %v24166_v13 }
 0x7c5   : > { %22682 = vmatprep.subr.mxu1 %v24875_v11  ;;  %22678 = vmatmul.mubr.f32.vlgmr.msra.gmra.mxu0 %v24170_v14 }
 0x7c6   : > { %22683 = vmatpush3.msra.mxu1 %v24875_v11  ;;  %22684 = vmatprep.mubr.f32.mxu1 %v24173_v17 }
 0x7c7   : > { %22687 = vmatprep.subr.mxu0 %v24878_v62  ;;  %22685 = vmatmul.mubr.f32.vlgmr.msra.gmra.mxu1 %v24176_v18 }
 0x7c8   : > { %22688 = vmatpush3.msra.mxu0 %v24878_v62  ;;  %22694 = vmatprep.subr.mxu1 %v24869_v55 }
 0x7c9   : > { %22689 = vmatprep.subr.mxu0 %v8623_v2  ;;  %22695 = vmatpush3.msra.mxu1 %v24869_v55 }
 0x7ca   : > { %22690 = vmatpush3.msra.mxu0 %v8623_v2  ;;  %22691 = vmatprep.mubr.f32.mxu0 %v24160_v9 }
 0x7cb   : > { %22696 = vmatprep.subr.mxu1 %v24875_v11  ;;  %22692 = vmatmul.mubr.f32.vlgmr.msra.gmra.mxu0 %v24162_v10 }
 0x7cc   : > { %22697 = vmatpush3.msra.mxu1 %v24875_v11  ;;  %22698 = vmatprep.mubr.f32.mxu1 %v24160_v9 }
 0x7cd   : > { %22699 = vmatmul.mubr.f32.vlgmr.msra.gmra.mxu1 %v24162_v10  ;;  %22708 = vmatprep.subr.mxu1 %v24220_v35 }
 0x7ce   : > { %22709 = vmatpush3.msra.mxu1 %v24220_v35  ;;  %22701 = vmatprep.subr.mxu0 %v24194_v28 }
 0x7cf   : > { %22710 = vmatprep.subr.mxu1 %v24225_v37  ;;  %22702 = vmatpush3.msra.mxu0 %v24194_v28 }
 0x7d0   : > { %22711 = vmatpush3.msra.mxu1 %v24225_v37  ;;  %22703 = vmatprep.subr.mxu0 %v24198_v29 }
 0x7d1   : > { %22722 = vmatprep.subr.mxu1 %v24194_v28  ;;  %22704 = vmatpush3.msra.mxu0 %v24198_v29 }
 0x7d2   : > { %22715 = vmatprep.subr.mxu0 %v24204_v30 }
 0x86d   : > { %v22630_v42 = vpop.f32.mrf.mxu1 }
 0x86f   : > { %v24932_v55 = vpop.f32.mrf.mxu1 }
 0x871   : > { %v22644_v51 = vpop.f32.mrf.mxu1 }
 0x873   : > { %v24934_v16 = vpop.f32.mrf.mxu1 }
 0x875   : > { %v22623_v27 = vpop.f32.mrf.mxu0  ;;  %v22658_v50 = vpop.f32.mrf.mxu1 }
 0x876   : > { %v8165_v54 = vadd.f32 %v22630_v42, %v22623_v27  ;;  %v23766_v42 = vld [vmem:[%s24143_s6 + $0x18] sm:$0xff] }
 0x877   : > { %v24936_v15 = vpop.f32.mrf.mxu0  ;;  %v24940_v45 = vpop.f32.mrf.mxu1 }
 0x879   : > { %v22637_v19 = vpop.f32.mrf.mxu0 }
 0x87a   : > { %v8248_v40 = vadd.f32 %v22637_v19, %v8165_v54 }
 0x87b   : > { %v24938_v53 = vpop.f32.mrf.mxu0 }
 0x87c   : > { %v8331_v11 = vadd.f32 %v22644_v51, %v8248_v40  ;;  %v9509_v51 = vmul.f32 %v23766_v42, %v24674_v23 }
 0x87d   : > { %v22651_v26 = vpop.f32.mrf.mxu0 }
 0x87e   : > { %v8414_v49 = vadd.f32 %v22651_v26, %v8331_v11  ;;  %v24950_v40 = vand.u32 4294901760, %v9509_v51  ;;  %v23767_v11 = vld [vmem:[%s24143_s6 + $0x10] sm:$0xff] }
 0x87f   : > { %v24942_v56 = vpop.f32.mrf.mxu0  ;;  %v9508_v26 = vmul.f32 %v23767_v11, %v24687_v57 }
 0x880   : > { %v24944_v62 = vadd.f32 %v22658_v50, %v8414_v49  ;;  %v22672_v63 = vpop.f32.mrf.mxu1 }
 0x881   : > { %v22665_v6 = vpop.f32.mrf.mxu0  ;;  %v24956_v23 = vand.u32 4294901760, %v9508_v26 }
 0x882   : > { %v10527_v33 = vsub.f32 %v24944_v62, %v24856_v60  ;;  %v8662_v5 = vpop.f32.mrf.mxu1  ;;  %v8669_v44 = vadd.f32 %v22672_v63, %v22665_v6 }
 0x883   : > { %v8571_v43 = vpop.f32.mrf.mxu0  ;;  %v9634_v57 = vsub.f32 %v9508_v26, %v24956_v23 }
 0x884   : > { %v8663_v20 = vadd.f32 %v8662_v5, %v8571_v43 }
 0x885   : > { %v22679_v2 = vpop.f32.mrf.mxu0 }
 0x886   : > { %v8752_v36 = vadd.f32 %v22679_v2, %v8669_v44 }
 0x887   : > { %v22686_v61 = vpop.f32.mrf.mxu1  ;;  %v8744_v7 = vpop.f32.mrf.mxu0 }
 0x888   : > { %v8835_v21 = vadd.f32 %v22686_v61, %v8752_v36  ;;  %v8745_v8 = vadd.f32 %v8744_v7, %v8663_v20  ;;  %v9627_v20 = vsub.f32 %v9509_v51, %v24950_v40 }
 0x889   : > { %v8826_v27 = vpop.f32.mrf.mxu1 }
 0x88a   : > { %v8827_v54 = vadd.f32 %v8826_v27, %v8745_v8  ;;  %v24959_v8 = vand.u32 4294901760, %v9627_v20 }
 0x88b   : > { %v22693_v19 = vpop.f32.mrf.mxu0 }
 0x88c   : > { %v8918_v50 = vadd.f32 %v22693_v19, %v8835_v21  ;;  %v9629_v19 = vsub.f32 %v9627_v20, %v24959_v8 }
 0x88d   : > { %v22700_v49 = vpop.f32.mrf.mxu1  ;;  %v8911_v63 = vpop.f32.mrf.mxu0 }
 0x88e   : > { %v8997_v6 = vadd.f32 %v22700_v49, %v8918_v50  ;;  %v8912_v43 = vadd.f32 %v8911_v63, %v8827_v54  ;;  %v9635_v50 = vand.u32 4294901760, %v9634_v57  ;;  %v9630_v63 = vand.u32 4294901760, %v9629_v19 }
 0x88f   : > { %v8990_v5 = vpop.f32.mrf.mxu1 }
 0x890   : > { %v9004_v44 = vsel %vm333_vm0, %v8997_v6, 0  ;;  %v8991_v2 = vadd.f32 %v8990_v5, %v8912_v43  ;;  %v9636_v6 = vsub.f32 %v9634_v57, %v9635_v50 }
 0x891   : > { %v9083_v36 = vand.u32 4294901760, %v9004_v44 }
 0x892   : > { %v9001_v61 = vsel %vm333_vm0, %v8991_v2, 0  ;;  %v9637_v43 = vand.u32 4294901760, %v9636_v6 }
 0x893   : > { %v9084_v7 = vsub.f32 %v9004_v44, %v9083_v36  ;;  %v9073_v21 = vand.u32 4294901760, %v9001_v61 }
 0x895   : > { %v9074_v42 = vsub.f32 %v9001_v61, %v9073_v21  ;;  %22712 = vmatprep.mubr.f32.mxu1 %v9073_v21  ;;  %v9085_v27 = vand.u32 4294901760, %v9084_v7 }
 0x896   : > { %22713 = vmatmul.mubr.f32.vlgmr.msra.gmra.mxu1 %v9083_v36 }
 0x897   : > { %22723 = vmatpush3.msra.mxu1 %v24194_v28  ;;  %v9075_v54 = vand.u32 4294901760, %v9074_v42  ;;  %v9086_v51 = vsub.f32 %v9084_v7, %v9085_v27 }
 0x898   : > { %22724 = vmatprep.subr.mxu1 %v24198_v29 }
 0x899   : > { %22725 = vmatpush3.msra.mxu1 %v24198_v29  ;;  %22726 = vmatprep.mubr.f32.mxu1 %v9075_v54  ;;  %v9076_v11 = vsub.f32 %v9074_v42, %v9075_v54  ;;  %v9087_v49 = vand.u32 4294901760, %v9086_v51 }
 0x89a   : > { %22727 = vmatmul.mubr.f32.vlgmr.msra.gmra.mxu1 %v9085_v27  ;;  %22736 = vmatprep.subr.mxu1 %v24194_v28 }
 0x89b   : > { %22737 = vmatpush3.msra.mxu1 %v24194_v28  ;;  %22740 = vmatprep.mubr.f32.mxu1 %v9073_v21  ;;  %v9077_v26 = vand.u32 4294901760, %v9076_v11 }
 0x89c   : > { %22738 = vmatprep.subr.mxu1 %v24198_v29 }
 0x89d   : > { %22705 = vmatprep.mubr.f32.mxu0 %v9077_v26  ;;  %22739 = vmatpush3.msra.mxu1 %v24198_v29 }
 0x89e   : > { %22706 = vmatmul.mubr.f32.vlgmr.msra.gmra.mxu0 %v9087_v49  ;;  %22741 = vmatmul.mubr.f32.vlgmr.msra.gmra.mxu1 %v9083_v36 }
 0x89f   : > { %22716 = vmatpush3.msra.mxu0 %v24204_v30  ;;  %22719 = vmatprep.mubr.f32.mxu0 %v9074_v42 }
 0x8a0   : > { %22717 = vmatprep.subr.mxu0 %v24210_v31  ;;  %22750 = vmatprep.subr.mxu1 %v9630_v63 }
 0x8a1   : > { %22718 = vmatpush3.msra.mxu0 %v24210_v31  ;;  %22751 = vmatpush3.msra.mxu1 %v9630_v63 }
 0x8a2   : > { %22720 = vmatmul.mubr.f32.vlgmr.msra.gmra.mxu0 %v9084_v7  ;;  %22729 = vmatprep.subr.mxu0 %v24213_v32 }
 0x8a3   : > { %22730 = vmatpush3.msra.mxu0 %v24213_v32  ;;  %22733 = vmatprep.mubr.f32.mxu0 %v9073_v21 }
 0x8a4   : > { %22731 = vmatprep.subr.mxu0 %v24218_v34  ;;  %22752 = vmatprep.subr.mxu1 %v9637_v43 }
 0x8a5   : > { %22732 = vmatpush3.msra.mxu0 %v24218_v34  ;;  %22753 = vmatpush3.msra.mxu1 %v9637_v43 }
 0x8a6   : > { %22734 = vmatmul.mubr.f32.vlgmr.msra.gmra.mxu0 %v9083_v36  ;;  %22743 = vmatprep.subr.mxu0 %v24950_v40 }
 0x8a7   : > { %22744 = vmatpush3.msra.mxu0 %v24950_v40  ;;  %22747 = vmatprep.mubr.f32.mxu0 %v24182_v24 }
 0x8a8   : > { %22745 = vmatprep.subr.mxu0 %v24956_v23  ;;  %22754 = vmatprep.mubr.f32.mxu1 %v24160_v9 }
 0x8a9   : > { %22746 = vmatpush3.msra.mxu0 %v24956_v23  ;;  %22755 = vmatmul.mubr.f32.vlgmr.msra.gmra.mxu1 %v24162_v10 }
 0x8aa   : > { %22748 = vmatmul.mubr.f32.vlgmr.msra.gmra.mxu0 %v24184_v25  ;;  %22757 = vmatprep.subr.mxu0 %v9627_v20 }
 0x8ab   : > { %22758 = vmatpush3.msra.mxu0 %v9627_v20  ;;  %22764 = vmatprep.subr.mxu1 %v24950_v40 }
 0x8ac   : > { %22759 = vmatprep.subr.mxu0 %v9634_v57  ;;  %22765 = vmatpush3.msra.mxu1 %v24950_v40 }
 0x8ad   : > { %22760 = vmatpush3.msra.mxu0 %v9634_v57  ;;  %22761 = vmatprep.mubr.f32.mxu0 %v24166_v13 }
 0x8ae   : > { %22766 = vmatprep.subr.mxu1 %v24956_v23  ;;  %22762 = vmatmul.mubr.f32.vlgmr.msra.gmra.mxu0 %v24170_v14 }
 0x8af   : > { %22767 = vmatpush3.msra.mxu1 %v24956_v23  ;;  %22768 = vmatprep.mubr.f32.mxu1 %v24173_v17 }
 0x8b0   : > { %22771 = vmatprep.subr.mxu0 %v24959_v8  ;;  %22769 = vmatmul.mubr.f32.vlgmr.msra.gmra.mxu1 %v24176_v18 }
 0x8b1   : > { %22772 = vmatpush3.msra.mxu0 %v24959_v8  ;;  %22778 = vmatprep.subr.mxu1 %v24950_v40 }
 0x8b2   : > { %22773 = vmatprep.subr.mxu0 %v9635_v50  ;;  %22779 = vmatpush3.msra.mxu1 %v24950_v40 }
 0x8b3   : > { %22774 = vmatpush3.msra.mxu0 %v9635_v50  ;;  %22775 = vmatprep.mubr.f32.mxu0 %v24160_v9 }
 0x8b4   : > { %22780 = vmatprep.subr.mxu1 %v24956_v23  ;;  %22776 = vmatmul.mubr.f32.vlgmr.msra.gmra.mxu0 %v24162_v10 }
 0x8b5   : > { %22781 = vmatpush3.msra.mxu1 %v24956_v23  ;;  %22782 = vmatprep.mubr.f32.mxu1 %v24160_v9 }
 0x8b6   : > { %22783 = vmatmul.mubr.f32.vlgmr.msra.gmra.mxu1 %v24162_v10  ;;  %22792 = vmatprep.subr.mxu1 %v24220_v35 }
 0x8b7   : > { %22793 = vmatpush3.msra.mxu1 %v24220_v35  ;;  %22785 = vmatprep.subr.mxu0 %v24194_v28 }
 0x8b8   : > { %22794 = vmatprep.subr.mxu1 %v24225_v37  ;;  %22786 = vmatpush3.msra.mxu0 %v24194_v28 }
 0x8b9   : > { %22795 = vmatpush3.msra.mxu1 %v24225_v37  ;;  %22787 = vmatprep.subr.mxu0 %v24198_v29 }
 0x8ba   : > { %22806 = vmatprep.subr.mxu1 %v24194_v28  ;;  %22788 = vmatpush3.msra.mxu0 %v24198_v29 }
 0x8bb   : > { %22799 = vmatprep.subr.mxu0 %v24204_v30 }
 0x956   : > { %v22714_v40 = vpop.f32.mrf.mxu1 }
 0x958   : > { %v25013_v5 = vpop.f32.mrf.mxu1 }
 0x95a   : > { %v22728_v44 = vpop.f32.mrf.mxu1 }
 0x95c   : > { %v25015_v20 = vpop.f32.mrf.mxu1 }
 0x95e   : > { %v22707_v2 = vpop.f32.mrf.mxu0  ;;  %v22742_v7 = vpop.f32.mrf.mxu1 }
 0x95f   : > { %v9177_v23 = vadd.f32 %v22714_v40, %v22707_v2 }
 0x960   : > { %v25017_v36 = vpop.f32.mrf.mxu0  ;;  %v25021_v27 = vpop.f32.mrf.mxu1 }
 0x962   : > { %v22721_v61 = vpop.f32.mrf.mxu0 }
 0x963   : > { %v9260_v21 = vadd.f32 %v22721_v61, %v9177_v23 }
 0x964   : > { %v25019_v8 = vpop.f32.mrf.mxu0 }
 0x965   : > { %v9343_v57 = vadd.f32 %v22728_v44, %v9260_v21  ;;  %v10545_v44 = vadd.f32 0.0001, %v24865_v1 }
 0x966   : > { %v22735_v42 = vpop.f32.mrf.mxu0 }
 0x967   : > { %v9426_v54 = vadd.f32 %v22735_v42, %v9343_v57 }
 0x968   : > { %v25023_v51 = vpop.f32.mrf.mxu0 }
 0x969   : > { %v9505_v19 = vadd.f32 %v22742_v7, %v9426_v54  ;;  %v22756_v50 = vpop.f32.mrf.mxu1 }
 0x96a   : > { %v22749_v11 = vpop.f32.mrf.mxu0 }
 0x96b   : > { %v10529_v26 = vsub.f32 %v9505_v19, %v24858_v22  ;;  %v9674_v63 = vpop.f32.mrf.mxu1  ;;  %v9681_v43 = vadd.f32 %v22756_v50, %v22749_v11  ;;  %v25033_v19 = vld [vmem:[%s24143_s6 + $0x28] sm:$0xff]  ;;  %v25039_v11 = vld [vmem:[%s24143_s6 + $0x20] sm:$0xff] }
 0x96c   : > { %v9583_v49 = vpop.f32.mrf.mxu0 }
 0x96d   : > { %v10547_v6 = vadd.f32 %v10529_v26, %v10527_v33  ;;  %v9675_v23 = vadd.f32 %v9674_v63, %v9583_v49  ;;  %v25036_v33 = vand.u32 4294901760, %v25033_v19 }
 0x96e   : > { %v22763_v40 = vpop.f32.mrf.mxu0 }
 0x96f   : > { %v10549_v2 = vadd.f32 0.0009, %v10547_v6  ;;  %v9764_v61 = vadd.f32 %v22763_v40, %v9681_v43  ;;  %v10708_v40 = vsub.f32 %v25033_v19, %v25036_v33 }
 0x970   : > { %v22770_v7 = vpop.f32.mrf.mxu1  ;;  %v9756_v21 = vpop.f32.mrf.mxu0 }
 0x971   : > { %v25030_v57 = vmul.f32 %v10549_v2, %v10545_v44  ;;  %v9847_v22 = vadd.f32 %v22770_v7, %v9764_v61  ;;  %v9757_v42 = vadd.f32 %v9756_v21, %v9675_v23  ;;  %v25045_v44 = vand.u32 4294901760, %v25039_v11 }
 0x972   : > { %v9838_v54 = vpop.f32.mrf.mxu1  ;;  %v25048_v21 = vand.u32 4294901760, %v10708_v40 }
 0x973   : > { %v9839_v58 = vadd.f32 %v9838_v54, %v9757_v42  ;;  %23754 = vrcp.f32 %v25030_v57 }
 0x974   : > { %v22777_v60 = vpop.f32.mrf.mxu0 }
 0x975   : > { %v9930_v62 = vadd.f32 %v22777_v60, %v9847_v22 }
 0x976   : > { %v22784_v1 = vpop.f32.mrf.mxu1  ;;  %v9923_v50 = vpop.f32.mrf.mxu0 }
 0x977   : > { %v10009_v26 = vadd.f32 %v22784_v1, %v9930_v62  ;;  %v9924_v49 = vadd.f32 %v9923_v50, %v9839_v58  ;;  %v10715_v58 = vsub.f32 %v25039_v11, %v25045_v44  ;;  %v10710_v62 = vsub.f32 %v10708_v40, %v25048_v21 }
 0x978   : > { %v10002_v63 = vpop.f32.mrf.mxu1 }
 0x979   : > { %v10016_v6 = vsel %vm333_vm0, %v10009_v26, 0  ;;  %v10003_v43 = vadd.f32 %v10002_v63, %v9924_v49  ;;  %v10716_v1 = vand.u32 4294901760, %v10715_v58  ;;  %v10711_v63 = vand.u32 4294901760, %v10710_v62 }
 0x97a   : > { %v10095_v2 = vand.u32 4294901760, %v10016_v6 }
 0x97b   : > { %v10013_v23 = vsel %vm333_vm0, %v10003_v43, 0 }
 0x97c   : > { %v10096_v61 = vsub.f32 %v10016_v6, %v10095_v2  ;;  %v10085_v7 = vand.u32 4294901760, %v10013_v23  ;;  %v10717_v6 = vsub.f32 %v10715_v58, %v10716_v1 }
 0x97e   : > { %v10097_v22 = vand.u32 4294901760, %v10096_v61  ;;  %v10086_v42 = vsub.f32 %v10013_v23, %v10085_v7  ;;  %22796 = vmatprep.mubr.f32.mxu1 %v10085_v7  ;;  %v10718_v43 = vand.u32 4294901760, %v10717_v6 }
 0x97f   : > { %22797 = vmatmul.mubr.f32.vlgmr.msra.gmra.mxu1 %v10095_v2 }
 0x980   : > { %22807 = vmatpush3.msra.mxu1 %v24194_v28  ;;  %v10087_v54 = vand.u32 4294901760, %v10086_v42  ;;  %v10098_v60 = vsub.f32 %v10096_v61, %v10097_v22 }
 0x981   : > { %22808 = vmatprep.subr.mxu1 %v24198_v29 }
 0x982   : > { %22809 = vmatpush3.msra.mxu1 %v24198_v29  ;;  %22810 = vmatprep.mubr.f32.mxu1 %v10087_v54  ;;  %v10088_v50 = vsub.f32 %v10086_v42, %v10087_v54  ;;  %v10099_v49 = vand.u32 4294901760, %v10098_v60 }
 0x983   : > { %22811 = vmatmul.mubr.f32.vlgmr.msra.gmra.mxu1 %v10097_v22  ;;  %22820 = vmatprep.subr.mxu1 %v24194_v28 }
 0x984   : > { %22821 = vmatpush3.msra.mxu1 %v24194_v28  ;;  %22824 = vmatprep.mubr.f32.mxu1 %v10085_v7  ;;  %v10089_v26 = vand.u32 4294901760, %v10088_v50 }
 0x985   : > { %22822 = vmatprep.subr.mxu1 %v24198_v29 }
 0x986   : > { %22789 = vmatprep.mubr.f32.mxu0 %v10089_v26  ;;  %22823 = vmatpush3.msra.mxu1 %v24198_v29 }
 0x987   : > { %22790 = vmatmul.mubr.f32.vlgmr.msra.gmra.mxu0 %v10099_v49  ;;  %22825 = vmatmul.mubr.f32.vlgmr.msra.gmra.mxu1 %v10095_v2 }
 0x988   : > { %22800 = vmatpush3.msra.mxu0 %v24204_v30  ;;  %22803 = vmatprep.mubr.f32.mxu0 %v10086_v42 }
 0x989   : > { %22801 = vmatprep.subr.mxu0 %v24210_v31  ;;  %22834 = vmatprep.subr.mxu1 %v10711_v63 }
 0x98a   : > { %22802 = vmatpush3.msra.mxu0 %v24210_v31  ;;  %22835 = vmatpush3.msra.mxu1 %v10711_v63 }
 0x98b   : > { %22804 = vmatmul.mubr.f32.vlgmr.msra.gmra.mxu0 %v10096_v61  ;;  %22813 = vmatprep.subr.mxu0 %v24213_v32  ;;  %v8159_v61 = vadd.f32 %v24932_v55, %v24936_v15 }
 0x98c   : > { %22814 = vmatpush3.msra.mxu0 %v24213_v32  ;;  %22817 = vmatprep.mubr.f32.mxu0 %v10085_v7 }
 0x98d   : > { %22815 = vmatprep.subr.mxu0 %v24218_v34  ;;  %22836 = vmatprep.subr.mxu1 %v10718_v43 }
 0x98e   : > { %22816 = vmatpush3.msra.mxu0 %v24218_v34  ;;  %22837 = vmatpush3.msra.mxu1 %v10718_v43 }
 0x98f   : > { %22818 = vmatmul.mubr.f32.vlgmr.msra.gmra.mxu0 %v10095_v2  ;;  %22827 = vmatprep.subr.mxu0 %v25036_v33  ;;  %v9171_v2 = vadd.f32 %v25013_v5, %v25017_v36 }
 0x990   : > { %22828 = vmatpush3.msra.mxu0 %v25036_v33  ;;  %22831 = vmatprep.mubr.f32.mxu0 %v24182_v24 }
 0x991   : > { %22829 = vmatprep.subr.mxu0 %v25045_v44  ;;  %22838 = vmatprep.mubr.f32.mxu1 %v24160_v9  ;;  %v9253_v7 = vadd.f32 %v25019_v8, %v9171_v2 }
 0x992   : > { %22830 = vmatpush3.msra.mxu0 %v25045_v44  ;;  %22839 = vmatmul.mubr.f32.vlgmr.msra.gmra.mxu1 %v24162_v10 }
 0x993   : > { %22832 = vmatmul.mubr.f32.vlgmr.msra.gmra.mxu0 %v24184_v25  ;;  %22841 = vmatprep.subr.mxu0 %v10708_v40 }
 0x994   : > { %22842 = vmatpush3.msra.mxu0 %v10708_v40  ;;  %22848 = vmatprep.subr.mxu1 %v25036_v33  ;;  %v6137_v40 = vadd.f32 %v24763_v38, %v24767_v3  ;;  %v9335_v38 = vadd.f32 %v25015_v20, %v9253_v7 }
 0x995   : > { %22843 = vmatprep.subr.mxu0 %v10715_v58  ;;  %22849 = vmatpush3.msra.mxu1 %v25036_v33 }
 0x996   : > { %22844 = vmatpush3.msra.mxu0 %v10715_v58  ;;  %22845 = vmatprep.mubr.f32.mxu0 %v24166_v13  ;;  %v6219_v23 = vadd.f32 %v24769_v39, %v6137_v40  ;;  %v8241_v58 = vadd.f32 %v24938_v53, %v8159_v61  ;;  %v9420_v39 = vadd.f32 %v25023_v51, %v9335_v38 }
 0x997   : > { %22850 = vmatprep.subr.mxu1 %v25045_v44  ;;  %22846 = vmatmul.mubr.f32.vlgmr.msra.gmra.mxu0 %v24170_v14 }
 0x998   : > { %22851 = vmatpush3.msra.mxu1 %v25045_v44  ;;  %22852 = vmatprep.mubr.f32.mxu1 %v24173_v17  ;;  %v9499_v53 = vadd.f32 %v25021_v27, %v9420_v39 }
 0x999   : > { %22855 = vmatprep.subr.mxu0 %v25048_v21  ;;  %22853 = vmatmul.mubr.f32.vlgmr.msra.gmra.mxu1 %v24176_v18 }
 0x99a   : > { %22856 = vmatpush3.msra.mxu0 %v25048_v21  ;;  %22862 = vmatprep.subr.mxu1 %v25036_v33 }
 0x99b   : > { %22857 = vmatprep.subr.mxu0 %v10716_v1  ;;  %22863 = vmatpush3.msra.mxu1 %v25036_v33  ;;  %v7147_v33 = vadd.f32 %v24842_v4, %v24846_v59  ;;  %v6301_v4 = vadd.f32 %v24765_v0, %v6219_v23  ;;  %v8323_v59 = vadd.f32 %v24934_v16, %v8241_v58 }
 0x99c   : > { %22858 = vmatpush3.msra.mxu0 %v10716_v1  ;;  %22859 = vmatprep.mubr.f32.mxu0 %v24160_v9 }
 0x99d   : > { %22864 = vmatprep.subr.mxu1 %v25045_v44  ;;  %22860 = vmatmul.mubr.f32.vlgmr.msra.gmra.mxu0 %v24162_v10  ;;  %v8408_v15 = vadd.f32 %v24942_v56, %v8323_v59 }
 0x99e   : > { %22865 = vmatpush3.msra.mxu1 %v25045_v44  ;;  %22866 = vmatprep.mubr.f32.mxu1 %v24160_v9  ;;  %v7229_v44 = vadd.f32 %v24848_v52, %v7147_v33  ;;  %v6386_v52 = vadd.f32 %v24773_v48, %v6301_v4 }
 0x99f   : > { %22867 = vmatmul.mubr.f32.vlgmr.msra.gmra.mxu1 %v24162_v10  ;;  %22876 = vmatprep.subr.mxu1 %v24220_v35  ;;  %v8487_v0 = vadd.f32 %v24940_v45, %v8408_v15 }
 0x9a0   : > { %22877 = vmatpush3.msra.mxu1 %v24220_v35  ;;  %22869 = vmatprep.subr.mxu0 %v24194_v28  ;;  %v7311_v21 = vadd.f32 %v24844_v41, %v7229_v44  ;;  %v6465_v41 = vadd.f32 %v24771_v12, %v6386_v52 }
 0x9a1   : > { %22878 = vmatprep.subr.mxu1 %v24225_v37  ;;  %22870 = vmatpush3.msra.mxu0 %v24194_v28 }
 0x9a2   : > { %22879 = vmatpush3.msra.mxu1 %v24225_v37  ;;  %22871 = vmatprep.subr.mxu0 %v24198_v29  ;;  %v7396_v3 = vadd.f32 %v24852_v46, %v7311_v21  ;;  %v10520_v36 = vmul.f32 %v6465_v41, %v6465_v41  ;;  %v25942_v21 = vld [vmem:[#allocation11_spill] sm:$0xff] }
 0x9a3   : > { %22890 = vmatprep.subr.mxu1 %v24194_v28  ;;  %22872 = vmatpush3.msra.mxu0 %v24198_v29  ;;  %v10533_v58 = vmul.f32 2.0, %v25942_v21 }
 0x9a4   : > { %22883 = vmatprep.subr.mxu0 %v24204_v30  ;;  %v7475_v55 = vadd.f32 %v24850_v47, %v7396_v3  ;;  %v10526_v16 = vsub.f32 %v8487_v0, %v10520_v36 }
 0x9a6   : > { %v10522_v5 = vmul.f32 %v7475_v55, %v7475_v55  ;;  %v10524_v44 = vmul.f32 %v7475_v55, %v6465_v41 }
 0x9a8   : > { %v10528_v46 = vsub.f32 %v9499_v53, %v10522_v5  ;;  %v10542_v42 = vadd.f32 %v10522_v5, %v10520_v36  ;;  %v10532_v59 = vmul.f32 2.0, %v10524_v44  ;;  %v10535_v5 = vadd.f32 0.0001, %v10533_v58 }
 0x9aa   : > { %v10546_v22 = vadd.f32 %v10528_v46, %v10526_v16  ;;  %v10544_v56 = vadd.f32 0.0001, %v10542_v42  ;;  %v10534_v46 = vadd.f32 0.0001, %v10532_v59 }
 0x9ac   : > { %v10548_v54 = vadd.f32 0.0009, %v10546_v22 }
 0x9ae   : > { %v10550_v1 = vmul.f32 %v10548_v54, %v10544_v56  ;;  %v25131_v54 = vld [vmem:[%s24232_s28 + $0x28] sm:$0xff] }
 0x9b0   : > { %23756 = vrcp.f32 %v10550_v1 }
 0xa3f   : > { %v22798_v20 = vpop.f32.mrf.mxu1 }
 0xa41   : > { %v10182_v8 = vpop.f32.mrf.mxu1 }
 0xa43   : > { %v22812_v48 = vpop.f32.mrf.mxu1 }
 0xa45   : > { %v10346_v47 = vpop.f32.mrf.mxu1 }
 0xa47   : > { %v22791_v51 = vpop.f32.mrf.mxu0  ;;  %v22826_v27 = vpop.f32.mrf.mxu1 }
 0xa48   : > { %v10189_v62 = vadd.f32 %v22798_v20, %v22791_v51 }
 0xa49   : > { %v10091_v60 = vpop.f32.mrf.mxu0  ;;  %v10510_v43 = vpop.f32.mrf.mxu1 }
 0xa4a   : > { %v10183_v50 = vadd.f32 %v10182_v8, %v10091_v60 }
 0xa4b   : > { %v22805_v12 = vpop.f32.mrf.mxu0 }
 0xa4c   : > { %v10272_v26 = vadd.f32 %v22805_v12, %v10189_v62 }
 0xa4d   : > { %v10264_v45 = vpop.f32.mrf.mxu0 }
 0xa4e   : > { %v10265_v49 = vadd.f32 %v10264_v45, %v10183_v50  ;;  %v10355_v63 = vadd.f32 %v22812_v48, %v10272_v26  ;;  %v25134_v50 = vand.u32 4294901760, %v25131_v54 }
 0xa4f   : > { %v22819_v6 = vpop.f32.mrf.mxu0 }
 0xa50   : > { %v10438_v33 = vadd.f32 %v22819_v6, %v10355_v63  ;;  %v10347_v40 = vadd.f32 %v10346_v47, %v10265_v49  ;;  %v23755_v47 = vpop.eup %23754  ;;  %v25139_v6 = vld [vmem:[%s24232_s28 + $0x20] sm:$0xff] }
 0xa51   : > { %v10431_v2 = vpop.f32.mrf.mxu0  ;;  %v23757_v1 = vpop.eup %23756 }
 0xa52   : > { %v10517_v23 = vadd.f32 %v22826_v27, %v10438_v33  ;;  %v10432_v61 = vadd.f32 %v10431_v2, %v10347_v40  ;;  %v22840_v7 = vpop.f32.mrf.mxu1 }
 0xa53   : > { %v22833_v4 = vpop.f32.mrf.mxu0 }
 0xa54   : > { %v10531_v38 = vsub.f32 %v10517_v23, %v25942_v21  ;;  %v10511_v3 = vadd.f32 %v10510_v43, %v10432_v61  ;;  %v10755_v52 = vpop.f32.mrf.mxu1  ;;  %v10762_v53 = vadd.f32 %v22840_v7, %v22833_v4  ;;  %v25147_v61 = vsub.f32 %v25131_v54, %v25134_v50 }
 0xa55   : > { %v10664_v57 = vpop.f32.mrf.mxu0  ;;  %v25152_v4 = vand.u32 4294901760, %v25139_v6 }
 0xa56   : > { %v10537_v39 = vmul.f32 2.0, %v10531_v38  ;;  %v10530_v15 = vsub.f32 %v10511_v3, %v10524_v44  ;;  %v10756_v20 = vadd.f32 %v10755_v52, %v10664_v57 }
 0xa57   : > { %v22847_v0 = vpop.f32.mrf.mxu0 }
 0xa58   : > { %v10539_v55 = vadd.f32 0.0009, %v10537_v39  ;;  %v10536_v41 = vmul.f32 2.0, %v10530_v15  ;;  %v10845_v36 = vadd.f32 %v22847_v0, %v10762_v53  ;;  %v25157_v15 = vand.u32 4294901760, %v25147_v61 }
 0xa59   : > { %v22854_v8 = vpop.f32.mrf.mxu1  ;;  %v10837_v16 = vpop.f32.mrf.mxu0  ;;  %v11725_v53 = vsub.f32 %v25139_v6, %v25152_v4 }
 0xa5a   : > { %v10538_v22 = vadd.f32 0.0009, %v10536_v41  ;;  %v10928_v48 = vadd.f32 %v22854_v8, %v10845_v36  ;;  %v10838_v42 = vadd.f32 %v10837_v16, %v10756_v20  ;;  %v10541_v51 = vmul.f32 %v10539_v55, %v10535_v5 }
 0xa5b   : > { %v10919_v60 = vpop.f32.mrf.mxu1  ;;  %v11720_v20 = vsub.f32 %v25147_v61, %v25157_v15  ;;  %v11726_v36 = vand.u32 4294901760, %v11725_v53 }
 0xa5c   : > { %v10920_v56 = vadd.f32 %v10919_v60, %v10838_v42  ;;  %v10540_v62 = vmul.f32 %v10538_v22, %v10534_v46  ;;  %v10555_v12 = vmul.f32 %v23755_v47, %v10541_v51 }
 0xa5d   : > { %v22861_v27 = vpop.f32.mrf.mxu0  ;;  %v11721_v22 = vand.u32 4294901760, %v11720_v20 }
 0xa5e   : > { %v11011_v26 = vadd.f32 %v22861_v27, %v10928_v48  ;;  %v10553_v45 = vmul.f32 %v23757_v1, %v10540_v62  ;;  %21007 = vst.msk [vmem:[%s24679_s15 + $0x18] sm:$0xff] %vm333_vm0, %v10555_v12  ;;  %v10560_v44 = vsel %vm333_vm0, %v10555_v12, inf  ;;  %v10572_v59 = vsel %vm333_vm0, %v10555_v12, -inf }
 0xa5f   : > { %v22868_v49 = vpop.f32.mrf.mxu1  ;;  %v11004_v63 = vpop.f32.mrf.mxu0  ;;  %v11727_v48 = vsub.f32 %v11725_v53, %v11726_v36 }
 0xa60   : > { %v11090_v43 = vadd.f32 %v22868_v49, %v11011_v26  ;;  %v11005_v33 = vadd.f32 %v11004_v63, %v10920_v56  ;;  %v10559_v40 = vsel %vm333_vm0, %v10553_v45, inf  ;;  %21006 = vst.msk [vmem:[%s24679_s15 + $0x10] sm:$0xff] %vm333_vm0, %v10553_v45  ;;  %v10571_v58 = vsel %vm333_vm0, %v10553_v45, -inf }
 0xa61   : > { %v11083_v2 = vpop.f32.mrf.mxu1  ;;  %v10561_v23 = vmin.f32 %v10559_v40, %v10560_v44  ;;  %v10573_v39 = vmax.f32 %v10571_v58, %v10572_v59  ;;  %v11728_v42 = vand.u32 4294901760, %v11727_v48 }
 0xa62   : > { %v11097_v7 = vsel %vm333_vm0, %v11090_v43, 0  ;;  %v11084_v21 = vadd.f32 %v11083_v2, %v11005_v33 }
 0xa63   : > { %v11176_v38 = vand.u32 4294901760, %v11097_v7  ;;  %10562 = vmin.xlane.f32.xlu1 %v10561_v23 }
 0xa64   : > { %v11094_v3 = vsel %vm333_vm0, %v11084_v21, 0 }
 0xa65   : > { %v11177_v57 = vsub.f32 %v11097_v7, %v11176_v38  ;;  %v11166_v52 = vand.u32 4294901760, %v11094_v3 }
 0xa67   : > { %v11178_v5 = vand.u32 4294901760, %v11177_v57  ;;  %v11167_v0 = vsub.f32 %v11094_v3, %v11166_v52  ;;  %22880 = vmatprep.mubr.f32.mxu1 %v11166_v52  ;;  %10574 = vmax.xlane.f32.xlu1 %v10573_v39 }
 0xa68   : > { %22881 = vmatmul.mubr.f32.vlgmr.msra.gmra.mxu1 %v11176_v38 }
 0xa69   : > { %22891 = vmatpush3.msra.mxu1 %v24194_v28  ;;  %v11168_v55 = vand.u32 4294901760, %v11167_v0  ;;  %v11179_v41 = vsub.f32 %v11177_v57, %v11178_v5 }
 0xa6a   : > { %22892 = vmatprep.subr.mxu1 %v24198_v29 }
 0xa6b   : > { %22893 = vmatpush3.msra.mxu1 %v24198_v29  ;;  %22894 = vmatprep.mubr.f32.mxu1 %v11168_v55  ;;  %v11169_v46 = vsub.f32 %v11167_v0, %v11168_v55  ;;  %v11180_v16 = vand.u32 4294901760, %v11179_v41 }
 0xa6c   : > { %22895 = vmatmul.mubr.f32.vlgmr.msra.gmra.mxu1 %v11178_v5  ;;  %22904 = vmatprep.subr.mxu1 %v24194_v28 }
 0xa6d   : > { %22905 = vmatpush3.msra.mxu1 %v24194_v28  ;;  %22908 = vmatprep.mubr.f32.mxu1 %v11166_v52  ;;  %v11170_v8 = vand.u32 4294901760, %v11169_v46 }
 0xa6e   : > { %22906 = vmatprep.subr.mxu1 %v24198_v29 }
 0xa6f   : > { %22873 = vmatprep.mubr.f32.mxu0 %v11170_v8  ;;  %22907 = vmatpush3.msra.mxu1 %v24198_v29 }
 0xa70   : > { %22874 = vmatmul.mubr.f32.vlgmr.msra.gmra.mxu0 %v11180_v16  ;;  %22909 = vmatmul.mubr.f32.vlgmr.msra.gmra.mxu1 %v11176_v38 }
 0xa71   : > { %22884 = vmatpush3.msra.mxu0 %v24204_v30  ;;  %22887 = vmatprep.mubr.f32.mxu0 %v11167_v0 }
 0xa72   : > { %22885 = vmatprep.subr.mxu0 %v24210_v31  ;;  %22918 = vmatprep.subr.mxu1 %v11721_v22 }
 0xa73   : > { %22886 = vmatpush3.msra.mxu0 %v24210_v31  ;;  %22919 = vmatpush3.msra.mxu1 %v11721_v22 }
 0xa74   : > { %22888 = vmatmul.mubr.f32.vlgmr.msra.gmra.mxu0 %v11177_v57  ;;  %22897 = vmatprep.subr.mxu0 %v24213_v32 }
 0xa75   : > { %22898 = vmatpush3.msra.mxu0 %v24213_v32  ;;  %22901 = vmatprep.mubr.f32.mxu0 %v11166_v52 }
 0xa76   : > { %22899 = vmatprep.subr.mxu0 %v24218_v34  ;;  %22920 = vmatprep.subr.mxu1 %v11728_v42 }
 0xa77   : > { %22900 = vmatpush3.msra.mxu0 %v24218_v34  ;;  %22921 = vmatpush3.msra.mxu1 %v11728_v42 }
 0xa78   : > { %22902 = vmatmul.mubr.f32.vlgmr.msra.gmra.mxu0 %v11176_v38  ;;  %22911 = vmatprep.subr.mxu0 %v25134_v50 }
 0xa79   : > { %22912 = vmatpush3.msra.mxu0 %v25134_v50  ;;  %22915 = vmatprep.mubr.f32.mxu0 %v24182_v24 }
 0xa7a   : > { %22913 = vmatprep.subr.mxu0 %v25152_v4  ;;  %22922 = vmatprep.mubr.f32.mxu1 %v24160_v9 }
 0xa7b   : > { %22914 = vmatpush3.msra.mxu0 %v25152_v4  ;;  %22923 = vmatmul.mubr.f32.vlgmr.msra.gmra.mxu1 %v24162_v10 }
 0xa7c   : > { %22916 = vmatmul.mubr.f32.vlgmr.msra.gmra.mxu0 %v24184_v25  ;;  %22925 = vmatprep.subr.mxu0 %v25147_v61 }
 0xa7d   : > { %22926 = vmatpush3.msra.mxu0 %v25147_v61  ;;  %22932 = vmatprep.subr.mxu1 %v25134_v50 }
 0xa7e   : > { %22927 = vmatprep.subr.mxu0 %v11725_v53  ;;  %22933 = vmatpush3.msra.mxu1 %v25134_v50 }
 0xa7f   : > { %22928 = vmatpush3.msra.mxu0 %v11725_v53  ;;  %22929 = vmatprep.mubr.f32.mxu0 %v24166_v13 }
 0xa80   : > { %22934 = vmatprep.subr.mxu1 %v25152_v4  ;;  %22930 = vmatmul.mubr.f32.vlgmr.msra.gmra.mxu0 %v24170_v14 }
 0xa81   : > { %22935 = vmatpush3.msra.mxu1 %v25152_v4  ;;  %22936 = vmatprep.mubr.f32.mxu1 %v24173_v17 }
 0xa82   : > { %22939 = vmatprep.subr.mxu0 %v25157_v15  ;;  %22937 = vmatmul.mubr.f32.vlgmr.msra.gmra.mxu1 %v24176_v18 }
 0xa83   : > { %22940 = vmatpush3.msra.mxu0 %v25157_v15  ;;  %22946 = vmatprep.subr.mxu1 %v25134_v50 }
 0xa84   : > { %22941 = vmatprep.subr.mxu0 %v11726_v36  ;;  %22947 = vmatpush3.msra.mxu1 %v25134_v50 }
 0xa85   : > { %22942 = vmatpush3.msra.mxu0 %v11726_v36  ;;  %22943 = vmatprep.mubr.f32.mxu0 %v24160_v9 }
 0xa86   : > { %22948 = vmatprep.subr.mxu1 %v25152_v4  ;;  %22944 = vmatmul.mubr.f32.vlgmr.msra.gmra.mxu0 %v24162_v10 }
 0xa87   : > { %22949 = vmatpush3.msra.mxu1 %v25152_v4  ;;  %22950 = vmatprep.mubr.f32.mxu1 %v24160_v9 }
 0xa88   : > { %22951 = vmatmul.mubr.f32.vlgmr.msra.gmra.mxu1 %v24162_v10  ;;  %22960 = vmatprep.subr.mxu1 %v24220_v35 }
 0xa89   : > { %22961 = vmatpush3.msra.mxu1 %v24220_v35  ;;  %22953 = vmatprep.subr.mxu0 %v24194_v28 }
 0xa8a   : > { %22962 = vmatprep.subr.mxu1 %v24225_v37  ;;  %22954 = vmatpush3.msra.mxu0 %v24194_v28 }
 0xa8b   : > { %22963 = vmatpush3.msra.mxu1 %v24225_v37  ;;  %22955 = vmatprep.subr.mxu0 %v24198_v29 }
 0xa8c   : > { %22974 = vmatprep.subr.mxu1 %v24194_v28  ;;  %22956 = vmatpush3.msra.mxu0 %v24198_v29 }
 0xa8d   : > { %22967 = vmatprep.subr.mxu0 %v24204_v30 }
 0xaec   : > { %v10563_v51 = vpop.xlane.xlu1 %10562 }
 0xaed   : > { %v10564_v47 = vrot.slane %v10563_v51, 4 }
 0xaef   : > { %v10565_v60 = vmin.f32 %v10563_v51, %v10564_v47 }
 0xaf0   : > { %v10575_v56 = vpop.xlane.xlu1 %10574 }
 0xaf1   : > { %v10566_v62 = vrot.slane %v10565_v60, 2  ;;  %v10576_v12 = vrot.slane %v10575_v56, 4 }
 0xaf3   : > { %v10577_v1 = vmax.f32 %v10575_v56, %v10576_v12  ;;  %v10567_v27 = vmin.f32 %v10565_v60, %v10566_v62  ;;  %v12612_v62 = vmul.f32 %v25033_v19, %v25033_v19 }
 0xaf5   : > { %v10578_v50 = vrot.slane %v10577_v1, 2  ;;  %v10568_v26 = vrot.slane %v10567_v27, 1 }
 0xaf7   : > { %v10569_v45 = vmin.f32 %v10567_v27, %v10568_v26  ;;  %v10579_v49 = vmax.f32 %v10577_v1, %v10578_v50  ;;  %v25221_v26 = vand.u32 4294901760, %v12612_v62 }
 0xaf9   : > { %23671 = vpush %v10569_v45  ;;  %v10580_v63 = vrot.slane %v10579_v49, 1  ;;  %v12611_v45 = vmul.f32 %v25039_v11, %v25039_v11 }
 0xafb   : > { %v10581_v43 = vmax.f32 %v10579_v49, %v10580_v63  ;;  %v25227_v19 = vand.u32 4294901760, %v12611_v45 }
 0xafd   : > { %23673 = vpush %v10581_v43  ;;  %v12737_v11 = vsub.f32 %v12611_v45, %v25227_v19 }
 0xb28   : > { %v22882_v33 = vpop.f32.mrf.mxu1 }
 0xb2a   : > { %v11263_v40 = vpop.f32.mrf.mxu1  ;;  %s23672_s21 = spop %23671 }
 0xb2b   : > { %s10583_s16 = smin.f32 %s23672_s21, %s23668_s18 }
 0xb2c   : > { %v22896_v44 = vpop.f32.mrf.mxu1 }
 0xb2e   : > { %v11427_v23 = vpop.f32.mrf.mxu1  ;;  %s23674_s17 = spop %23673 }
 0xb2f   : > { %s10584_s25 = smax.f32 %s23674_s17, %s23670_s14 }
 0xb30   : > { %v22875_v2 = vpop.f32.mrf.mxu0  ;;  %v22910_v58 = vpop.f32.mrf.mxu1 }
 0xb31   : > { %v11270_v61 = vadd.f32 %v22882_v33, %v22875_v2 }
 0xb32   : > { %v11172_v7 = vpop.f32.mrf.mxu0  ;;  %v11591_v39 = vpop.f32.mrf.mxu1 }
 0xb33   : > { %v11264_v4 = vadd.f32 %v11263_v40, %v11172_v7 }
 0xb34   : > { %v22889_v21 = vpop.f32.mrf.mxu0 }
 0xb35   : > { %v11353_v38 = vadd.f32 %v22889_v21, %v11270_v61 }
 0xb36   : > { %v11345_v3 = vpop.f32.mrf.mxu0 }
 0xb37   : > { %v11346_v59 = vadd.f32 %v11345_v3, %v11264_v4  ;;  %v11436_v57 = vadd.f32 %v22896_v44, %v11353_v38 }
 0xb38   : > { %v22903_v52 = vpop.f32.mrf.mxu0 }
 0xb39   : > { %v11519_v15 = vadd.f32 %v22903_v52, %v11436_v57  ;;  %v11428_v53 = vadd.f32 %v11427_v23, %v11346_v59  ;;  %v12730_v23 = vsub.f32 %v12612_v62, %v25221_v26 }
 0xb3a   : > { %v11512_v5 = vpop.f32.mrf.mxu0 }
 0xb3b   : > { %v25215_v0 = vadd.f32 %v22910_v58, %v11519_v15  ;;  %v11513_v55 = vadd.f32 %v11512_v5, %v11428_v53  ;;  %v22924_v41 = vpop.f32.mrf.mxu1  ;;  %v25230_v4 = vand.u32 4294901760, %v12730_v23 }
 0xb3c   : > { %v22917_v20 = vpop.f32.mrf.mxu0 }
 0xb3d   : > { %v25217_v36 = vadd.f32 %v11591_v39, %v11513_v55  ;;  %v11765_v8 = vpop.f32.mrf.mxu1  ;;  %v11772_v16 = vadd.f32 %v22924_v41, %v22917_v20  ;;  %v12732_v52 = vsub.f32 %v12730_v23, %v25230_v4  ;;  %v12738_v39 = vand.u32 4294901760, %v12737_v11 }
 0xb3e   : > { %v11674_v46 = vpop.f32.mrf.mxu0 }
 0xb3f   : > { %v11766_v48 = vadd.f32 %v11765_v8, %v11674_v46  ;;  %v12733_v55 = vand.u32 4294901760, %v12732_v52  ;;  %v12739_v41 = vsub.f32 %v12737_v11, %v12738_v39 }
 0xb40   : > { %v22931_v22 = vpop.f32.mrf.mxu0 }
 0xb41   : > { %v11855_v42 = vadd.f32 %v22931_v22, %v11772_v16  ;;  %v12740_v20 = vand.u32 4294901760, %v12739_v41 }
 0xb42   : > { %v22938_v51 = vpop.f32.mrf.mxu1  ;;  %v11847_v47 = vpop.f32.mrf.mxu0 }
 0xb43   : > { %v11938_v60 = vadd.f32 %v22938_v51, %v11855_v42  ;;  %v11848_v56 = vadd.f32 %v11847_v47, %v11766_v48 }
 0xb44   : > { %v11929_v12 = vpop.f32.mrf.mxu1 }
 0xb45   : > { %v11930_v1 = vadd.f32 %v11929_v12, %v11848_v56 }
 0xb46   : > { %v22945_v27 = vpop.f32.mrf.mxu0 }
 0xb47   : > { %v12021_v50 = vadd.f32 %v22945_v27, %v11938_v60 }
 0xb48   : > { %v22952_v49 = vpop.f32.mrf.mxu1  ;;  %v12014_v63 = vpop.f32.mrf.mxu0 }
 0xb49   : > { %v12100_v43 = vadd.f32 %v22952_v49, %v12021_v50  ;;  %v12015_v33 = vadd.f32 %v12014_v63, %v11930_v1 }
 0xb4a   : > { %v12093_v40 = vpop.f32.mrf.mxu1 }
 0xb4b   : > { %v12107_v44 = vsel %vm333_vm0, %v12100_v43, 0  ;;  %v12094_v2 = vadd.f32 %v12093_v40, %v12015_v33 }
 0xb4c   : > { %v12186_v61 = vand.u32 4294901760, %v12107_v44 }
 0xb4d   : > { %v12104_v7 = vsel %vm333_vm0, %v12094_v2, 0  ;;  %v25286_v2 = vmul.f32 %v25215_v0, %v25215_v0 }
 0xb4e   : > { %v12187_v21 = vsub.f32 %v12107_v44, %v12186_v61  ;;  %v12176_v58 = vand.u32 4294901760, %v12104_v7 }
 0xb50   : > { %v12188_v38 = vand.u32 4294901760, %v12187_v21  ;;  %v12177_v3 = vsub.f32 %v12104_v7, %v12176_v58  ;;  %22964 = vmatprep.mubr.f32.mxu1 %v12176_v58 }
 0xb51   : > { %22965 = vmatmul.mubr.f32.vlgmr.msra.gmra.mxu1 %v12186_v61 }
 0xb52   : > { %22975 = vmatpush3.msra.mxu1 %v24194_v28  ;;  %v12178_v59 = vand.u32 4294901760, %v12177_v3  ;;  %v12189_v57 = vsub.f32 %v12187_v21, %v12188_v38 }
 0xb53   : > { %22976 = vmatprep.subr.mxu1 %v24198_v29 }
 0xb54   : > { %22977 = vmatpush3.msra.mxu1 %v24198_v29  ;;  %22978 = vmatprep.mubr.f32.mxu1 %v12178_v59  ;;  %v12179_v15 = vsub.f32 %v12177_v3, %v12178_v59  ;;  %v12190_v5 = vand.u32 4294901760, %v12189_v57 }
 0xb55   : > { %22979 = vmatmul.mubr.f32.vlgmr.msra.gmra.mxu1 %v12188_v38  ;;  %22988 = vmatprep.subr.mxu1 %v24194_v28 }
 0xb56   : > { %22989 = vmatpush3.msra.mxu1 %v24194_v28  ;;  %22992 = vmatprep.mubr.f32.mxu1 %v12176_v58  ;;  %v12180_v53 = vand.u32 4294901760, %v12179_v15 }
 0xb57   : > { %22990 = vmatprep.subr.mxu1 %v24198_v29 }
 0xb58   : > { %22957 = vmatprep.mubr.f32.mxu0 %v12180_v53  ;;  %22991 = vmatpush3.msra.mxu1 %v24198_v29 }
 0xb59   : > { %22958 = vmatmul.mubr.f32.vlgmr.msra.gmra.mxu0 %v12190_v5  ;;  %22993 = vmatmul.mubr.f32.vlgmr.msra.gmra.mxu1 %v12186_v61  ;;  %v13624_v5 = vmul.f32 %v25131_v54, %v25131_v54 }
 0xb5a   : > { %22968 = vmatpush3.msra.mxu0 %v24204_v30  ;;  %22971 = vmatprep.mubr.f32.mxu0 %v12177_v3 }
 0xb5b   : > { %22969 = vmatprep.subr.mxu0 %v24210_v31  ;;  %23002 = vmatprep.subr.mxu1 %v12733_v55 }
 0xb5c   : > { %22970 = vmatpush3.msra.mxu0 %v24210_v31  ;;  %23003 = vmatpush3.msra.mxu1 %v12733_v55 }
 0xb5d   : > { %22972 = vmatmul.mubr.f32.vlgmr.msra.gmra.mxu0 %v12187_v21  ;;  %22981 = vmatprep.subr.mxu0 %v24213_v32 }
 0xb5e   : > { %22982 = vmatpush3.msra.mxu0 %v24213_v32  ;;  %22985 = vmatprep.mubr.f32.mxu0 %v12176_v58  ;;  %v25295_v58 = vmul.f32 %v25217_v36, %v25217_v36 }
 0xb5f   : > { %22983 = vmatprep.subr.mxu0 %v24218_v34  ;;  %23004 = vmatprep.subr.mxu1 %v12740_v20 }
 0xb60   : > { %22984 = vmatpush3.msra.mxu0 %v24218_v34  ;;  %23005 = vmatpush3.msra.mxu1 %v12740_v20 }
 0xb61   : > { %22986 = vmatmul.mubr.f32.vlgmr.msra.gmra.mxu0 %v12186_v61  ;;  %22995 = vmatprep.subr.mxu0 %v25221_v26 }
 0xb62   : > { %22996 = vmatpush3.msra.mxu0 %v25221_v26  ;;  %22999 = vmatprep.mubr.f32.mxu0 %v24182_v24 }
 0xb63   : > { %22997 = vmatprep.subr.mxu0 %v25227_v19  ;;  %23006 = vmatprep.mubr.f32.mxu1 %v24160_v9 }
 0xb64   : > { %22998 = vmatpush3.msra.mxu0 %v25227_v19  ;;  %23007 = vmatmul.mubr.f32.vlgmr.msra.gmra.mxu1 %v24162_v10 }
 0xb65   : > { %23000 = vmatmul.mubr.f32.vlgmr.msra.gmra.mxu0 %v24184_v25  ;;  %23009 = vmatprep.subr.mxu0 %v12730_v23 }
 0xb66   : > { %23010 = vmatpush3.msra.mxu0 %v12730_v23  ;;  %23016 = vmatprep.subr.mxu1 %v25221_v26 }
 0xb67   : > { %23011 = vmatprep.subr.mxu0 %v12737_v11  ;;  %23017 = vmatpush3.msra.mxu1 %v25221_v26 }
 0xb68   : > { %23012 = vmatpush3.msra.mxu0 %v12737_v11  ;;  %23013 = vmatprep.mubr.f32.mxu0 %v24166_v13 }
 0xb69   : > { %23018 = vmatprep.subr.mxu1 %v25227_v19  ;;  %23014 = vmatmul.mubr.f32.vlgmr.msra.gmra.mxu0 %v24170_v14 }
 0xb6a   : > { %23019 = vmatpush3.msra.mxu1 %v25227_v19  ;;  %23020 = vmatprep.mubr.f32.mxu1 %v24173_v17 }
 0xb6b   : > { %23023 = vmatprep.subr.mxu0 %v25230_v4  ;;  %23021 = vmatmul.mubr.f32.vlgmr.msra.gmra.mxu1 %v24176_v18 }
 0xb6c   : > { %23024 = vmatpush3.msra.mxu0 %v25230_v4  ;;  %23030 = vmatprep.subr.mxu1 %v25221_v26 }
 0xb6d   : > { %23025 = vmatprep.subr.mxu0 %v12738_v39  ;;  %23031 = vmatpush3.msra.mxu1 %v25221_v26 }
 0xb6e   : > { %23026 = vmatpush3.msra.mxu0 %v12738_v39  ;;  %23027 = vmatprep.mubr.f32.mxu0 %v24160_v9 }
 0xb6f   : > { %23032 = vmatprep.subr.mxu1 %v25227_v19  ;;  %23028 = vmatmul.mubr.f32.vlgmr.msra.gmra.mxu0 %v24162_v10 }
 0xb70   : > { %23033 = vmatpush3.msra.mxu1 %v25227_v19  ;;  %23034 = vmatprep.mubr.f32.mxu1 %v24160_v9 }
 0xb71   : > { %23035 = vmatmul.mubr.f32.vlgmr.msra.gmra.mxu1 %v24162_v10  ;;  %23044 = vmatprep.subr.mxu1 %v24220_v35 }
 0xb72   : > { %23045 = vmatpush3.msra.mxu1 %v24220_v35  ;;  %23037 = vmatprep.subr.mxu0 %v24194_v28 }
 0xb73   : > { %23046 = vmatprep.subr.mxu1 %v24225_v37  ;;  %23038 = vmatpush3.msra.mxu0 %v24194_v28 }
 0xb74   : > { %23047 = vmatpush3.msra.mxu1 %v24225_v37  ;;  %23039 = vmatprep.subr.mxu0 %v24198_v29 }
 0xb75   : > { %23058 = vmatprep.subr.mxu1 %v24194_v28  ;;  %23040 = vmatpush3.msra.mxu0 %v24198_v29 }
 0xb76   : > { %23051 = vmatprep.subr.mxu0 %v24204_v30 }
 0xc11   : > { %v22966_v46 = vpop.f32.mrf.mxu1 }
 0xc13   : > { %v12273_v8 = vpop.f32.mrf.mxu1 }
 0xc15   : > { %v22980_v16 = vpop.f32.mrf.mxu1 }
 0xc17   : > { %v12437_v48 = vpop.f32.mrf.mxu1 }
 0xc19   : > { %v22959_v22 = vpop.f32.mrf.mxu0  ;;  %v22994_v56 = vpop.f32.mrf.mxu1 }
 0xc1a   : > { %v12280_v42 = vadd.f32 %v22966_v46, %v22959_v22 }
 0xc1b   : > { %v12182_v51 = vpop.f32.mrf.mxu0  ;;  %v12601_v26 = vpop.f32.mrf.mxu1 }
 0xc1c   : > { %v12274_v47 = vadd.f32 %v12273_v8, %v12182_v51  ;;  %v25312_v8 = vand.u32 4294901760, %v13624_v5 }
 0xc1d   : > { %v22973_v60 = vpop.f32.mrf.mxu0 }
 0xc1e   : > { %v12363_v62 = vadd.f32 %v22973_v60, %v12280_v42 }
 0xc1f   : > { %v12355_v12 = vpop.f32.mrf.mxu0 }
 0xc20   : > { %v12356_v1 = vadd.f32 %v12355_v12, %v12274_v47  ;;  %v12446_v27 = vadd.f32 %v22980_v16, %v12363_v62  ;;  %v13623_v16 = vmul.f32 %v25139_v6, %v25139_v6  ;;  %v13742_v62 = vsub.f32 %v13624_v5, %v25312_v8 }
 0xc21   : > { %v22987_v50 = vpop.f32.mrf.mxu0 }
 0xc22   : > { %v12529_v45 = vadd.f32 %v22987_v50, %v12446_v27  ;;  %v12438_v49 = vadd.f32 %v12437_v48, %v12356_v1  ;;  %v25318_v12 = vand.u32 4294901760, %v13623_v16 }
 0xc23   : > { %v12522_v63 = vpop.f32.mrf.mxu0 }
 0xc24   : > { %v12608_v43 = vadd.f32 %v22994_v56, %v12529_v45  ;;  %v12523_v33 = vadd.f32 %v12522_v63, %v12438_v49  ;;  %v23008_v40 = vpop.f32.mrf.mxu1  ;;  %v25321_v45 = vand.u32 4294901760, %v13742_v62  ;;  %v13749_v49 = vsub.f32 %v13623_v16, %v25318_v12 }
 0xc25   : > { %v23001_v44 = vpop.f32.mrf.mxu0 }
 0xc26   : > { %v25288_v23 = vmul.f32 %v12608_v43, %v12608_v43  ;;  %v25291_v19 = vmul.f32 %v12608_v43, %v25215_v0  ;;  %v12602_v61 = vadd.f32 %v12601_v26, %v12523_v33  ;;  %v12777_v21 = vpop.f32.mrf.mxu1  ;;  %v12784_v3 = vadd.f32 %v23008_v40, %v23001_v44 }
 0xc27   : > { %v12686_v7 = vpop.f32.mrf.mxu0  ;;  %v13744_v44 = vsub.f32 %v13742_v62, %v25321_v45 }
 0xc28   : > { %v25299_v4 = vadd.f32 %v25288_v23, %v25286_v2  ;;  %v25301_v11 = vmul.f32 %v12602_v61, %v12602_v61  ;;  %v25304_v38 = vmul.f32 %v12602_v61, %v25217_v36  ;;  %v12778_v57 = vadd.f32 %v12777_v21, %v12686_v7 }
 0xc29   : > { %v23015_v59 = vpop.f32.mrf.mxu0  ;;  %v13750_v61 = vand.u32 4294901760, %v13749_v49 }
 0xc2a   : > { %v25308_v0 = vadd.f32 %v25301_v11, %v25295_v58  ;;  %v12867_v52 = vadd.f32 %v23015_v59, %v12784_v3  ;;  %v13745_v59 = vand.u32 4294901760, %v13744_v44 }
 0xc2b   : > { %v23022_v39 = vpop.f32.mrf.mxu1  ;;  %v12859_v15 = vpop.f32.mrf.mxu0 }
 0xc2c   : > { %v12860_v53 = vadd.f32 %v12859_v15, %v12778_v57  ;;  %v12950_v55 = vadd.f32 %v23022_v39, %v12867_v52  ;;  %v13751_v57 = vsub.f32 %v13749_v49, %v13750_v61 }
 0xc2d   : > { %v12941_v41 = vpop.f32.mrf.mxu1 }
 0xc2e   : > { %v12942_v20 = vadd.f32 %v12941_v41, %v12860_v53  ;;  %v13752_v52 = vand.u32 4294901760, %v13751_v57  ;;  %v23768_v57 = vld [vmem:[%s24143_s6 + $0x28] sm:$0xff] }
 0xc2f   : > { %v23029_v46 = vpop.f32.mrf.mxu0 }
 0xc30   : > { %v13033_v36 = vadd.f32 %v23029_v46, %v12950_v55 }
 0xc31   : > { %v23036_v22 = vpop.f32.mrf.mxu1  ;;  %v13026_v48 = vpop.f32.mrf.mxu0 }
 0xc32   : > { %v13112_v42 = vadd.f32 %v23036_v22, %v13033_v36  ;;  %v13027_v51 = vadd.f32 %v13026_v48, %v12942_v20 }
 0xc33   : > { %v13105_v47 = vpop.f32.mrf.mxu1 }
 0xc34   : > { %v13119_v60 = vsel %vm333_vm0, %v13112_v42, 0  ;;  %v13106_v56 = vadd.f32 %v13105_v47, %v13027_v51 }
 0xc35   : > { %v13198_v1 = vand.u32 4294901760, %v13119_v60 }
 0xc36   : > { %v13116_v27 = vsel %vm333_vm0, %v13106_v56, 0 }
 0xc37   : > { %v13199_v50 = vsub.f32 %v13119_v60, %v13198_v1  ;;  %v13188_v26 = vand.u32 4294901760, %v13116_v27 }
 0xc39   : > { %v13200_v63 = vand.u32 4294901760, %v13199_v50  ;;  %v13189_v43 = vsub.f32 %v13116_v27, %v13188_v26  ;;  %23048 = vmatprep.mubr.f32.mxu1 %v13188_v26 }
 0xc3a   : > { %23049 = vmatmul.mubr.f32.vlgmr.msra.gmra.mxu1 %v13198_v1 }
 0xc3b   : > { %23059 = vmatpush3.msra.mxu1 %v24194_v28  ;;  %v13190_v33 = vand.u32 4294901760, %v13189_v43  ;;  %v13201_v40 = vsub.f32 %v13199_v50, %v13200_v63 }
 0xc3c   : > { %23060 = vmatprep.subr.mxu1 %v24198_v29 }
 0xc3d   : > { %23061 = vmatpush3.msra.mxu1 %v24198_v29  ;;  %23062 = vmatprep.mubr.f32.mxu1 %v13190_v33  ;;  %v13191_v7 = vsub.f32 %v13189_v43, %v13190_v33  ;;  %v13202_v3 = vand.u32 4294901760, %v13201_v40 }
 0xc3e   : > { %23063 = vmatmul.mubr.f32.vlgmr.msra.gmra.mxu1 %v13200_v63  ;;  %23072 = vmatprep.subr.mxu1 %v24194_v28 }
 0xc3f   : > { %23073 = vmatpush3.msra.mxu1 %v24194_v28  ;;  %23076 = vmatprep.mubr.f32.mxu1 %v13188_v26  ;;  %v13192_v21 = vand.u32 4294901760, %v13191_v7 }
 0xc40   : > { %23074 = vmatprep.subr.mxu1 %v24198_v29 }
 0xc41   : > { %23041 = vmatprep.mubr.f32.mxu0 %v13192_v21  ;;  %23075 = vmatpush3.msra.mxu1 %v24198_v29 }
 0xc42   : > { %23042 = vmatmul.mubr.f32.vlgmr.msra.gmra.mxu0 %v13202_v3  ;;  %23077 = vmatmul.mubr.f32.vlgmr.msra.gmra.mxu1 %v13198_v1 }
 0xc43   : > { %23052 = vmatpush3.msra.mxu0 %v24204_v30  ;;  %23055 = vmatprep.mubr.f32.mxu0 %v13189_v43 }
 0xc44   : > { %23053 = vmatprep.subr.mxu0 %v24210_v31  ;;  %23086 = vmatprep.subr.mxu1 %v13745_v59 }
 0xc45   : > { %23054 = vmatpush3.msra.mxu0 %v24210_v31  ;;  %23087 = vmatpush3.msra.mxu1 %v13745_v59 }
 0xc46   : > { %23056 = vmatmul.mubr.f32.vlgmr.msra.gmra.mxu0 %v13199_v50  ;;  %23065 = vmatprep.subr.mxu0 %v24213_v32 }
 0xc47   : > { %23066 = vmatpush3.msra.mxu0 %v24213_v32  ;;  %23069 = vmatprep.mubr.f32.mxu0 %v13188_v26 }
 0xc48   : > { %23067 = vmatprep.subr.mxu0 %v24218_v34  ;;  %23088 = vmatprep.subr.mxu1 %v13752_v52 }
 0xc49   : > { %23068 = vmatpush3.msra.mxu0 %v24218_v34  ;;  %23089 = vmatpush3.msra.mxu1 %v13752_v52  ;;  %v14636_v52 = vmul.f32 %v23768_v57, %v25131_v54 }
 0xc4a   : > { %23070 = vmatmul.mubr.f32.vlgmr.msra.gmra.mxu0 %v13198_v1  ;;  %23079 = vmatprep.subr.mxu0 %v25312_v8 }
 0xc4b   : > { %23080 = vmatpush3.msra.mxu0 %v25312_v8  ;;  %23083 = vmatprep.mubr.f32.mxu0 %v24182_v24 }
 0xc4c   : > { %23081 = vmatprep.subr.mxu0 %v25318_v12  ;;  %23090 = vmatprep.mubr.f32.mxu1 %v24160_v9 }
 0xc4d   : > { %23082 = vmatpush3.msra.mxu0 %v25318_v12  ;;  %23091 = vmatmul.mubr.f32.vlgmr.msra.gmra.mxu1 %v24162_v10 }
 0xc4e   : > { %23084 = vmatmul.mubr.f32.vlgmr.msra.gmra.mxu0 %v24184_v25  ;;  %23093 = vmatprep.subr.mxu0 %v13742_v62 }
 0xc4f   : > { %23094 = vmatpush3.msra.mxu0 %v13742_v62  ;;  %23100 = vmatprep.subr.mxu1 %v25312_v8 }
 0xc50   : > { %23095 = vmatprep.subr.mxu0 %v13749_v49  ;;  %23101 = vmatpush3.msra.mxu1 %v25312_v8 }
 0xc51   : > { %23096 = vmatpush3.msra.mxu0 %v13749_v49  ;;  %23097 = vmatprep.mubr.f32.mxu0 %v24166_v13 }
 0xc52   : > { %23102 = vmatprep.subr.mxu1 %v25318_v12  ;;  %23098 = vmatmul.mubr.f32.vlgmr.msra.gmra.mxu0 %v24170_v14 }
 0xc53   : > { %23103 = vmatpush3.msra.mxu1 %v25318_v12  ;;  %23104 = vmatprep.mubr.f32.mxu1 %v24173_v17 }
 0xc54   : > { %23107 = vmatprep.subr.mxu0 %v25321_v45  ;;  %23105 = vmatmul.mubr.f32.vlgmr.msra.gmra.mxu1 %v24176_v18 }
 0xc55   : > { %23108 = vmatpush3.msra.mxu0 %v25321_v45  ;;  %23114 = vmatprep.subr.mxu1 %v25312_v8 }
 0xc56   : > { %23109 = vmatprep.subr.mxu0 %v13750_v61  ;;  %23115 = vmatpush3.msra.mxu1 %v25312_v8 }
 0xc57   : > { %23110 = vmatpush3.msra.mxu0 %v13750_v61  ;;  %23111 = vmatprep.mubr.f32.mxu0 %v24160_v9 }
 0xc58   : > { %23116 = vmatprep.subr.mxu1 %v25318_v12  ;;  %23112 = vmatmul.mubr.f32.vlgmr.msra.gmra.mxu0 %v24162_v10 }
 0xc59   : > { %23117 = vmatpush3.msra.mxu1 %v25318_v12  ;;  %23118 = vmatprep.mubr.f32.mxu1 %v24160_v9 }
 0xc5a   : > { %23119 = vmatmul.mubr.f32.vlgmr.msra.gmra.mxu1 %v24162_v10  ;;  %23128 = vmatprep.subr.mxu1 %v24220_v35 }
 0xc5b   : > { %23129 = vmatpush3.msra.mxu1 %v24220_v35  ;;  %23121 = vmatprep.subr.mxu0 %v24194_v28 }
 0xc5c   : > { %23130 = vmatprep.subr.mxu1 %v24225_v37  ;;  %23122 = vmatpush3.msra.mxu0 %v24194_v28 }
 0xc5d   : > { %23131 = vmatpush3.msra.mxu1 %v24225_v37  ;;  %23123 = vmatprep.subr.mxu0 %v24198_v29 }
 0xc5e   : > { %23142 = vmatprep.subr.mxu1 %v24194_v28  ;;  %23124 = vmatpush3.msra.mxu0 %v24198_v29 }
 0xc5f   : > { %23135 = vmatprep.subr.mxu0 %v24204_v30 }
 0xcfa   : > { %v23050_v39 = vpop.f32.mrf.mxu1 }
 0xcfc   : > { %v13285_v15 = vpop.f32.mrf.mxu1 }
 0xcfe   : > { %v23064_v53 = vpop.f32.mrf.mxu1 }
 0xd00   : > { %v13449_v55 = vpop.f32.mrf.mxu1 }
 0xd02   : > { %v23043_v5 = vpop.f32.mrf.mxu0  ;;  %v23078_v8 = vpop.f32.mrf.mxu1 }
 0xd03   : > { %v13292_v41 = vadd.f32 %v23050_v39, %v23043_v5 }
 0xd04   : > { %v13194_v20 = vpop.f32.mrf.mxu0  ;;  %v13613_v47 = vpop.f32.mrf.mxu1 }
 0xd05   : > { %v13286_v46 = vadd.f32 %v13285_v15, %v13194_v20 }
 0xd06   : > { %v23057_v36 = vpop.f32.mrf.mxu0 }
 0xd07   : > { %v13375_v16 = vadd.f32 %v23057_v36, %v13292_v41  ;;  %v23769_v41 = vld [vmem:[%s24143_s6 + $0x20] sm:$0xff] }
 0xd08   : > { %v13367_v22 = vpop.f32.mrf.mxu0  ;;  %v14635_v20 = vmul.f32 %v23769_v41, %v25139_v6 }
 0xd09   : > { %v13368_v48 = vadd.f32 %v13367_v22, %v13286_v46  ;;  %v13458_v42 = vadd.f32 %v23064_v53, %v13375_v16 }
 0xd0a   : > { %v23071_v51 = vpop.f32.mrf.mxu0  ;;  %v25391_v54 = vand.u32 4294901760, %v14635_v20 }
 0xd0b   : > { %v13541_v60 = vadd.f32 %v23071_v51, %v13458_v42  ;;  %v13450_v56 = vadd.f32 %v13449_v55, %v13368_v48  ;;  %v25385_v55 = vand.u32 4294901760, %v14636_v52 }
 0xd0c   : > { %v13534_v62 = vpop.f32.mrf.mxu0  ;;  %v14761_v6 = vsub.f32 %v14635_v20, %v25391_v54 }
 0xd0d   : > { %v25375_v12 = vadd.f32 %v23078_v8, %v13541_v60  ;;  %v13535_v1 = vadd.f32 %v13534_v62, %v13450_v56  ;;  %v23092_v27 = vpop.f32.mrf.mxu1  ;;  %v14754_v51 = vsub.f32 %v14636_v52, %v25385_v55 }
 0xd0e   : > { %v23085_v50 = vpop.f32.mrf.mxu0 }
 0xd0f   : > { %v15654_v26 = vsub.f32 %v25375_v12, %v25286_v2  ;;  %v25379_v45 = vadd.f32 %v13613_v47, %v13535_v1  ;;  %v13789_v63 = vpop.f32.mrf.mxu1  ;;  %v13796_v33 = vadd.f32 %v23092_v27, %v23085_v50  ;;  %v25394_v1 = vand.u32 4294901760, %v14754_v51 }
 0xd10   : > { %v13698_v49 = vpop.f32.mrf.mxu0 }
 0xd11   : > { %v15653_v43 = vsub.f32 %v25379_v45, %v25295_v58  ;;  %v13790_v44 = vadd.f32 %v13789_v63, %v13698_v49 }
 0xd12   : > { %v23099_v40 = vpop.f32.mrf.mxu0 }
 0xd13   : > { %v13879_v61 = vadd.f32 %v23099_v40, %v13796_v33  ;;  %v14756_v33 = vsub.f32 %v14754_v51, %v25394_v1  ;;  %v14762_v40 = vand.u32 4294901760, %v14761_v6 }
 0xd14   : > { %v23106_v7 = vpop.f32.mrf.mxu1  ;;  %v13871_v21 = vpop.f32.mrf.mxu0 }
 0xd15   : > { %v13962_v3 = vadd.f32 %v23106_v7, %v13879_v61  ;;  %v13872_v59 = vadd.f32 %v13871_v21, %v13790_v44  ;;  %v14757_v21 = vand.u32 4294901760, %v14756_v33 }
 0xd16   : > { %v13953_v39 = vpop.f32.mrf.mxu1 }
 0xd17   : > { %v13954_v15 = vadd.f32 %v13953_v39, %v13872_v59 }
 0xd18   : > { %v23113_v53 = vpop.f32.mrf.mxu0 }
 0xd19   : > { %v14045_v5 = vadd.f32 %v23113_v53, %v13962_v3  ;;  %v14763_v3 = vsub.f32 %v14761_v6, %v14762_v40 }
 0xd1a   : > { %v23120_v46 = vpop.f32.mrf.mxu1  ;;  %v14038_v36 = vpop.f32.mrf.mxu0 }
 0xd1b   : > { %v14124_v8 = vadd.f32 %v23120_v46, %v14045_v5  ;;  %v14039_v16 = vadd.f32 %v14038_v36, %v13954_v15  ;;  %v14764_v59 = vand.u32 4294901760, %v14763_v3 }
 0xd1c   : > { %v14117_v22 = vpop.f32.mrf.mxu1 }
 0xd1d   : > { %v14131_v48 = vsel %vm333_vm0, %v14124_v8, 0  ;;  %v14118_v42 = vadd.f32 %v14117_v22, %v14039_v16 }
 0xd1e   : > { %v14210_v47 = vand.u32 4294901760, %v14131_v48 }
 0xd1f   : > { %v14128_v60 = vsel %vm333_vm0, %v14118_v42, 0 }
 0xd20   : > { %v14211_v56 = vsub.f32 %v14131_v48, %v14210_v47  ;;  %v14200_v62 = vand.u32 4294901760, %v14128_v60 }
 0xd22   : > { %v14212_v27 = vand.u32 4294901760, %v14211_v56  ;;  %v14201_v50 = vsub.f32 %v14128_v60, %v14200_v62  ;;  %23132 = vmatprep.mubr.f32.mxu1 %v14200_v62 }
 0xd23   : > { %23133 = vmatmul.mubr.f32.vlgmr.msra.gmra.mxu1 %v14210_v47 }
 0xd24   : > { %23143 = vmatpush3.msra.mxu1 %v24194_v28  ;;  %v14202_v49 = vand.u32 4294901760, %v14201_v50  ;;  %v14213_v63 = vsub.f32 %v14211_v56, %v14212_v27 }
 0xd25   : > { %23144 = vmatprep.subr.mxu1 %v24198_v29 }
 0xd26   : > { %23145 = vmatpush3.msra.mxu1 %v24198_v29  ;;  %23146 = vmatprep.mubr.f32.mxu1 %v14202_v49  ;;  %v14203_v44 = vsub.f32 %v14201_v50, %v14202_v49  ;;  %v14214_v7 = vand.u32 4294901760, %v14213_v63 }
 0xd27   : > { %23147 = vmatmul.mubr.f32.vlgmr.msra.gmra.mxu1 %v14212_v27  ;;  %23156 = vmatprep.subr.mxu1 %v24194_v28 }
 0xd28   : > { %23157 = vmatpush3.msra.mxu1 %v24194_v28  ;;  %23160 = vmatprep.mubr.f32.mxu1 %v14200_v62  ;;  %v14204_v61 = vand.u32 4294901760, %v14203_v44  ;;  %v15672_v44 = vadd.f32 0.0001, %v25299_v4  ;;  %v25461_v4 = vld [vmem:[%s24143_s6 + $0x38] sm:$0xff] }
 0xd29   : > { %23158 = vmatprep.subr.mxu1 %v24198_v29 }
 0xd2a   : > { %23125 = vmatprep.mubr.f32.mxu0 %v14204_v61  ;;  %23159 = vmatpush3.msra.mxu1 %v24198_v29 }
 0xd2b   : > { %23126 = vmatmul.mubr.f32.vlgmr.msra.gmra.mxu0 %v14214_v7  ;;  %23161 = vmatmul.mubr.f32.vlgmr.msra.gmra.mxu1 %v14210_v47 }
 0xd2c   : > { %23136 = vmatpush3.msra.mxu0 %v24204_v30  ;;  %23139 = vmatprep.mubr.f32.mxu0 %v14201_v50 }
 0xd2d   : > { %23137 = vmatprep.subr.mxu0 %v24210_v31  ;;  %23170 = vmatprep.subr.mxu1 %v14757_v21 }
 0xd2e   : > { %23138 = vmatpush3.msra.mxu0 %v24210_v31  ;;  %23171 = vmatpush3.msra.mxu1 %v14757_v21 }
 0xd2f   : > { %23140 = vmatmul.mubr.f32.vlgmr.msra.gmra.mxu0 %v14211_v56  ;;  %23149 = vmatprep.subr.mxu0 %v24213_v32 }
 0xd30   : > { %23150 = vmatpush3.msra.mxu0 %v24213_v32  ;;  %23153 = vmatprep.mubr.f32.mxu0 %v14200_v62 }
 0xd31   : > { %23151 = vmatprep.subr.mxu0 %v24218_v34  ;;  %23172 = vmatprep.subr.mxu1 %v14764_v59 }
 0xd32   : > { %23152 = vmatpush3.msra.mxu0 %v24218_v34  ;;  %23173 = vmatpush3.msra.mxu1 %v14764_v59  ;;  %v15671_v59 = vadd.f32 0.0001, %v25308_v0 }
 0xd33   : > { %23154 = vmatmul.mubr.f32.vlgmr.msra.gmra.mxu0 %v14210_v47  ;;  %23163 = vmatprep.subr.mxu0 %v25385_v55 }
 0xd34   : > { %23164 = vmatpush3.msra.mxu0 %v25385_v55  ;;  %23167 = vmatprep.mubr.f32.mxu0 %v24182_v24 }
 0xd35   : > { %23165 = vmatprep.subr.mxu0 %v25391_v54  ;;  %23174 = vmatprep.mubr.f32.mxu1 %v24160_v9 }
 0xd36   : > { %23166 = vmatpush3.msra.mxu0 %v25391_v54  ;;  %23175 = vmatmul.mubr.f32.vlgmr.msra.gmra.mxu1 %v24162_v10 }
 0xd37   : > { %23168 = vmatmul.mubr.f32.vlgmr.msra.gmra.mxu0 %v24184_v25  ;;  %23177 = vmatprep.subr.mxu0 %v14754_v51 }
 0xd38   : > { %23178 = vmatpush3.msra.mxu0 %v14754_v51  ;;  %23184 = vmatprep.subr.mxu1 %v25385_v55 }
 0xd39   : > { %23179 = vmatprep.subr.mxu0 %v14761_v6  ;;  %23185 = vmatpush3.msra.mxu1 %v25385_v55 }
 0xd3a   : > { %23180 = vmatpush3.msra.mxu0 %v14761_v6  ;;  %23181 = vmatprep.mubr.f32.mxu0 %v24166_v13 }
 0xd3b   : > { %23186 = vmatprep.subr.mxu1 %v25391_v54  ;;  %23182 = vmatmul.mubr.f32.vlgmr.msra.gmra.mxu0 %v24170_v14 }
 0xd3c   : > { %23187 = vmatpush3.msra.mxu1 %v25391_v54  ;;  %23188 = vmatprep.mubr.f32.mxu1 %v24173_v17 }
 0xd3d   : > { %23191 = vmatprep.subr.mxu0 %v25394_v1  ;;  %23189 = vmatmul.mubr.f32.vlgmr.msra.gmra.mxu1 %v24176_v18 }
 0xd3e   : > { %23192 = vmatpush3.msra.mxu0 %v25394_v1  ;;  %23198 = vmatprep.subr.mxu1 %v25385_v55 }
 0xd3f   : > { %23193 = vmatprep.subr.mxu0 %v14762_v40  ;;  %23199 = vmatpush3.msra.mxu1 %v25385_v55 }
 0xd40   : > { %23194 = vmatpush3.msra.mxu0 %v14762_v40  ;;  %23195 = vmatprep.mubr.f32.mxu0 %v24160_v9 }
 0xd41   : > { %23200 = vmatprep.subr.mxu1 %v25391_v54  ;;  %23196 = vmatmul.mubr.f32.vlgmr.msra.gmra.mxu0 %v24162_v10 }
 0xd42   : > { %23201 = vmatpush3.msra.mxu1 %v25391_v54  ;;  %23202 = vmatprep.mubr.f32.mxu1 %v24160_v9 }
 0xd43   : > { %23203 = vmatmul.mubr.f32.vlgmr.msra.gmra.mxu1 %v24162_v10  ;;  %23212 = vmatprep.subr.mxu1 %v24220_v35 }
 0xd44   : > { %23213 = vmatpush3.msra.mxu1 %v24220_v35  ;;  %23205 = vmatprep.subr.mxu0 %v24194_v28 }
 0xd45   : > { %23214 = vmatprep.subr.mxu1 %v24225_v37  ;;  %23206 = vmatpush3.msra.mxu0 %v24194_v28 }
 0xd46   : > { %23215 = vmatpush3.msra.mxu1 %v24225_v37  ;;  %23207 = vmatprep.subr.mxu0 %v24198_v29 }
 0xd47   : > { %23226 = vmatprep.subr.mxu1 %v24194_v28  ;;  %23208 = vmatpush3.msra.mxu0 %v24198_v29 }
 0xd48   : > { %23219 = vmatprep.subr.mxu0 %v24204_v30 }
 0xde3   : > { %v23134_v57 = vpop.f32.mrf.mxu1 }
 0xde5   : > { %v14297_v52 = vpop.f32.mrf.mxu1 }
 0xde7   : > { %v23148_v39 = vpop.f32.mrf.mxu1 }
 0xde9   : > { %v14461_v53 = vpop.f32.mrf.mxu1 }
 0xdeb   : > { %v23127_v15 = vpop.f32.mrf.mxu0  ;;  %v23162_v46 = vpop.f32.mrf.mxu1 }
 0xdec   : > { %v14304_v5 = vadd.f32 %v23134_v57, %v23127_v15 }
 0xded   : > { %v14206_v55 = vpop.f32.mrf.mxu0  ;;  %v14625_v42 = vpop.f32.mrf.mxu1 }
 0xdee   : > { %v14298_v41 = vadd.f32 %v14297_v52, %v14206_v55  ;;  %v25469_v55 = vld [vmem:[%s24143_s6 + $0x30] sm:$0xff] }
 0xdef   : > { %v23141_v20 = vpop.f32.mrf.mxu0 }
 0xdf0   : > { %v14387_v36 = vadd.f32 %v23141_v20, %v14304_v5 }
 0xdf1   : > { %v14379_v8 = vpop.f32.mrf.mxu0 }
 0xdf2   : > { %v14380_v16 = vadd.f32 %v14379_v8, %v14298_v41  ;;  %v14470_v22 = vadd.f32 %v23148_v39, %v14387_v36 }
 0xdf3   : > { %v23155_v48 = vpop.f32.mrf.mxu0 }
 0xdf4   : > { %v14553_v51 = vadd.f32 %v23155_v48, %v14470_v22  ;;  %v14462_v54 = vadd.f32 %v14461_v53, %v14380_v16  ;;  %v25475_v22 = vand.u32 4294901760, %v25469_v55 }
 0xdf5   : > { %v14546_v47 = vpop.f32.mrf.mxu0 }
 0xdf6   : > { %v14632_v60 = vadd.f32 %v23162_v46, %v14553_v51  ;;  %v14547_v56 = vadd.f32 %v14546_v47, %v14462_v54  ;;  %v23176_v62 = vpop.f32.mrf.mxu1 }
 0xdf7   : > { %v23169_v1 = vpop.f32.mrf.mxu0 }
 0xdf8   : > { %v15656_v6 = vsub.f32 %v14632_v60, %v25288_v23  ;;  %v14626_v27 = vadd.f32 %v14625_v42, %v14547_v56  ;;  %v14801_v49 = vpop.f32.mrf.mxu1  ;;  %v14808_v40 = vadd.f32 %v23176_v62, %v23169_v1  ;;  %v15842_v60 = vsub.f32 %v25469_v55, %v25475_v22 }
 0xdf9   : > { %v14710_v50 = vpop.f32.mrf.mxu0 }
 0xdfa   : > { %v15674_v63 = vadd.f32 %v15656_v6, %v15654_v26  ;;  %v15655_v33 = vsub.f32 %v14626_v27, %v25301_v11  ;;  %v14802_v23 = vadd.f32 %v14801_v49, %v14710_v50  ;;  %v15843_v50 = vand.u32 4294901760, %v15842_v60 }
 0xdfb   : > { %v23183_v61 = vpop.f32.mrf.mxu0 }
 0xdfc   : > { %v15676_v7 = vadd.f32 0.0009, %v15674_v63  ;;  %v15673_v21 = vadd.f32 %v15655_v33, %v15653_v43  ;;  %v14891_v3 = vadd.f32 %v23183_v61, %v14808_v40  ;;  %v25466_v43 = vand.u32 4294901760, %v25461_v4 }
 0xdfd   : > { %v23190_v57 = vpop.f32.mrf.mxu1  ;;  %v14883_v2 = vpop.f32.mrf.mxu0 }
 0xdfe   : > { %v25458_v12 = vmul.f32 %v15676_v7, %v15672_v44  ;;  %v15675_v11 = vadd.f32 0.0009, %v15673_v21  ;;  %v14974_v26 = vadd.f32 %v23190_v57, %v14891_v3  ;;  %v14884_v52 = vadd.f32 %v14883_v2, %v14802_v23 }
 0xdff   : > { %v14965_v39 = vpop.f32.mrf.mxu1  ;;  %v15835_v16 = vsub.f32 %v25461_v4, %v25466_v43  ;;  %v15844_v44 = vsub.f32 %v15842_v60, %v15843_v50 }
 0xe00   : > { %v25463_v15 = vmul.f32 %v15675_v11, %v15671_v59  ;;  %v14966_v53 = vadd.f32 %v14965_v39, %v14884_v52  ;;  %23758 = vrcp.f32 %v25458_v12  ;;  %v15659_v12 = vmul.f32 2.0, %v25304_v38 }
 0xe01   : > { %v23197_v58 = vpop.f32.mrf.mxu0  ;;  %v25478_v47 = vand.u32 4294901760, %v15835_v16  ;;  %v15845_v61 = vand.u32 4294901760, %v15844_v44 }
 0xe02   : > { %v15057_v45 = vadd.f32 %v23197_v58, %v14974_v26  ;;  %23760 = vrcp.f32 %v25463_v15 }
 0xe03   : > { %v23204_v0 = vpop.f32.mrf.mxu1  ;;  %v15050_v5 = vpop.f32.mrf.mxu0  ;;  %v15837_v27 = vsub.f32 %v15835_v16, %v25478_v47 }
 0xe04   : > { %v15136_v41 = vadd.f32 %v23204_v0, %v15057_v45  ;;  %v15051_v20 = vadd.f32 %v15050_v5, %v14966_v53 }
 0xe05   : > { %v15129_v46 = vpop.f32.mrf.mxu1  ;;  %v15838_v40 = vand.u32 4294901760, %v15837_v27 }
 0xe06   : > { %v15143_v36 = vsel %vm333_vm0, %v15136_v41, 0  ;;  %v15130_v8 = vadd.f32 %v15129_v46, %v15051_v20 }
 0xe07   : > { %v15222_v48 = vand.u32 4294901760, %v15143_v36 }
 0xe08   : > { %v15140_v42 = vsel %vm333_vm0, %v15130_v8, 0 }
 0xe09   : > { %v15223_v51 = vsub.f32 %v15143_v36, %v15222_v48  ;;  %v15212_v54 = vand.u32 4294901760, %v15140_v42 }
 0xe0b   : > { %v15224_v56 = vand.u32 4294901760, %v15223_v51  ;;  %v15213_v62 = vsub.f32 %v15140_v42, %v15212_v54  ;;  %23216 = vmatprep.mubr.f32.mxu1 %v15212_v54 }
 0xe0c   : > { %23217 = vmatmul.mubr.f32.vlgmr.msra.gmra.mxu1 %v15222_v48 }
 0xe0d   : > { %23227 = vmatpush3.msra.mxu1 %v24194_v28  ;;  %v15214_v1 = vand.u32 4294901760, %v15213_v62  ;;  %v15225_v6 = vsub.f32 %v15223_v51, %v15224_v56 }
 0xe0e   : > { %23228 = vmatprep.subr.mxu1 %v24198_v29 }
 0xe0f   : > { %23229 = vmatpush3.msra.mxu1 %v24198_v29  ;;  %23230 = vmatprep.mubr.f32.mxu1 %v15214_v1  ;;  %v15215_v49 = vsub.f32 %v15213_v62, %v15214_v1  ;;  %v15226_v33 = vand.u32 4294901760, %v15225_v6 }
 0xe10   : > { %23231 = vmatmul.mubr.f32.vlgmr.msra.gmra.mxu1 %v15224_v56  ;;  %23240 = vmatprep.subr.mxu1 %v24194_v28 }
 0xe11   : > { %23241 = vmatpush3.msra.mxu1 %v24194_v28  ;;  %23244 = vmatprep.mubr.f32.mxu1 %v15212_v54  ;;  %v15216_v63 = vand.u32 4294901760, %v15215_v49  ;;  %v15661_v49 = vadd.f32 0.0001, %v15659_v12 }
 0xe12   : > { %23242 = vmatprep.subr.mxu1 %v24198_v29 }
 0xe13   : > { %23209 = vmatprep.mubr.f32.mxu0 %v15216_v63  ;;  %23243 = vmatpush3.msra.mxu1 %v24198_v29 }
 0xe14   : > { %23210 = vmatmul.mubr.f32.vlgmr.msra.gmra.mxu0 %v15226_v33  ;;  %23245 = vmatmul.mubr.f32.vlgmr.msra.gmra.mxu1 %v15222_v48 }
 0xe15   : > { %23220 = vmatpush3.msra.mxu0 %v24204_v30  ;;  %23223 = vmatprep.mubr.f32.mxu0 %v15213_v62 }
 0xe16   : > { %23221 = vmatprep.subr.mxu0 %v24210_v31  ;;  %23254 = vmatprep.subr.mxu1 %v15838_v40 }
 0xe17   : > { %23222 = vmatpush3.msra.mxu0 %v24210_v31  ;;  %23255 = vmatpush3.msra.mxu1 %v15838_v40 }
 0xe18   : > { %23224 = vmatmul.mubr.f32.vlgmr.msra.gmra.mxu0 %v15223_v51  ;;  %23233 = vmatprep.subr.mxu0 %v24213_v32 }
 0xe19   : > { %23234 = vmatpush3.msra.mxu0 %v24213_v32  ;;  %23237 = vmatprep.mubr.f32.mxu0 %v15212_v54 }
 0xe1a   : > { %23235 = vmatprep.subr.mxu0 %v24218_v34  ;;  %23256 = vmatprep.subr.mxu1 %v15845_v61 }
 0xe1b   : > { %23236 = vmatpush3.msra.mxu0 %v24218_v34  ;;  %23257 = vmatpush3.msra.mxu1 %v15845_v61 }
 0xe1c   : > { %23238 = vmatmul.mubr.f32.vlgmr.msra.gmra.mxu0 %v15222_v48  ;;  %23247 = vmatprep.subr.mxu0 %v25466_v43 }
 0xe1d   : > { %23248 = vmatpush3.msra.mxu0 %v25466_v43  ;;  %23251 = vmatprep.mubr.f32.mxu0 %v24182_v24 }
 0xe1e   : > { %23249 = vmatprep.subr.mxu0 %v25475_v22  ;;  %23258 = vmatprep.mubr.f32.mxu1 %v24160_v9 }
 0xe1f   : > { %23250 = vmatpush3.msra.mxu0 %v25475_v22  ;;  %23259 = vmatmul.mubr.f32.vlgmr.msra.gmra.mxu1 %v24162_v10 }
 0xe20   : > { %23252 = vmatmul.mubr.f32.vlgmr.msra.gmra.mxu0 %v24184_v25  ;;  %23261 = vmatprep.subr.mxu0 %v15835_v16 }
 0xe21   : > { %23262 = vmatpush3.msra.mxu0 %v15835_v16  ;;  %23268 = vmatprep.subr.mxu1 %v25466_v43  ;;  %v15660_v16 = vmul.f32 2.0, %v25291_v19 }
 0xe22   : > { %23263 = vmatprep.subr.mxu0 %v15842_v60  ;;  %23269 = vmatpush3.msra.mxu1 %v25466_v43 }
 0xe23   : > { %23264 = vmatpush3.msra.mxu0 %v15842_v60  ;;  %23265 = vmatprep.mubr.f32.mxu0 %v24166_v13  ;;  %v15662_v56 = vadd.f32 0.0001, %v15660_v16 }
 0xe24   : > { %23270 = vmatprep.subr.mxu1 %v25475_v22  ;;  %23266 = vmatmul.mubr.f32.vlgmr.msra.gmra.mxu0 %v24170_v14 }
 0xe25   : > { %23271 = vmatpush3.msra.mxu1 %v25475_v22  ;;  %23272 = vmatprep.mubr.f32.mxu1 %v24173_v17 }
 0xe26   : > { %23275 = vmatprep.subr.mxu0 %v25478_v47  ;;  %23273 = vmatmul.mubr.f32.vlgmr.msra.gmra.mxu1 %v24176_v18 }
 0xe27   : > { %23276 = vmatpush3.msra.mxu0 %v25478_v47  ;;  %23282 = vmatprep.subr.mxu1 %v25466_v43 }
 0xe28   : > { %23277 = vmatprep.subr.mxu0 %v15843_v50  ;;  %23283 = vmatpush3.msra.mxu1 %v25466_v43 }
 0xe29   : > { %23278 = vmatpush3.msra.mxu0 %v15843_v50  ;;  %23279 = vmatprep.mubr.f32.mxu0 %v24160_v9 }
 0xe2a   : > { %23284 = vmatprep.subr.mxu1 %v25475_v22  ;;  %23280 = vmatmul.mubr.f32.vlgmr.msra.gmra.mxu0 %v24162_v10 }
 0xe2b   : > { %23285 = vmatpush3.msra.mxu1 %v25475_v22  ;;  %23286 = vmatprep.mubr.f32.mxu1 %v24160_v9 }
 0xe2c   : > { %23287 = vmatmul.mubr.f32.vlgmr.msra.gmra.mxu1 %v24162_v10  ;;  %23296 = vmatprep.subr.mxu1 %v24220_v35 }
 0xe2d   : > { %23297 = vmatpush3.msra.mxu1 %v24220_v35  ;;  %23289 = vmatprep.subr.mxu0 %v24194_v28 }
 0xe2e   : > { %23298 = vmatprep.subr.mxu1 %v24225_v37  ;;  %23290 = vmatpush3.msra.mxu0 %v24194_v28 }
 0xe2f   : > { %23299 = vmatpush3.msra.mxu1 %v24225_v37  ;;  %23291 = vmatprep.subr.mxu0 %v24198_v29 }
 0xe30   : > { %23310 = vmatprep.subr.mxu1 %v24194_v28  ;;  %23292 = vmatpush3.msra.mxu0 %v24198_v29 }
 0xe31   : > { %23303 = vmatprep.subr.mxu0 %v24204_v30 }
 0xecc   : > { %v23218_v7 = vpop.f32.mrf.mxu1 }
 0xece   : > { %v15309_v21 = vpop.f32.mrf.mxu1 }
 0xed0   : > { %v23232_v23 = vpop.f32.mrf.mxu1 }
 0xed2   : > { %v15473_v59 = vpop.f32.mrf.mxu1 }
 0xed4   : > { %v23211_v3 = vpop.f32.mrf.mxu0  ;;  %v23246_v26 = vpop.f32.mrf.mxu1 }
 0xed5   : > { %v15316_v2 = vadd.f32 %v23218_v7, %v23211_v3  ;;  %v23759_v7 = vpop.eup %23758 }
 0xed6   : > { %v15218_v57 = vpop.f32.mrf.mxu0  ;;  %v15637_v0 = vpop.f32.mrf.mxu1 }
 0xed7   : > { %v15310_v52 = vadd.f32 %v15309_v21, %v15218_v57  ;;  %v23761_v57 = vpop.eup %23760 }
 0xed8   : > { %v23225_v11 = vpop.f32.mrf.mxu0 }
 0xed9   : > { %v15399_v39 = vadd.f32 %v23225_v11, %v15316_v2 }
 0xeda   : > { %v15391_v53 = vpop.f32.mrf.mxu0 }
 0xedb   : > { %v15392_v58 = vadd.f32 %v15391_v53, %v15310_v52  ;;  %v15482_v45 = vadd.f32 %v23232_v23, %v15399_v39 }
 0xedc   : > { %v23239_v43 = vpop.f32.mrf.mxu0 }
 0xedd   : > { %v15565_v5 = vadd.f32 %v23239_v43, %v15482_v45  ;;  %v15474_v41 = vadd.f32 %v15473_v59, %v15392_v58  ;;  %v25550_v43 = vld [vmem:[%s24232_s28 + $0x30] sm:$0xff] }
 0xede   : > { %v15558_v20 = vpop.f32.mrf.mxu0 }
 0xedf   : > { %v15644_v46 = vadd.f32 %v23246_v26, %v15565_v5  ;;  %v15559_v36 = vadd.f32 %v15558_v20, %v15474_v41  ;;  %v23260_v8 = vpop.f32.mrf.mxu1 }
 0xee0   : > { %v23253_v22 = vpop.f32.mrf.mxu0 }
 0xee1   : > { %v15658_v48 = vsub.f32 %v15644_v46, %v25291_v19  ;;  %v15638_v42 = vadd.f32 %v15637_v0, %v15559_v36  ;;  %v15882_v54 = vpop.f32.mrf.mxu1  ;;  %v15889_v60 = vadd.f32 %v23260_v8, %v23253_v22 }
 0xee2   : > { %v15791_v51 = vpop.f32.mrf.mxu0 }
 0xee3   : > { %v15664_v47 = vmul.f32 2.0, %v15658_v48  ;;  %v15657_v15 = vsub.f32 %v15638_v42, %v25304_v38  ;;  %v15883_v27 = vadd.f32 %v15882_v54, %v15791_v51  ;;  %v25540_v38 = vld [vmem:[%s24232_s28 + $0x38] sm:$0xff]  ;;  %v25560_v42 = vand.u32 4294901760, %v25550_v43 }
 0xee4   : > { %v23267_v62 = vpop.f32.mrf.mxu0  ;;  %v25545_v52 = vand.u32 4294901760, %v25540_v38 }
 0xee5   : > { %v15666_v1 = vadd.f32 0.0009, %v15664_v47  ;;  %v15663_v6 = vmul.f32 2.0, %v15657_v15  ;;  %v15972_v50 = vadd.f32 %v23267_v62, %v15889_v60  ;;  %v16852_v60 = vsub.f32 %v25550_v43, %v25560_v42 }
 0xee6   : > { %v23274_v63 = vpop.f32.mrf.mxu1  ;;  %v15964_v19 = vpop.f32.mrf.mxu0  ;;  %v16845_v48 = vsub.f32 %v25540_v38, %v25545_v52 }
 0xee7   : > { %v15668_v33 = vmul.f32 %v15666_v1, %v15662_v56  ;;  %v15665_v40 = vadd.f32 0.0009, %v15663_v6  ;;  %v16055_v44 = vadd.f32 %v23274_v63, %v15972_v50  ;;  %v15965_v61 = vadd.f32 %v15964_v19, %v15883_v27 }
 0xee8   : > { %v16046_v21 = vpop.f32.mrf.mxu1  ;;  %v25563_v15 = vand.u32 4294901760, %v16845_v48  ;;  %v16853_v50 = vand.u32 4294901760, %v16852_v60 }
 0xee9   : > { %v15667_v23 = vmul.f32 %v15665_v40, %v15661_v49  ;;  %v16047_v3 = vadd.f32 %v16046_v21, %v15965_v61  ;;  %v15682_v59 = vmul.f32 %v23759_v7, %v15668_v33 }
 0xeea   : > { %v23281_v2 = vpop.f32.mrf.mxu0  ;;  %v16847_v27 = vsub.f32 %v16845_v48, %v25563_v15  ;;  %v16854_v40 = vsub.f32 %v16852_v60, %v16853_v50 }
 0xeeb   : > { %v16138_v11 = vadd.f32 %v23281_v2, %v16055_v44  ;;  %v15680_v26 = vmul.f32 %v23761_v57, %v15667_v23  ;;  %21013 = vst.msk [vmem:[%s24679_s15 + $0x28] sm:$0xff] %vm333_vm0, %v15682_v59  ;;  %v15699_v58 = vsel %vm333_vm0, %v15682_v59, -inf  ;;  %v15687_v45 = vsel %vm333_vm0, %v15682_v59, inf }
 0xeec   : > { %v23288_v39 = vpop.f32.mrf.mxu1  ;;  %v16131_v53 = vpop.f32.mrf.mxu0  ;;  %v16848_v33 = vand.u32 4294901760, %v16847_v27  ;;  %v16855_v44 = vand.u32 4294901760, %v16854_v40 }
 0xeed   : > { %v16217_v0 = vadd.f32 %v23288_v39, %v16138_v11  ;;  %v16132_v5 = vadd.f32 %v16131_v53, %v16047_v3  ;;  %v15698_v41 = vsel %vm333_vm0, %v15680_v26, -inf  ;;  %21012 = vst.msk [vmem:[%s24679_s15 + $0x20] sm:$0xff] %vm333_vm0, %v15680_v26  ;;  %v15686_v20 = vsel %vm333_vm0, %v15680_v26, inf }
 0xeee   : > { %v16210_v46 = vpop.f32.mrf.mxu1  ;;  %v15700_v36 = vmax.f32 %v15698_v41, %v15699_v58  ;;  %v15688_v8 = vmin.f32 %v15686_v20, %v15687_v45 }
 0xeef   : > { %v16224_v16 = vsel %vm333_vm0, %v16217_v0, 0  ;;  %v16211_v22 = vadd.f32 %v16210_v46, %v16132_v5 }
 0xef0   : > { %v16303_v12 = vand.u32 4294901760, %v16224_v16  ;;  %15701 = vmax.xlane.f32.xlu1 %v15700_v36  ;;  %15689 = vmin.xlane.f32.xlu0 %v15688_v8 }
 0xef1   : > { %v16221_v51 = vsel %vm333_vm0, %v16211_v22, 0 }
 0xef2   : > { %v16304_v54 = vsub.f32 %v16224_v16, %v16303_v12  ;;  %v16293_v47 = vand.u32 4294901760, %v16221_v51 }
 0xef4   : > { %v16305_v56 = vand.u32 4294901760, %v16304_v54  ;;  %v16294_v62 = vsub.f32 %v16221_v51, %v16293_v47  ;;  %23300 = vmatprep.mubr.f32.mxu1 %v16293_v47 }
 0xef5   : > { %23301 = vmatmul.mubr.f32.vlgmr.msra.gmra.mxu1 %v16303_v12 }
 0xef6   : > { %23311 = vmatpush3.msra.mxu1 %v24194_v28  ;;  %v16295_v1 = vand.u32 4294901760, %v16294_v62  ;;  %v16306_v6 = vsub.f32 %v16304_v54, %v16305_v56 }
 0xef7   : > { %23312 = vmatprep.subr.mxu1 %v24198_v29 }
 0xef8   : > { %23313 = vmatpush3.msra.mxu1 %v24198_v29  ;;  %23314 = vmatprep.mubr.f32.mxu1 %v16295_v1  ;;  %v16296_v49 = vsub.f32 %v16294_v62, %v16295_v1  ;;  %v16307_v19 = vand.u32 4294901760, %v16306_v6 }
 0xef9   : > { %23315 = vmatmul.mubr.f32.vlgmr.msra.gmra.mxu1 %v16305_v56  ;;  %23324 = vmatprep.subr.mxu1 %v24194_v28 }
 0xefa   : > { %23325 = vmatpush3.msra.mxu1 %v24194_v28  ;;  %23328 = vmatprep.mubr.f32.mxu1 %v16293_v47  ;;  %v16297_v63 = vand.u32 4294901760, %v16296_v49 }
 0xefb   : > { %23326 = vmatprep.subr.mxu1 %v24198_v29 }
 0xefc   : > { %23293 = vmatprep.mubr.f32.mxu0 %v16297_v63  ;;  %23327 = vmatpush3.msra.mxu1 %v24198_v29 }
 0xefd   : > { %23294 = vmatmul.mubr.f32.vlgmr.msra.gmra.mxu0 %v16307_v19  ;;  %23329 = vmatmul.mubr.f32.vlgmr.msra.gmra.mxu1 %v16303_v12 }
 0xefe   : > { %23304 = vmatpush3.msra.mxu0 %v24204_v30  ;;  %23307 = vmatprep.mubr.f32.mxu0 %v16294_v62 }
 0xeff   : > { %23305 = vmatprep.subr.mxu0 %v24210_v31  ;;  %23338 = vmatprep.subr.mxu1 %v16848_v33 }
 0xf00   : > { %23306 = vmatpush3.msra.mxu0 %v24210_v31  ;;  %23339 = vmatpush3.msra.mxu1 %v16848_v33 }
 0xf01   : > { %23308 = vmatmul.mubr.f32.vlgmr.msra.gmra.mxu0 %v16304_v54  ;;  %23317 = vmatprep.subr.mxu0 %v24213_v32 }
 0xf02   : > { %23318 = vmatpush3.msra.mxu0 %v24213_v32  ;;  %23321 = vmatprep.mubr.f32.mxu0 %v16293_v47 }
 0xf03   : > { %23319 = vmatprep.subr.mxu0 %v24218_v34  ;;  %23340 = vmatprep.subr.mxu1 %v16855_v44 }
 0xf04   : > { %23320 = vmatpush3.msra.mxu0 %v24218_v34  ;;  %23341 = vmatpush3.msra.mxu1 %v16855_v44 }
 0xf05   : > { %23322 = vmatmul.mubr.f32.vlgmr.msra.gmra.mxu0 %v16303_v12  ;;  %23331 = vmatprep.subr.mxu0 %v25545_v52 }
 0xf06   : > { %23332 = vmatpush3.msra.mxu0 %v25545_v52  ;;  %23335 = vmatprep.mubr.f32.mxu0 %v24182_v24 }
 0xf07   : > { %23333 = vmatprep.subr.mxu0 %v25560_v42  ;;  %23342 = vmatprep.mubr.f32.mxu1 %v24160_v9 }
 0xf08   : > { %23334 = vmatpush3.msra.mxu0 %v25560_v42  ;;  %23343 = vmatmul.mubr.f32.vlgmr.msra.gmra.mxu1 %v24162_v10 }
 0xf09   : > { %23336 = vmatmul.mubr.f32.vlgmr.msra.gmra.mxu0 %v24184_v25  ;;  %23345 = vmatprep.subr.mxu0 %v16845_v48 }
 0xf0a   : > { %23346 = vmatpush3.msra.mxu0 %v16845_v48  ;;  %23352 = vmatprep.subr.mxu1 %v25545_v52 }
 0xf0b   : > { %23347 = vmatprep.subr.mxu0 %v16852_v60  ;;  %23353 = vmatpush3.msra.mxu1 %v25545_v52 }
 0xf0c   : > { %23348 = vmatpush3.msra.mxu0 %v16852_v60  ;;  %23349 = vmatprep.mubr.f32.mxu0 %v24166_v13 }
 0xf0d   : > { %23354 = vmatprep.subr.mxu1 %v25560_v42  ;;  %23350 = vmatmul.mubr.f32.vlgmr.msra.gmra.mxu0 %v24170_v14 }
 0xf0e   : > { %23355 = vmatpush3.msra.mxu1 %v25560_v42  ;;  %23356 = vmatprep.mubr.f32.mxu1 %v24173_v17 }
 0xf0f   : > { %23359 = vmatprep.subr.mxu0 %v25563_v15  ;;  %23357 = vmatmul.mubr.f32.vlgmr.msra.gmra.mxu1 %v24176_v18 }
 0xf10   : > { %23360 = vmatpush3.msra.mxu0 %v25563_v15  ;;  %23366 = vmatprep.subr.mxu1 %v25545_v52 }
 0xf11   : > { %23361 = vmatprep.subr.mxu0 %v16853_v50  ;;  %23367 = vmatpush3.msra.mxu1 %v25545_v52 }
 0xf12   : > { %23362 = vmatpush3.msra.mxu0 %v16853_v50  ;;  %23363 = vmatprep.mubr.f32.mxu0 %v24160_v9 }
 0xf13   : > { %23368 = vmatprep.subr.mxu1 %v25560_v42  ;;  %23364 = vmatmul.mubr.f32.vlgmr.msra.gmra.mxu0 %v24162_v10 }
 0xf14   : > { %23369 = vmatpush3.msra.mxu1 %v25560_v42  ;;  %23370 = vmatprep.mubr.f32.mxu1 %v24160_v9 }
 0xf15   : > { %23371 = vmatmul.mubr.f32.vlgmr.msra.gmra.mxu1 %v24162_v10  ;;  %23380 = vmatprep.subr.mxu1 %v24220_v35 }
 0xf16   : > { %23381 = vmatpush3.msra.mxu1 %v24220_v35  ;;  %23373 = vmatprep.subr.mxu0 %v24194_v28 }
 0xf17   : > { %23382 = vmatprep.subr.mxu1 %v24225_v37  ;;  %23374 = vmatpush3.msra.mxu0 %v24194_v28 }
 0xf18   : > { %23383 = vmatpush3.msra.mxu1 %v24225_v37  ;;  %23375 = vmatprep.subr.mxu0 %v24198_v29 }
 0xf19   : > { %23394 = vmatprep.subr.mxu1 %v24194_v28  ;;  %23376 = vmatpush3.msra.mxu0 %v24198_v29 }
 0xf1a   : > { %23387 = vmatprep.subr.mxu0 %v24204_v30 }
 0xf79   : > { %v15702_v61 = vpop.xlane.xlu1 %15701  ;;  %v15690_v7 = vpop.xlane.xlu0 %15689 }
 0xf7a   : > { %v15703_v21 = vrot.slane %v15702_v61, 4  ;;  %v15691_v23 = vrot.slane %v15690_v7, 4 }
 0xf7c   : > { %v15704_v3 = vmax.f32 %v15702_v61, %v15703_v21  ;;  %v15692_v59 = vmin.f32 %v15690_v7, %v15691_v23 }
 0xf7e   : > { %v15705_v57 = vrot.slane %v15704_v3, 2  ;;  %v15693_v2 = vrot.slane %v15692_v59, 2 }
 0xf80   : > { %v15694_v11 = vmin.f32 %v15692_v59, %v15693_v2  ;;  %v15706_v26 = vmax.f32 %v15704_v3, %v15705_v57  ;;  %v17739_v3 = vmul.f32 %v25461_v4, %v25461_v4 }
 0xf82   : > { %v15695_v52 = vrot.slane %v15694_v11, 1  ;;  %v15707_v39 = vrot.slane %v15706_v26, 1 }
 0xf84   : > { %v15696_v53 = vmin.f32 %v15694_v11, %v15695_v52  ;;  %v15708_v58 = vmax.f32 %v15706_v26, %v15707_v39  ;;  %v25624_v26 = vand.u32 4294901760, %v17739_v3  ;;  %v17738_v52 = vmul.f32 %v25469_v55, %v25469_v55 }
 0xf86   : > { %23675 = vpush %v15696_v53  ;;  %v25630_v4 = vand.u32 4294901760, %v17738_v52 }
 0xf87   : > { %23677 = vpush %v15708_v58 }
 0xf88   : > { %v17864_v55 = vsub.f32 %v17738_v52, %v25630_v4 }
 0xfb5   : > { %v23302_v45 = vpop.f32.mrf.mxu1 }
 0xfb7   : > { %v16390_v0 = vpop.f32.mrf.mxu1  ;;  %s23676_s9 = spop %23675 }
 0xfb8   : > { %s23678_s24 = spop %23677  ;;  %s15710_s30 = smin.f32 %s23676_s9, %s10583_s16 }
 0xfb9   : > { %v23316_v5 = vpop.f32.mrf.mxu1  ;;  %s15711_s10 = smax.f32 %s23678_s24, %s10584_s25 }
 0xfbb   : > { %v16554_v20 = vpop.f32.mrf.mxu1 }
 0xfbd   : > { %v23295_v41 = vpop.f32.mrf.mxu0  ;;  %v23330_v22 = vpop.f32.mrf.mxu1 }
 0xfbe   : > { %v16397_v46 = vadd.f32 %v23302_v45, %v23295_v41 }
 0xfbf   : > { %v16299_v36 = vpop.f32.mrf.mxu0  ;;  %v16718_v47 = vpop.f32.mrf.mxu1 }
 0xfc0   : > { %v16391_v8 = vadd.f32 %v16390_v0, %v16299_v36 }
 0xfc1   : > { %v23309_v16 = vpop.f32.mrf.mxu0 }
 0xfc2   : > { %v16480_v48 = vadd.f32 %v23309_v16, %v16397_v46 }
 0xfc3   : > { %v16472_v42 = vpop.f32.mrf.mxu0 }
 0xfc4   : > { %v16473_v12 = vadd.f32 %v16472_v42, %v16391_v8  ;;  %v16563_v51 = vadd.f32 %v23316_v5, %v16480_v48 }
 0xfc5   : > { %v23323_v54 = vpop.f32.mrf.mxu0 }
 0xfc6   : > { %v16646_v15 = vadd.f32 %v23323_v54, %v16563_v51  ;;  %v16555_v60 = vadd.f32 %v16554_v20, %v16473_v12  ;;  %v17857_v20 = vsub.f32 %v17739_v3, %v25624_v26 }
 0xfc7   : > { %v16639_v56 = vpop.f32.mrf.mxu0 }
 0xfc8   : > { %v25618_v62 = vadd.f32 %v23330_v22, %v16646_v15  ;;  %v16640_v1 = vadd.f32 %v16639_v56, %v16555_v60  ;;  %v23344_v6 = vpop.f32.mrf.mxu1  ;;  %v25633_v22 = vand.u32 4294901760, %v17857_v20 }
 0xfc9   : > { %v23337_v27 = vpop.f32.mrf.mxu0 }
 0xfca   : > { %v25620_v50 = vadd.f32 %v16718_v47, %v16640_v1  ;;  %v16892_v63 = vpop.f32.mrf.mxu1  ;;  %v16899_v19 = vadd.f32 %v23344_v6, %v23337_v27  ;;  %v17859_v54 = vsub.f32 %v17857_v20, %v25633_v22  ;;  %v17865_v47 = vand.u32 4294901760, %v17864_v55 }
 0xfcb   : > { %v16801_v49 = vpop.f32.mrf.mxu0 }
 0xfcc   : > { %v16893_v40 = vadd.f32 %v16892_v63, %v16801_v49  ;;  %v17860_v1 = vand.u32 4294901760, %v17859_v54  ;;  %v17866_v6 = vsub.f32 %v17864_v55, %v17865_v47 }
 0xfcd   : > { %v23351_v33 = vpop.f32.mrf.mxu0 }
 0xfce   : > { %v16982_v44 = vadd.f32 %v23351_v33, %v16899_v19  ;;  %v17867_v27 = vand.u32 4294901760, %v17866_v6 }
 0xfcf   : > { %v23358_v61 = vpop.f32.mrf.mxu1  ;;  %v16974_v7 = vpop.f32.mrf.mxu0 }
 0xfd0   : > { %v17065_v21 = vadd.f32 %v23358_v61, %v16982_v44  ;;  %v16975_v23 = vadd.f32 %v16974_v7, %v16893_v40 }
 0xfd1   : > { %v17056_v59 = vpop.f32.mrf.mxu1 }
 0xfd2   : > { %v17057_v57 = vadd.f32 %v17056_v59, %v16975_v23 }
 0xfd3   : > { %v23365_v2 = vpop.f32.mrf.mxu0 }
 0xfd4   : > { %v17148_v11 = vadd.f32 %v23365_v2, %v17065_v21 }
 0xfd5   : > { %v23372_v39 = vpop.f32.mrf.mxu1  ;;  %v17141_v53 = vpop.f32.mrf.mxu0 }
 0xfd6   : > { %v17227_v58 = vadd.f32 %v23372_v39, %v17148_v11  ;;  %v17142_v45 = vadd.f32 %v17141_v53, %v17057_v57 }
 0xfd7   : > { %v17220_v0 = vpop.f32.mrf.mxu1 }
 0xfd8   : > { %v17234_v5 = vsel %vm333_vm0, %v17227_v58, 0  ;;  %v17221_v41 = vadd.f32 %v17220_v0, %v17142_v45 }
 0xfd9   : > { %v17313_v46 = vand.u32 4294901760, %v17234_v5 }
 0xfda   : > { %v17231_v36 = vsel %vm333_vm0, %v17221_v41, 0  ;;  %v25689_v41 = vmul.f32 %v25618_v62, %v25618_v62 }
 0xfdb   : > { %v17314_v8 = vsub.f32 %v17234_v5, %v17313_v46  ;;  %v17303_v16 = vand.u32 4294901760, %v17231_v36 }
 0xfdd   : > { %v17315_v48 = vand.u32 4294901760, %v17314_v8  ;;  %v17304_v42 = vsub.f32 %v17231_v36, %v17303_v16  ;;  %23384 = vmatprep.mubr.f32.mxu1 %v17303_v16 }
 0xfde   : > { %23385 = vmatmul.mubr.f32.vlgmr.msra.gmra.mxu1 %v17313_v46 }
 0xfdf   : > { %23395 = vmatpush3.msra.mxu1 %v24194_v28  ;;  %v17305_v12 = vand.u32 4294901760, %v17304_v42  ;;  %v17316_v51 = vsub.f32 %v17314_v8, %v17315_v48 }
 0xfe0   : > { %23396 = vmatprep.subr.mxu1 %v24198_v29 }
 0xfe1   : > { %23397 = vmatpush3.msra.mxu1 %v24198_v29  ;;  %23398 = vmatprep.mubr.f32.mxu1 %v17305_v12  ;;  %v17306_v15 = vsub.f32 %v17304_v42, %v17305_v12  ;;  %v17317_v56 = vand.u32 4294901760, %v17316_v51 }
 0xfe2   : > { %23399 = vmatmul.mubr.f32.vlgmr.msra.gmra.mxu1 %v17315_v48  ;;  %23408 = vmatprep.subr.mxu1 %v24194_v28 }
 0xfe3   : > { %23409 = vmatpush3.msra.mxu1 %v24194_v28  ;;  %23412 = vmatprep.mubr.f32.mxu1 %v17303_v16  ;;  %v17307_v60 = vand.u32 4294901760, %v17306_v15 }
 0xfe4   : > { %23410 = vmatprep.subr.mxu1 %v24198_v29 }
 0xfe5   : > { %23377 = vmatprep.mubr.f32.mxu0 %v17307_v60  ;;  %23411 = vmatpush3.msra.mxu1 %v24198_v29 }
 0xfe6   : > { %23378 = vmatmul.mubr.f32.vlgmr.msra.gmra.mxu0 %v17317_v56  ;;  %23413 = vmatmul.mubr.f32.vlgmr.msra.gmra.mxu1 %v17313_v46  ;;  %v18751_v56 = vmul.f32 %v25540_v38, %v25540_v38 }
 0xfe7   : > { %23388 = vmatpush3.msra.mxu0 %v24204_v30  ;;  %23391 = vmatprep.mubr.f32.mxu0 %v17304_v42 }
 0xfe8   : > { %23389 = vmatprep.subr.mxu0 %v24210_v31  ;;  %23422 = vmatprep.subr.mxu1 %v17860_v1 }
 0xfe9   : > { %23390 = vmatpush3.msra.mxu0 %v24210_v31  ;;  %23423 = vmatpush3.msra.mxu1 %v17860_v1 }
 0xfea   : > { %23392 = vmatmul.mubr.f32.vlgmr.msra.gmra.mxu0 %v17314_v8  ;;  %23401 = vmatprep.subr.mxu0 %v24213_v32 }
 0xfeb   : > { %23402 = vmatpush3.msra.mxu0 %v24213_v32  ;;  %23405 = vmatprep.mubr.f32.mxu0 %v17303_v16  ;;  %v25698_v16 = vmul.f32 %v25620_v50, %v25620_v50 }
 0xfec   : > { %23403 = vmatprep.subr.mxu0 %v24218_v34  ;;  %23424 = vmatprep.subr.mxu1 %v17867_v27 }
 0xfed   : > { %23404 = vmatpush3.msra.mxu0 %v24218_v34  ;;  %23425 = vmatpush3.msra.mxu1 %v17867_v27 }
 0xfee   : > { %23406 = vmatmul.mubr.f32.vlgmr.msra.gmra.mxu0 %v17313_v46  ;;  %23415 = vmatprep.subr.mxu0 %v25624_v26 }
 0xfef   : > { %23416 = vmatpush3.msra.mxu0 %v25624_v26  ;;  %23419 = vmatprep.mubr.f32.mxu0 %v24182_v24 }
 0xff0   : > { %23417 = vmatprep.subr.mxu0 %v25630_v4  ;;  %23426 = vmatprep.mubr.f32.mxu1 %v24160_v9 }
 0xff1   : > { %23418 = vmatpush3.msra.mxu0 %v25630_v4  ;;  %23427 = vmatmul.mubr.f32.vlgmr.msra.gmra.mxu1 %v24162_v10 }
 0xff2   : > { %23420 = vmatmul.mubr.f32.vlgmr.msra.gmra.mxu0 %v24184_v25  ;;  %23429 = vmatprep.subr.mxu0 %v17857_v20 }
 0xff3   : > { %23430 = vmatpush3.msra.mxu0 %v17857_v20  ;;  %23436 = vmatprep.subr.mxu1 %v25624_v26 }
 0xff4   : > { %23431 = vmatprep.subr.mxu0 %v17864_v55  ;;  %23437 = vmatpush3.msra.mxu1 %v25624_v26 }
 0xff5   : > { %23432 = vmatpush3.msra.mxu0 %v17864_v55  ;;  %23433 = vmatprep.mubr.f32.mxu0 %v24166_v13 }
 0xff6   : > { %23438 = vmatprep.subr.mxu1 %v25630_v4  ;;  %23434 = vmatmul.mubr.f32.vlgmr.msra.gmra.mxu0 %v24170_v14 }
 0xff7   : > { %23439 = vmatpush3.msra.mxu1 %v25630_v4  ;;  %23440 = vmatprep.mubr.f32.mxu1 %v24173_v17 }
 0xff8   : > { %23443 = vmatprep.subr.mxu0 %v25633_v22  ;;  %23441 = vmatmul.mubr.f32.vlgmr.msra.gmra.mxu1 %v24176_v18 }
 0xff9   : > { %23444 = vmatpush3.msra.mxu0 %v25633_v22  ;;  %23450 = vmatprep.subr.mxu1 %v25624_v26 }
 0xffa   : > { %23445 = vmatprep.subr.mxu0 %v17865_v47  ;;  %23451 = vmatpush3.msra.mxu1 %v25624_v26 }
 0xffb   : > { %23446 = vmatpush3.msra.mxu0 %v17865_v47  ;;  %23447 = vmatprep.mubr.f32.mxu0 %v24160_v9 }
 0xffc   : > { %23452 = vmatprep.subr.mxu1 %v25630_v4  ;;  %23448 = vmatmul.mubr.f32.vlgmr.msra.gmra.mxu0 %v24162_v10 }
 0xffd   : > { %23453 = vmatpush3.msra.mxu1 %v25630_v4  ;;  %23454 = vmatprep.mubr.f32.mxu1 %v24160_v9 }
 0xffe   : > { %23455 = vmatmul.mubr.f32.vlgmr.msra.gmra.mxu1 %v24162_v10  ;;  %23464 = vmatprep.subr.mxu1 %v24220_v35 }
 0xfff   : > { %23465 = vmatpush3.msra.mxu1 %v24220_v35  ;;  %23457 = vmatprep.subr.mxu0 %v24194_v28 }
0x1000   : > { %23466 = vmatprep.subr.mxu1 %v24225_v37  ;;  %23458 = vmatpush3.msra.mxu0 %v24194_v28 }
0x1001   : > { %23467 = vmatpush3.msra.mxu1 %v24225_v37  ;;  %23459 = vmatprep.subr.mxu0 %v24198_v29 }
0x1002   : > { %23478 = vmatprep.subr.mxu1 %v24194_v28  ;;  %23460 = vmatpush3.msra.mxu0 %v24198_v29 }
0x1003   : > { %23471 = vmatprep.subr.mxu0 %v24204_v30 }
0x109e   : > { %v23386_v49 = vpop.f32.mrf.mxu1 }
0x10a0   : > { %v17400_v63 = vpop.f32.mrf.mxu1 }
0x10a2   : > { %v23400_v19 = vpop.f32.mrf.mxu1 }
0x10a4   : > { %v17564_v40 = vpop.f32.mrf.mxu1 }
0x10a6   : > { %v23379_v33 = vpop.f32.mrf.mxu0  ;;  %v23414_v23 = vpop.f32.mrf.mxu1 }
0x10a7   : > { %v17407_v44 = vadd.f32 %v23386_v49, %v23379_v33 }
0x10a8   : > { %v17309_v61 = vpop.f32.mrf.mxu0  ;;  %v17728_v26 = vpop.f32.mrf.mxu1 }
0x10a9   : > { %v17401_v7 = vadd.f32 %v17400_v63, %v17309_v61  ;;  %v25715_v63 = vand.u32 4294901760, %v18751_v56 }
0x10aa   : > { %v23393_v21 = vpop.f32.mrf.mxu0 }
0x10ab   : > { %v17490_v3 = vadd.f32 %v23393_v21, %v17407_v44 }
0x10ac   : > { %v17482_v59 = vpop.f32.mrf.mxu0 }
0x10ad   : > { %v17483_v57 = vadd.f32 %v17482_v59, %v17401_v7  ;;  %v17573_v2 = vadd.f32 %v23400_v19, %v17490_v3  ;;  %v18750_v19 = vmul.f32 %v25550_v43, %v25550_v43  ;;  %v18869_v3 = vsub.f32 %v18751_v56, %v25715_v63 }
0x10ae   : > { %v23407_v11 = vpop.f32.mrf.mxu0 }
0x10af   : > { %v17656_v52 = vadd.f32 %v23407_v11, %v17573_v2  ;;  %v17565_v39 = vadd.f32 %v17564_v40, %v17483_v57  ;;  %v25721_v59 = vand.u32 4294901760, %v18750_v19 }
0x10b0   : > { %v17649_v53 = vpop.f32.mrf.mxu0 }
0x10b1   : > { %v17735_v58 = vadd.f32 %v23414_v23, %v17656_v52  ;;  %v17650_v45 = vadd.f32 %v17649_v53, %v17565_v39  ;;  %v23428_v0 = vpop.f32.mrf.mxu1  ;;  %v25724_v52 = vand.u32 4294901760, %v18869_v3  ;;  %v18876_v39 = vsub.f32 %v18750_v19, %v25721_v59 }
0x10b2   : > { %v23421_v5 = vpop.f32.mrf.mxu0 }
0x10b3   : > { %v25691_v20 = vmul.f32 %v17735_v58, %v17735_v58  ;;  %v25694_v4 = vmul.f32 %v17735_v58, %v25618_v62  ;;  %v17729_v46 = vadd.f32 %v17728_v26, %v17650_v45  ;;  %v17904_v8 = vpop.f32.mrf.mxu1  ;;  %v17911_v42 = vadd.f32 %v23428_v0, %v23421_v5 }
0x10b4   : > { %v17813_v36 = vpop.f32.mrf.mxu0  ;;  %v18871_v5 = vsub.f32 %v18869_v3, %v25724_v52 }
0x10b5   : > { %v25702_v22 = vadd.f32 %v25691_v20, %v25689_v41  ;;  %v25704_v55 = vmul.f32 %v17729_v46, %v17729_v46  ;;  %v25707_v48 = vmul.f32 %v17729_v46, %v25620_v50  ;;  %v17905_v51 = vadd.f32 %v17904_v8, %v17813_v36 }
0x10b6   : > { %v23435_v12 = vpop.f32.mrf.mxu0  ;;  %v18877_v46 = vand.u32 4294901760, %v18876_v39 }
0x10b7   : > { %v25711_v62 = vadd.f32 %v25704_v55, %v25698_v16  ;;  %v17994_v54 = vadd.f32 %v23435_v12, %v17911_v42  ;;  %v18872_v12 = vand.u32 4294901760, %v18871_v5 }
0x10b8   : > { %v23442_v47 = vpop.f32.mrf.mxu1  ;;  %v17986_v15 = vpop.f32.mrf.mxu0 }
0x10b9   : > { %v17987_v60 = vadd.f32 %v17986_v15, %v17905_v51  ;;  %v18077_v1 = vadd.f32 %v23442_v47, %v17994_v54  ;;  %v18878_v51 = vsub.f32 %v18876_v39, %v18877_v46 }
0x10ba   : > { %v18068_v6 = vpop.f32.mrf.mxu1 }
0x10bb   : > { %v18069_v27 = vadd.f32 %v18068_v6, %v17987_v60  ;;  %v18879_v54 = vand.u32 4294901760, %v18878_v51  ;;  %v23770_v51 = vld [vmem:[%s24143_s6 + $0x38] sm:$0xff] }
0x10bc   : > { %v23449_v49 = vpop.f32.mrf.mxu0 }
0x10bd   : > { %v18160_v50 = vadd.f32 %v23449_v49, %v18077_v1 }
0x10be   : > { %v23456_v33 = vpop.f32.mrf.mxu1  ;;  %v18153_v40 = vpop.f32.mrf.mxu0 }
0x10bf   : > { %v18239_v44 = vadd.f32 %v23456_v33, %v18160_v50  ;;  %v18154_v61 = vadd.f32 %v18153_v40, %v18069_v27 }
0x10c0   : > { %v18232_v7 = vpop.f32.mrf.mxu1 }
0x10c1   : > { %v18246_v21 = vsel %vm333_vm0, %v18239_v44, 0  ;;  %v18233_v23 = vadd.f32 %v18232_v7, %v18154_v61 }
0x10c2   : > { %v18325_v57 = vand.u32 4294901760, %v18246_v21 }
0x10c3   : > { %v18243_v2 = vsel %vm333_vm0, %v18233_v23, 0 }
0x10c4   : > { %v18326_v11 = vsub.f32 %v18246_v21, %v18325_v57  ;;  %v18315_v26 = vand.u32 4294901760, %v18243_v2 }
0x10c6   : > { %v18327_v53 = vand.u32 4294901760, %v18326_v11  ;;  %v18316_v58 = vsub.f32 %v18243_v2, %v18315_v26  ;;  %23468 = vmatprep.mubr.f32.mxu1 %v18315_v26 }
0x10c7   : > { %23469 = vmatmul.mubr.f32.vlgmr.msra.gmra.mxu1 %v18325_v57 }
0x10c8   : > { %23479 = vmatpush3.msra.mxu1 %v24194_v28  ;;  %v18317_v45 = vand.u32 4294901760, %v18316_v58  ;;  %v18328_v0 = vsub.f32 %v18326_v11, %v18327_v53 }
0x10c9   : > { %23480 = vmatprep.subr.mxu1 %v24198_v29 }
0x10ca   : > { %23481 = vmatpush3.msra.mxu1 %v24198_v29  ;;  %23482 = vmatprep.mubr.f32.mxu1 %v18317_v45  ;;  %v18318_v36 = vsub.f32 %v18316_v58, %v18317_v45  ;;  %v18329_v42 = vand.u32 4294901760, %v18328_v0 }
0x10cb   : > { %23483 = vmatmul.mubr.f32.vlgmr.msra.gmra.mxu1 %v18327_v53  ;;  %23492 = vmatprep.subr.mxu1 %v24194_v28 }
0x10cc   : > { %23493 = vmatpush3.msra.mxu1 %v24194_v28  ;;  %23496 = vmatprep.mubr.f32.mxu1 %v18315_v26  ;;  %v18319_v8 = vand.u32 4294901760, %v18318_v36 }
0x10cd   : > { %23494 = vmatprep.subr.mxu1 %v24198_v29 }
0x10ce   : > { %23461 = vmatprep.mubr.f32.mxu0 %v18319_v8  ;;  %23495 = vmatpush3.msra.mxu1 %v24198_v29 }
0x10cf   : > { %23462 = vmatmul.mubr.f32.vlgmr.msra.gmra.mxu0 %v18329_v42  ;;  %23497 = vmatmul.mubr.f32.vlgmr.msra.gmra.mxu1 %v18325_v57 }
0x10d0   : > { %23472 = vmatpush3.msra.mxu0 %v24204_v30  ;;  %23475 = vmatprep.mubr.f32.mxu0 %v18316_v58 }
0x10d1   : > { %23473 = vmatprep.subr.mxu0 %v24210_v31  ;;  %23506 = vmatprep.subr.mxu1 %v18872_v12 }
0x10d2   : > { %23474 = vmatpush3.msra.mxu0 %v24210_v31  ;;  %23507 = vmatpush3.msra.mxu1 %v18872_v12 }
0x10d3   : > { %23476 = vmatmul.mubr.f32.vlgmr.msra.gmra.mxu0 %v18326_v11  ;;  %23485 = vmatprep.subr.mxu0 %v24213_v32 }
0x10d4   : > { %23486 = vmatpush3.msra.mxu0 %v24213_v32  ;;  %23489 = vmatprep.mubr.f32.mxu0 %v18315_v26 }
0x10d5   : > { %23487 = vmatprep.subr.mxu0 %v24218_v34  ;;  %23508 = vmatprep.subr.mxu1 %v18879_v54 }
0x10d6   : > { %23488 = vmatpush3.msra.mxu0 %v24218_v34  ;;  %23509 = vmatpush3.msra.mxu1 %v18879_v54  ;;  %v19763_v54 = vmul.f32 %v23770_v51, %v25540_v38 }
0x10d7   : > { %23490 = vmatmul.mubr.f32.vlgmr.msra.gmra.mxu0 %v18325_v57  ;;  %23499 = vmatprep.subr.mxu0 %v25715_v63 }
0x10d8   : > { %23500 = vmatpush3.msra.mxu0 %v25715_v63  ;;  %23503 = vmatprep.mubr.f32.mxu0 %v24182_v24 }
0x10d9   : > { %23501 = vmatprep.subr.mxu0 %v25721_v59  ;;  %23510 = vmatprep.mubr.f32.mxu1 %v24160_v9 }
0x10da   : > { %23502 = vmatpush3.msra.mxu0 %v25721_v59  ;;  %23511 = vmatmul.mubr.f32.vlgmr.msra.gmra.mxu1 %v24162_v10 }
0x10db   : > { %23504 = vmatmul.mubr.f32.vlgmr.msra.gmra.mxu0 %v24184_v25  ;;  %23513 = vmatprep.subr.mxu0 %v18869_v3 }
0x10dc   : > { %23514 = vmatpush3.msra.mxu0 %v18869_v3  ;;  %23520 = vmatprep.subr.mxu1 %v25715_v63 }
0x10dd   : > { %23515 = vmatprep.subr.mxu0 %v18876_v39  ;;  %23521 = vmatpush3.msra.mxu1 %v25715_v63 }
0x10de   : > { %23516 = vmatpush3.msra.mxu0 %v18876_v39  ;;  %23517 = vmatprep.mubr.f32.mxu0 %v24166_v13 }
0x10df   : > { %23522 = vmatprep.subr.mxu1 %v25721_v59  ;;  %23518 = vmatmul.mubr.f32.vlgmr.msra.gmra.mxu0 %v24170_v14 }
0x10e0   : > { %23523 = vmatpush3.msra.mxu1 %v25721_v59  ;;  %23524 = vmatprep.mubr.f32.mxu1 %v24173_v17 }
0x10e1   : > { %23527 = vmatprep.subr.mxu0 %v25724_v52  ;;  %23525 = vmatmul.mubr.f32.vlgmr.msra.gmra.mxu1 %v24176_v18 }
0x10e2   : > { %23528 = vmatpush3.msra.mxu0 %v25724_v52  ;;  %23534 = vmatprep.subr.mxu1 %v25715_v63 }
0x10e3   : > { %23529 = vmatprep.subr.mxu0 %v18877_v46  ;;  %23535 = vmatpush3.msra.mxu1 %v25715_v63 }
0x10e4   : > { %23530 = vmatpush3.msra.mxu0 %v18877_v46  ;;  %23531 = vmatprep.mubr.f32.mxu0 %v24160_v9 }
0x10e5   : > { %23536 = vmatprep.subr.mxu1 %v25721_v59  ;;  %23532 = vmatmul.mubr.f32.vlgmr.msra.gmra.mxu0 %v24162_v10 }
0x10e6   : > { %23537 = vmatpush3.msra.mxu1 %v25721_v59  ;;  %23538 = vmatprep.mubr.f32.mxu1 %v24160_v9 }
0x10e7   : > { %23539 = vmatmul.mubr.f32.vlgmr.msra.gmra.mxu1 %v24162_v10  ;;  %23548 = vmatprep.subr.mxu1 %v24220_v35 }
0x10e8   : > { %23549 = vmatpush3.msra.mxu1 %v24220_v35  ;;  %23541 = vmatprep.subr.mxu0 %v24194_v28 }
0x10e9   : > { %23550 = vmatprep.subr.mxu1 %v24225_v37  ;;  %23542 = vmatpush3.msra.mxu0 %v24194_v28 }
0x10ea   : > { %23551 = vmatpush3.msra.mxu1 %v24225_v37  ;;  %23543 = vmatprep.subr.mxu0 %v24198_v29 }
0x10eb   : > { %23562 = vmatprep.subr.mxu1 %v24194_v28  ;;  %23544 = vmatpush3.msra.mxu0 %v24198_v29 }
0x10ec   : > { %23555 = vmatprep.subr.mxu0 %v24204_v30 }
0x1187   : > { %v23470_v47 = vpop.f32.mrf.mxu1 }
0x1189   : > { %v18412_v15 = vpop.f32.mrf.mxu1 }
0x118b   : > { %v23484_v60 = vpop.f32.mrf.mxu1 }
0x118d   : > { %v18576_v1 = vpop.f32.mrf.mxu1 }
0x118f   : > { %v23463_v56 = vpop.f32.mrf.mxu0  ;;  %v23498_v63 = vpop.f32.mrf.mxu1 }
0x1190   : > { %v18419_v6 = vadd.f32 %v23470_v47, %v23463_v56 }
0x1191   : > { %v18321_v27 = vpop.f32.mrf.mxu0  ;;  %v18740_v7 = vpop.f32.mrf.mxu1 }
0x1192   : > { %v18413_v49 = vadd.f32 %v18412_v15, %v18321_v27 }
0x1193   : > { %v23477_v50 = vpop.f32.mrf.mxu0 }
0x1194   : > { %v18502_v19 = vadd.f32 %v23477_v50, %v18419_v6  ;;  %v23771_v6 = vld [vmem:[%s24143_s6 + $0x30] sm:$0xff] }
0x1195   : > { %v18494_v33 = vpop.f32.mrf.mxu0  ;;  %v19762_v27 = vmul.f32 %v23771_v6, %v25550_v43 }
0x1196   : > { %v18495_v40 = vadd.f32 %v18494_v33, %v18413_v49  ;;  %v18585_v44 = vadd.f32 %v23484_v60, %v18502_v19 }
0x1197   : > { %v23491_v61 = vpop.f32.mrf.mxu0  ;;  %v25794_v38 = vand.u32 4294901760, %v19762_v27 }
0x1198   : > { %v18668_v21 = vadd.f32 %v23491_v61, %v18585_v44  ;;  %v18577_v23 = vadd.f32 %v18576_v1, %v18495_v40  ;;  %v25788_v1 = vand.u32 4294901760, %v19763_v54 }
0x1199   : > { %v18661_v3 = vpop.f32.mrf.mxu0  ;;  %v19888_v43 = vsub.f32 %v19762_v27, %v25794_v38 }
0x119a   : > { %v25778_v59 = vadd.f32 %v23498_v63, %v18668_v21  ;;  %v18662_v57 = vadd.f32 %v18661_v3, %v18577_v23  ;;  %v23512_v2 = vpop.f32.mrf.mxu1  ;;  %v19881_v61 = vsub.f32 %v19763_v54, %v25788_v1 }
0x119b   : > { %v23505_v11 = vpop.f32.mrf.mxu0 }
0x119c   : > { %v20781_v26 = vsub.f32 %v25778_v59, %v25689_v41  ;;  %v25782_v52 = vadd.f32 %v18740_v7, %v18662_v57  ;;  %v18916_v53 = vpop.f32.mrf.mxu1  ;;  %v18923_v45 = vadd.f32 %v23512_v2, %v23505_v11  ;;  %v25797_v57 = vand.u32 4294901760, %v19881_v61 }
0x119d   : > { %v18825_v39 = vpop.f32.mrf.mxu0 }
0x119e   : > { %v20780_v58 = vsub.f32 %v25782_v52, %v25698_v16  ;;  %v18917_v5 = vadd.f32 %v18916_v53, %v18825_v39 }
0x119f   : > { %v23519_v0 = vpop.f32.mrf.mxu0 }
0x11a0   : > { %v19006_v46 = vadd.f32 %v23519_v0, %v18923_v45  ;;  %v19883_v45 = vsub.f32 %v19881_v61, %v25797_v57  ;;  %v19889_v0 = vand.u32 4294901760, %v19888_v43 }
0x11a1   : > { %v23526_v36 = vpop.f32.mrf.mxu1  ;;  %v18998_v8 = vpop.f32.mrf.mxu0 }
0x11a2   : > { %v19089_v42 = vadd.f32 %v23526_v36, %v19006_v46  ;;  %v18999_v12 = vadd.f32 %v18998_v8, %v18917_v5  ;;  %v19884_v8 = vand.u32 4294901760, %v19883_v45 }
0x11a3   : > { %v19080_v47 = vpop.f32.mrf.mxu1 }
0x11a4   : > { %v19081_v15 = vadd.f32 %v19080_v47, %v18999_v12 }
0x11a5   : > { %v23533_v60 = vpop.f32.mrf.mxu0 }
0x11a6   : > { %v19172_v56 = vadd.f32 %v23533_v60, %v19089_v42  ;;  %v19890_v42 = vsub.f32 %v19888_v43, %v19889_v0 }
0x11a7   : > { %v23540_v49 = vpop.f32.mrf.mxu1  ;;  %v19165_v50 = vpop.f32.mrf.mxu0 }
0x11a8   : > { %v19251_v63 = vadd.f32 %v23540_v49, %v19172_v56  ;;  %v19166_v19 = vadd.f32 %v19165_v50, %v19081_v15  ;;  %v19891_v12 = vand.u32 4294901760, %v19890_v42 }
0x11a9   : > { %v19244_v33 = vpop.f32.mrf.mxu1 }
0x11aa   : > { %v19258_v40 = vsel %vm333_vm0, %v19251_v63, 0  ;;  %v19245_v44 = vadd.f32 %v19244_v33, %v19166_v19 }
0x11ab   : > { %v19337_v7 = vand.u32 4294901760, %v19258_v40 }
0x11ac   : > { %v19255_v21 = vsel %vm333_vm0, %v19245_v44, 0 }
0x11ad   : > { %v19338_v23 = vsub.f32 %v19258_v40, %v19337_v7  ;;  %v19327_v3 = vand.u32 4294901760, %v19255_v21 }
0x11af   : > { %v19339_v2 = vand.u32 4294901760, %v19338_v23  ;;  %v19328_v11 = vsub.f32 %v19255_v21, %v19327_v3  ;;  %23552 = vmatprep.mubr.f32.mxu1 %v19327_v3 }
0x11b0   : > { %23553 = vmatmul.mubr.f32.vlgmr.msra.gmra.mxu1 %v19337_v7 }
0x11b1   : > { %23563 = vmatpush3.msra.mxu1 %v24194_v28  ;;  %v19329_v39 = vand.u32 4294901760, %v19328_v11  ;;  %v19340_v53 = vsub.f32 %v19338_v23, %v19339_v2 }
0x11b2   : > { %23564 = vmatprep.subr.mxu1 %v24198_v29 }
0x11b3   : > { %23565 = vmatpush3.msra.mxu1 %v24198_v29  ;;  %23566 = vmatprep.mubr.f32.mxu1 %v19329_v39  ;;  %v19330_v5 = vsub.f32 %v19328_v11, %v19329_v39  ;;  %v19341_v36 = vand.u32 4294901760, %v19340_v53 }
0x11b4   : > { %23567 = vmatmul.mubr.f32.vlgmr.msra.gmra.mxu1 %v19339_v2  ;;  %23576 = vmatprep.subr.mxu1 %v24194_v28 }
0x11b5   : > { %23577 = vmatpush3.msra.mxu1 %v24194_v28  ;;  %23580 = vmatprep.mubr.f32.mxu1 %v19327_v3  ;;  %v19331_v46 = vand.u32 4294901760, %v19330_v5 }
0x11b6   : > { %23578 = vmatprep.subr.mxu1 %v24198_v29 }
0x11b7   : > { %23545 = vmatprep.mubr.f32.mxu0 %v19331_v46  ;;  %23579 = vmatpush3.msra.mxu1 %v24198_v29 }
0x11b8   : > { %23546 = vmatmul.mubr.f32.vlgmr.msra.gmra.mxu0 %v19341_v36  ;;  %23581 = vmatmul.mubr.f32.vlgmr.msra.gmra.mxu1 %v19337_v7 }
0x11b9   : > { %23556 = vmatpush3.msra.mxu0 %v24204_v30  ;;  %23559 = vmatprep.mubr.f32.mxu0 %v19328_v11  ;;  %v20798_v11 = vadd.f32 0.0001, %v25711_v62 }
0x11ba   : > { %23557 = vmatprep.subr.mxu0 %v24210_v31  ;;  %23590 = vmatprep.subr.mxu1 %v19884_v8 }
0x11bb   : > { %23558 = vmatpush3.msra.mxu0 %v24210_v31  ;;  %23591 = vmatpush3.msra.mxu1 %v19884_v8 }
0x11bc   : > { %23560 = vmatmul.mubr.f32.vlgmr.msra.gmra.mxu0 %v19338_v23  ;;  %23569 = vmatprep.subr.mxu0 %v24213_v32  ;;  %v20799_v23 = vadd.f32 0.0001, %v25702_v22 }
0x11bd   : > { %23570 = vmatpush3.msra.mxu0 %v24213_v32  ;;  %23573 = vmatprep.mubr.f32.mxu0 %v19327_v3 }
0x11be   : > { %23571 = vmatprep.subr.mxu0 %v24218_v34  ;;  %23592 = vmatprep.subr.mxu1 %v19891_v12 }
0x11bf   : > { %23572 = vmatpush3.msra.mxu0 %v24218_v34  ;;  %23593 = vmatpush3.msra.mxu1 %v19891_v12 }
0x11c0   : > { %23574 = vmatmul.mubr.f32.vlgmr.msra.gmra.mxu0 %v19337_v7  ;;  %23583 = vmatprep.subr.mxu0 %v25788_v1 }
0x11c1   : > { %23584 = vmatpush3.msra.mxu0 %v25788_v1  ;;  %23587 = vmatprep.mubr.f32.mxu0 %v24182_v24 }
0x11c2   : > { %23585 = vmatprep.subr.mxu0 %v25794_v38  ;;  %23594 = vmatprep.mubr.f32.mxu1 %v24160_v9 }
0x11c3   : > { %23586 = vmatpush3.msra.mxu0 %v25794_v38  ;;  %23595 = vmatmul.mubr.f32.vlgmr.msra.gmra.mxu1 %v24162_v10 }
0x11c4   : > { %23588 = vmatmul.mubr.f32.vlgmr.msra.gmra.mxu0 %v24184_v25  ;;  %23597 = vmatprep.subr.mxu0 %v19881_v61 }
0x11c5   : > { %23598 = vmatpush3.msra.mxu0 %v19881_v61  ;;  %23604 = vmatprep.subr.mxu1 %v25788_v1 }
0x11c6   : > { %23599 = vmatprep.subr.mxu0 %v19888_v43  ;;  %23605 = vmatpush3.msra.mxu1 %v25788_v1 }
0x11c7   : > { %23600 = vmatpush3.msra.mxu0 %v19888_v43  ;;  %23601 = vmatprep.mubr.f32.mxu0 %v24166_v13 }
0x11c8   : > { %23606 = vmatprep.subr.mxu1 %v25794_v38  ;;  %23602 = vmatmul.mubr.f32.vlgmr.msra.gmra.mxu0 %v24170_v14 }
0x11c9   : > { %23607 = vmatpush3.msra.mxu1 %v25794_v38  ;;  %23608 = vmatprep.mubr.f32.mxu1 %v24173_v17 }
0x11ca   : > { %23611 = vmatprep.subr.mxu0 %v25797_v57  ;;  %23609 = vmatmul.mubr.f32.vlgmr.msra.gmra.mxu1 %v24176_v18 }
0x11cb   : > { %23612 = vmatpush3.msra.mxu0 %v25797_v57  ;;  %23618 = vmatprep.subr.mxu1 %v25788_v1 }
0x11cc   : > { %23613 = vmatprep.subr.mxu0 %v19889_v0  ;;  %23619 = vmatpush3.msra.mxu1 %v25788_v1 }
0x11cd   : > { %23614 = vmatpush3.msra.mxu0 %v19889_v0  ;;  %23615 = vmatprep.mubr.f32.mxu0 %v24160_v9 }
0x11ce   : > { %23620 = vmatprep.subr.mxu1 %v25794_v38  ;;  %23616 = vmatmul.mubr.f32.vlgmr.msra.gmra.mxu0 %v24162_v10 }
0x11cf   : > { %23621 = vmatpush3.msra.mxu1 %v25794_v38  ;;  %23622 = vmatprep.mubr.f32.mxu1 %v24160_v9 }
0x11d0   : > { %23623 = vmatmul.mubr.f32.vlgmr.msra.gmra.mxu1 %v24162_v10  ;;  %23632 = vmatprep.subr.mxu1 %v24220_v35 }
0x11d1   : > { %23633 = vmatpush3.msra.mxu1 %v24220_v35  ;;  %23625 = vmatprep.subr.mxu0 %v24194_v28 }
0x11d2   : > { %23634 = vmatprep.subr.mxu1 %v24225_v37  ;;  %23626 = vmatpush3.msra.mxu0 %v24194_v28 }
0x11d3   : > { %23635 = vmatpush3.msra.mxu1 %v24225_v37  ;;  %23627 = vmatprep.subr.mxu0 %v24198_v29 }
0x11d4   : > { %23646 = vmatprep.subr.mxu1 %v24194_v28  ;;  %23628 = vmatpush3.msra.mxu0 %v24198_v29 }
0x11d5   : > { %23639 = vmatprep.subr.mxu0 %v24204_v30 }
0x1270   : > { %v23554_v9 = vpop.f32.mrf.mxu1 }
0x1272   : > { %v19424_v10 = vpop.f32.mrf.mxu1 }
0x1274   : > { %v23568_v13 = vpop.f32.mrf.mxu1 }
0x1276   : > { %v19588_v17 = vpop.f32.mrf.mxu1 }
0x1278   : > { %v23547_v14 = vpop.f32.mrf.mxu0  ;;  %v23582_v51 = vpop.f32.mrf.mxu1 }
0x1279   : > { %v19431_v18 = vadd.f32 %v23554_v9, %v23547_v14 }
0x127a   : > { %v19333_v24 = vpop.f32.mrf.mxu0  ;;  %v19752_v56 = vpop.f32.mrf.mxu1 }
0x127b   : > { %v19425_v25 = vadd.f32 %v19424_v10, %v19333_v24 }
0x127c   : > { %v23561_v35 = vpop.f32.mrf.mxu0 }
0x127d   : > { %v19514_v54 = vadd.f32 %v23561_v35, %v19431_v18 }
0x127e   : > { %v19506_v37 = vpop.f32.mrf.mxu0 }
0x127f   : > { %v19507_v47 = vadd.f32 %v19506_v37, %v19425_v25  ;;  %v19597_v15 = vadd.f32 %v23568_v13, %v19514_v54 }
0x1280   : > { %v23575_v60 = vpop.f32.mrf.mxu0 }
0x1281   : > { %v19680_v1 = vadd.f32 %v23575_v60, %v19597_v15  ;;  %v19589_v6 = vadd.f32 %v19588_v17, %v19507_v47 }
0x1282   : > { %v19673_v27 = vpop.f32.mrf.mxu0 }
0x1283   : > { %v19759_v49 = vadd.f32 %v23582_v51, %v19680_v1  ;;  %v19674_v50 = vadd.f32 %v19673_v27, %v19589_v6  ;;  %v23596_v63 = vpop.f32.mrf.mxu1 }
0x1284   : > { %v23589_v19 = vpop.f32.mrf.mxu0 }
0x1285   : > { %v20783_v33 = vsub.f32 %v19759_v49, %v25691_v20  ;;  %v19753_v40 = vadd.f32 %v19752_v56, %v19674_v50  ;;  %v19928_v61 = vpop.f32.mrf.mxu1  ;;  %v19935_v21 = vadd.f32 %v23596_v63, %v23589_v19 }
0x1286   : > { %v19837_v44 = vpop.f32.mrf.mxu0 }
0x1287   : > { %v20801_v38 = vadd.f32 %v20783_v33, %v20781_v26  ;;  %v20782_v7 = vsub.f32 %v19753_v40, %v25704_v55  ;;  %v19929_v2 = vadd.f32 %v19928_v61, %v19837_v44  ;;  %v20787_v44 = vmul.f32 2.0, %v25694_v4 }
0x1288   : > { %v23603_v3 = vpop.f32.mrf.mxu0 }
0x1289   : > { %v20803_v57 = vadd.f32 0.0009, %v20801_v38  ;;  %v20800_v43 = vadd.f32 %v20782_v7, %v20780_v58  ;;  %v20018_v20 = vadd.f32 %v23603_v3, %v19935_v21  ;;  %v20786_v7 = vmul.f32 2.0, %v25707_v48 }
0x128a   : > { %v23610_v39 = vpop.f32.mrf.mxu1  ;;  %v20010_v53 = vpop.f32.mrf.mxu0  ;;  %v20789_v3 = vadd.f32 0.0001, %v20787_v44 }
0x128b   : > { %v25861_v45 = vmul.f32 %v20803_v57, %v20799_v23  ;;  %v20802_v41 = vadd.f32 0.0009, %v20800_v43  ;;  %v20101_v59 = vadd.f32 %v23610_v39, %v20018_v20  ;;  %v20011_v55 = vadd.f32 %v20010_v53, %v19929_v2 }
0x128c   : > { %v20092_v26 = vpop.f32.mrf.mxu1  ;;  %v20788_v2 = vadd.f32 0.0001, %v20786_v7 }
0x128d   : > { %v25863_v0 = vmul.f32 %v20802_v41, %v20798_v11  ;;  %v20093_v22 = vadd.f32 %v20092_v26, %v20011_v55  ;;  %23762 = vrcp.f32 %v25861_v45 }
0x128e   : > { %v23617_v5 = vpop.f32.mrf.mxu0 }
0x128f   : > { %v20184_v46 = vadd.f32 %v23617_v5, %v20101_v59  ;;  %23764 = vrcp.f32 %v25863_v0 }
0x1290   : > { %v23624_v36 = vpop.f32.mrf.mxu1  ;;  %v20177_v16 = vpop.f32.mrf.mxu0 }
0x1291   : > { %v20263_v52 = vadd.f32 %v23624_v36, %v20184_v46  ;;  %v20178_v58 = vadd.f32 %v20177_v16, %v20093_v22 }
0x1292   : > { %v20256_v8 = vpop.f32.mrf.mxu1 }
0x1293   : > { %v20270_v62 = vsel %vm333_vm0, %v20263_v52, 0  ;;  %v20257_v42 = vadd.f32 %v20256_v8, %v20178_v58 }
0x1294   : > { %v20349_v12 = vand.u32 4294901760, %v20270_v62 }
0x1295   : > { %v20267_v9 = vsel %vm333_vm0, %v20257_v42, 0 }
0x1296   : > { %v20350_v10 = vsub.f32 %v20270_v62, %v20349_v12  ;;  %v20339_v13 = vand.u32 4294901760, %v20267_v9 }
0x1298   : > { %v20351_v14 = vand.u32 4294901760, %v20350_v10  ;;  %v20340_v17 = vsub.f32 %v20267_v9, %v20339_v13  ;;  %23636 = vmatprep.mubr.f32.mxu1 %v20339_v13 }
0x1299   : > { %23637 = vmatmul.mubr.f32.vlgmr.msra.gmra.mxu1 %v20349_v12 }
0x129a   : > { %23647 = vmatpush3.msra.mxu1 %v24194_v28  ;;  %v20341_v18 = vand.u32 4294901760, %v20340_v17  ;;  %v20352_v24 = vsub.f32 %v20350_v10, %v20351_v14  ;;  %v23763_v39 = vpop.eup %23762 }
0x129b   : > { %23648 = vmatprep.subr.mxu1 %v24198_v29 }
0x129c   : > { %23649 = vmatpush3.msra.mxu1 %v24198_v29  ;;  %23650 = vmatprep.mubr.f32.mxu1 %v20341_v18  ;;  %v20342_v25 = vsub.f32 %v20340_v17, %v20341_v18  ;;  %v20353_v51 = vand.u32 4294901760, %v20352_v24  ;;  %v23765_v41 = vpop.eup %23764 }
0x129d   : > { %23651 = vmatmul.mubr.f32.vlgmr.msra.gmra.mxu1 %v20351_v14  ;;  %23660 = vmatprep.subr.mxu1 %v24194_v28 }
0x129e   : > { %23661 = vmatpush3.msra.mxu1 %v24194_v28  ;;  %23664 = vmatprep.mubr.f32.mxu1 %v20339_v13  ;;  %v20343_v35 = vand.u32 4294901760, %v20342_v25 }
0x129f   : > { %23662 = vmatprep.subr.mxu1 %v24198_v29 }
0x12a0   : > { %23629 = vmatprep.mubr.f32.mxu0 %v20343_v35  ;;  %23663 = vmatpush3.msra.mxu1 %v24198_v29 }
0x12a1   : > { %23630 = vmatmul.mubr.f32.vlgmr.msra.gmra.mxu0 %v20353_v51  ;;  %23665 = vmatmul.mubr.f32.vlgmr.msra.gmra.mxu1 %v20349_v12 }
0x12a2   : > { %23640 = vmatpush3.msra.mxu0 %v24204_v30  ;;  %23643 = vmatprep.mubr.f32.mxu0 %v20340_v17  ;;  %v20839_v17 = vlaneseq }
0x12a3   : > { %23641 = vmatprep.subr.mxu0 %v24210_v31 }
0x12a4   : > { %23642 = vmatpush3.msra.mxu0 %v24210_v31  ;;  %v20840_v18 = vand.u32 127, %v20839_v17 }
0x12a5   : > { %23644 = vmatmul.mubr.f32.vlgmr.msra.gmra.mxu0 %v20350_v10  ;;  %23653 = vmatprep.subr.mxu0 %v24213_v32 }
0x12a6   : > { %23654 = vmatpush3.msra.mxu0 %v24213_v32  ;;  %23657 = vmatprep.mubr.f32.mxu0 %v20339_v13  ;;  %vm20841_vm1 = vcmp.eq.s32.totalorder %v20840_v18, 0 }
0x12a7   : > { %23655 = vmatprep.subr.mxu0 %v24218_v34 }
0x12a8   : > { %23656 = vmatpush3.msra.mxu0 %v24218_v34 }
0x12a9   : > { %23658 = vmatmul.mubr.f32.vlgmr.msra.gmra.mxu0 %v20349_v12 }
0x1359   : > { %v23638_v28 = vpop.f32.mrf.mxu1 }
0x135b   : > { %v20436_v29 = vpop.f32.mrf.mxu1 }
0x135d   : > { %v23652_v54 = vpop.f32.mrf.mxu1 }
0x135f   : > { %v20600_v15 = vpop.f32.mrf.mxu1 }
0x1361   : > { %v23631_v30 = vpop.f32.mrf.mxu0  ;;  %v23666_v27 = vpop.f32.mrf.mxu1 }
0x1362   : > { %v20443_v47 = vadd.f32 %v23638_v28, %v23631_v30 }
0x1363   : > { %v20345_v37 = vpop.f32.mrf.mxu0  ;;  %v20764_v40 = vpop.f32.mrf.mxu1 }
0x1364   : > { %v20437_v31 = vadd.f32 %v20436_v29, %v20345_v37 }
0x1365   : > { %v23645_v60 = vpop.f32.mrf.mxu0 }
0x1366   : > { %v20526_v56 = vadd.f32 %v23645_v60, %v20443_v47 }
0x1367   : > { %v20518_v1 = vpop.f32.mrf.mxu0 }
0x1368   : > { %v20519_v32 = vadd.f32 %v20518_v1, %v20437_v31  ;;  %v20609_v6 = vadd.f32 %v23652_v54, %v20526_v56 }
0x1369   : > { %v23659_v49 = vpop.f32.mrf.mxu0 }
0x136a   : > { %v20692_v34 = vadd.f32 %v23659_v49, %v20609_v6  ;;  %v20601_v50 = vadd.f32 %v20600_v15, %v20519_v32 }
0x136b   : > { %v20685_v63 = vpop.f32.mrf.mxu0 }
0x136c   : > { %v20771_v19 = vadd.f32 %v23666_v27, %v20692_v34  ;;  %v20686_v33 = vadd.f32 %v20685_v63, %v20601_v50 }
0x136e   : > { %v20785_v61 = vsub.f32 %v20771_v19, %v25694_v4  ;;  %v20765_v38 = vadd.f32 %v20764_v40, %v20686_v33 }
0x1370   : > { %v20791_v21 = vmul.f32 2.0, %v20785_v61  ;;  %v20784_v23 = vsub.f32 %v20765_v38, %v25707_v48 }
0x1372   : > { %v20793_v57 = vadd.f32 0.0009, %v20791_v21  ;;  %v20790_v43 = vmul.f32 2.0, %v20784_v23 }
0x1374   : > { %v20795_v20 = vmul.f32 %v20793_v57, %v20789_v3  ;;  %v20792_v11 = vadd.f32 0.0009, %v20790_v43 }
0x1376   : > { %v20794_v53 = vmul.f32 %v20792_v11, %v20788_v2  ;;  %v20809_v45 = vmul.f32 %v23763_v39, %v20795_v20 }
0x1378   : > { %v20807_v59 = vmul.f32 %v23765_v41, %v20794_v53  ;;  %21019 = vst.msk [vmem:[%s24679_s15 + $0x38] sm:$0xff] %vm333_vm0, %v20809_v45  ;;  %v20826_v55 = vsel %vm333_vm0, %v20809_v45, -inf  ;;  %v20814_v26 = vsel %vm333_vm0, %v20809_v45, inf }
0x137a   : > { %v20825_v4 = vsel %vm333_vm0, %v20807_v59, -inf  ;;  %21018 = vst.msk [vmem:[%s24679_s15 + $0x30] sm:$0xff] %vm333_vm0, %v20807_v59  ;;  %v20813_v48 = vsel %vm333_vm0, %v20807_v59, inf }
0x137b   : > { %v20827_v0 = vmax.f32 %v20825_v4, %v20826_v55  ;;  %v20815_v22 = vmin.f32 %v20813_v48, %v20814_v26 }
0x137d   : > { %20828 = vmax.xlane.f32.xlu1 %v20827_v0  ;;  %20816 = vmin.xlane.f32.xlu0 %v20815_v22 }
0x1406   : > { %v20829_v5 = vpop.xlane.xlu1 %20828  ;;  %v20817_v46 = vpop.xlane.xlu0 %20816 }
0x1407   : > { %v20830_v36 = vrot.slane %v20829_v5, 4  ;;  %v20818_v16 = vrot.slane %v20817_v46, 4 }
0x1409   : > { %v20831_v52 = vmax.f32 %v20829_v5, %v20830_v36  ;;  %v20819_v58 = vmin.f32 %v20817_v46, %v20818_v16 }
0x140b   : > { %v20832_v8 = vrot.slane %v20831_v52, 2  ;;  %v20820_v62 = vrot.slane %v20819_v58, 2 }
0x140d   : > { %v20833_v42 = vmax.f32 %v20831_v52, %v20832_v8  ;;  %v20821_v12 = vmin.f32 %v20819_v58, %v20820_v62 }
0x140f   : > { %v20822_v9 = vrot.slane %v20821_v12, 1  ;;  %v20834_v10 = vrot.slane %v20833_v42, 1 }
0x1411   : > { %v20823_v13 = vmin.f32 %v20821_v12, %v20822_v9  ;;  %v20835_v14 = vmax.f32 %v20833_v42, %v20834_v10 }
0x1413   : > { %23679 = vpush %v20823_v13 }
0x1414   : > { %23681 = vpush %v20835_v14 }
0x1444   : > { %s23680_s12 = spop %23679 }
0x1445   : > { %s20837_s13 = smin.f32 %s23680_s12, %s15710_s30  ;;  %s23682_s29 = spop %23681 }
0x1446   : > { %v20842_v24 = vstv %s20837_s13  ;;  %s20838_s8 = smax.f32 %s23682_s29, %s15711_s10 }
0x1447   : > { %v20843_v25 = vstv %s20838_s8 }
0x1448   : > { %v20844_v35 = vsel %vm20841_vm1, %v20842_v24, %v20843_v25 }
0x1449   : > { %20846 = vst.msk [vmem:[%s324_s27] sm:$0x1] %vm20845_vm2, %v20844_v35 }
0x144a PF: > { %p15_p9 = scmp.ge.s32.totalorder %s23982_s23, 4   ;;  %s25943_s18 = smov %s23914_s19 }
0x144b   : > { %s25944_s19 = smov %s23918_s20  ;;  %s25945_s20 = smov %s23992_s26 }
0x144c   : > { %s25946_s21 = smov %s23982_s23  ;;  %17 = sbr.rel (!%p15_p9) target bundleno = 3 (0x3), region = 115 }
0x1451   :  { %20883 = vsyncpa [#allocation3], 1 }
0x1452   :  { %20885 = vsyncpa [#allocation3 + $0x1], 1 }
0x1453   :  { %20886 = vsyncpa [#allocation5], 1 }

</bundles_post_ra>
